<compile_context>
chip_gen: v7x
topology: tpu7x:2x2x1
jax: 0.10.0
libtpu: 0.0.40
codegen_flags: <defaults>
</compile_context>

<pallas_src>
import functools

import numpy as np
import jax
import jax.numpy as jnp
from jax import lax
from jax.experimental import pallas as pl
from jax.experimental.pallas import tpu as pltpu

# ----------------------------- configuration --------------------------------
DIM = 32
NUM_HEADS = 4
HEAD_DIM = DIM // NUM_HEADS
WIN = (8, 8)
N_TOK = WIN[0] * WIN[1]
BOUND = 8
B_WIN = 2                       # number of windows in the batch
SCALE = HEAD_DIM ** -0.5
DIST = min(WIN[0] - 1, 2)
KS = 2 * DIST + 1 if DIST > 0 else 1
PAD = DIST if DIST > 0 else 0
N_TAPS = KS * KS

# windows per grid step; keep the grid length a multiple of 2 ("parallel") for v7x megacore
WINDOWS_PER_BLOCK = 1

# zero-padded shift-scratch geometry for the depthwise conv
MAX_SHIFT = PAD * WIN[1] + PAD                              # 18
PAD_OFF = ((MAX_SHIFT + 7) // 8) * 8                        # 24 (sublane aligned store)
PAD_ROWS = ((PAD_OFF + N_TOK + MAX_SHIFT + 7) // 8) * 8     # 112

assert DIM % NUM_HEADS == 0
assert B_WIN % WINDOWS_PER_BLOCK == 0


def build_tap_tables(win, ks, pad):
    """Per-tap flat-token shift and 0/1 boundary mask for the depthwise conv."""
    wh, ww = win
    n = wh * ww
    shifts = []
    masks = np.zeros((ks * ks, n), np.float32)
    for ky in range(ks):
        for kx in range(ks):
            t = ky * ks + kx
            dy, dx = ky - pad, kx - pad
            shifts.append(dy * ww + dx)
            for y in range(wh):
                for x in range(ww):
                    if 0 <= y + dy < wh and 0 <= x + dx < ww:
                        masks[t, y * ww + x] = 1.0
    return tuple(shifts), masks


TAP_SHIFTS, TAP_MASKS = build_tap_tables(WIN, KS, PAD)


# ------------------------------- fused kernel --------------------------------
def remsa_fused_kernel(x_ref, wqkvp_ref, bqkvp_ref, hmask_ref, bias_ref,
                       coeff_ref, wcat_ref, bfold_ref, o_ref, pad_ref, cat_ref,
                       *, dim, num_heads, n_tok, tap_shifts, pad_off, wb):
    c = dim
    hmask = hmask_ref[...]                                   # (heads, C) 0/1
    bias = bias_ref[...]                                     # (heads*N, N)
    wqkvp = wqkvp_ref[...]                                   # (C, 4C) bf16
    wcat = wcat_ref[...]                                     # (2C, C) bf16

    # zero the halo rows of the shift scratch once; the live region [pad_off, pad_off+N)
    # is rewritten for every window below.
    pad_ref[...] = jnp.zeros(pad_ref.shape, pad_ref.dtype)

    for w in range(wb):                                      # wb is small & static
        x = x_ref[w]                                         # (N, C) bf16

        # ---- fused qkvp projection (scale already folded into the q columns) ----
        qkvp = jnp.dot(x, wqkvp, preferred_element_type=jnp.float32) + bqkvp_ref[...]
        q = qkvp[:, 0 * c:1 * c]                             # f32, pre-scaled
        k = qkvp[:, 1 * c:2 * c].astype(jnp.bfloat16)
        v = qkvp[:, 2 * c:3 * c].astype(jnp.bfloat16)
        p = qkvp[:, 3 * c:4 * c]                             # f32

        # ---- head-packed attention, heads stacked along rows: (heads*N, ...) ----
        q_bd = jnp.concatenate(
            [(q * hmask[h:h + 1, :]).astype(jnp.bfloat16) for h in range(num_heads)],
            axis=0)                                          # (heads*N, C)
        s = lax.dot_general(q_bd, k, (((1,), (1,)), ((), ())),
                            preferred_element_type=jnp.float32)   # (heads*N, N)
        s = s + bias
        # TODO(synk): the `mask is not None` branch would add the window mask here.
        s = s - jnp.max(s, axis=-1, keepdims=True)
        e = jnp.exp(s)
        l = jnp.sum(e, axis=-1, keepdims=True)               # (heads*N, 1) f32
        full = jnp.dot(e.astype(jnp.bfloat16), v,
                       preferred_element_type=jnp.float32)   # (heads*N, C)
        # normalize AFTER A@V (on (heads*N, C) instead of (heads*N, N))
        normed = full * pl.reciprocal(l, approx=True)
        attn = normed[0:n_tok, :] * hmask[0:1, :]
        for h in range(1, num_heads):
            attn = attn + normed[h * n_tok:(h + 1) * n_tok, :] * hmask[h:h + 1, :]

        # ---- Position_Extract depthwise KSxKS conv: shifted reads of the zero-padded
        #      scratch + per-tap (mask ⊗ weight) FMAs on the VPU (no MXU, no concat) ----
        pad_ref[pl.ds(pad_off, n_tok), :] = p
        dw = jnp.zeros((n_tok, c), jnp.float32)
        for t, d in enumerate(tap_shifts):
            shifted = pad_ref[pl.ds(pad_off + d, n_tok), :]  # static (misaligned) slice
            dw = dw + shifted * coeff_ref[t]

        # ---- fused epilogue: [attn | dwconv] @ [W_proj^T ; W_fold] + b_fold ----
        cat_ref[:, pl.ds(0, c)] = attn
        cat_ref[:, pl.ds(c, c)] = dw
        out = jnp.dot(cat_ref[...].astype(jnp.bfloat16), wcat,
                      preferred_element_type=jnp.float32) + bfold_ref[...]
        o_ref[w] = out.astype(o_ref.dtype)


# --------------------------- host-side preparation ----------------------------
def relative_position_index(win, bound):
    wh, ww = win
    coords = np.stack(np.meshgrid(np.arange(wh), np.arange(ww), indexing="ij"))
    coords_flat = coords.reshape(2, -1)
    rel = coords_flat[:, :, None] - coords_flat[:, None, :]
    rel = np.clip(rel, -(bound - 1), bound - 1)
    rel = rel.transpose(1, 2, 0).copy()
    rel[:, :, 0] += bound - 1
    rel[:, :, 1] += bound - 1
    rel[:, :, 0] *= 2 * bound - 1
    return jnp.asarray(rel.sum(-1))                          # (N, N) int


def init_params(key):
    ks = jax.random.split(key, 9)
    std = 0.02
    return {
        "w_qkvp": std * jax.random.normal(ks[0], (4 * DIM, DIM), jnp.float32),
        "b_qkvp": std * jax.random.normal(ks[1], (4 * DIM,), jnp.float32),
        "rpb_table": std * jax.random.normal(ks[2], ((2 * BOUND - 1) ** 2, NUM_HEADS), jnp.float32),
        "w_dw": std * jax.random.normal(ks[3], (DIM, KS, KS), jnp.float32),      # depthwise conv
        "b_dw": std * jax.random.normal(ks[4], (DIM,), jnp.float32),
        "w_pw": std * jax.random.normal(ks[5], (DIM, HEAD_DIM), jnp.float32),    # grouped 1x1 conv
        "b_pw": std * jax.random.normal(ks[6], (DIM,), jnp.float32),
        "w_proj": std * jax.random.normal(ks[7], (DIM, DIM), jnp.float32),
        "b_proj": std * jax.random.normal(ks[8], (DIM,), jnp.float32),
    }


def prepare_inputs(params):
    """One-time host-side folding / layout prep for the fused kernel."""
    # relative position bias, rows-stacked per head: (heads*N, N)
    rp_index = relative_position_index(WIN, BOUND)
    bias = params["rpb_table"][rp_index.reshape(-1)]
    bias_rows = (bias.reshape(N_TOK, N_TOK, NUM_HEADS).transpose(2, 0, 1)
                 .reshape(NUM_HEADS * N_TOK, N_TOK))

    # qkvp weight (transposed) with attention scale folded into the q slice
    w_qkvp_t = params["w_qkvp"].T
    w_qkvp_t = w_qkvp_t.at[:, :DIM].multiply(SCALE)
    b_qkvp = params["b_qkvp"].at[:DIM].multiply(SCALE)[None, :]

    # depthwise conv: per-tap coefficient = boundary mask (tokens) ⊗ tap weight (channels)
    w_taps = params["w_dw"].transpose(1, 2, 0).reshape(N_TAPS, DIM)              # (taps, C)
    tap_coeff = jnp.asarray(TAP_MASKS)[:, :, None] * w_taps[:, None, :]          # (taps, N, C)

    # fold grouped 1x1 conv + its bias + depthwise bias into the (fused) output projection
    wpw_g = params["w_pw"].reshape(NUM_HEADS, HEAD_DIM, HEAD_DIM)
    wpw_bd = jax.scipy.linalg.block_diag(*[wpw_g[h] for h in range(NUM_HEADS)])  # (C, C)
    w_projT = params["w_proj"].T
    w_fold = wpw_bd.T @ w_projT
    b_fold = (params["b_dw"] @ w_fold + params["b_pw"] @ w_projT + params["b_proj"])[None, :]
    w_cat = jnp.concatenate([w_projT, w_fold], axis=0)                           # (2C, C)

    # static head-selection mask (heads, C)
    hmask = (np.arange(DIM)[None, :] // HEAD_DIM ==
             np.arange(NUM_HEADS)[:, None]).astype(np.float32)

    return {
        "w_qkvp_t": w_qkvp_t.astype(jnp.bfloat16),
        "b_qkvp": b_qkvp,
        "hmask": jnp.asarray(hmask),
        "bias_rows": bias_rows,
        "tap_coeff": tap_coeff,
        "w_cat": w_cat.astype(jnp.bfloat16),
        "b_fold": b_fold,
    }


# ------------------------------- forward wrapper -------------------------------
def remsa_forward(x, prep, windows_per_block=WINDOWS_PER_BLOCK):
    B_, N, C = x.shape
    wb = windows_per_block
    assert B_ % wb == 0
    kern = functools.partial(remsa_fused_kernel, dim=DIM, num_heads=NUM_HEADS,
                             n_tok=N_TOK, tap_shifts=TAP_SHIFTS, pad_off=PAD_OFF, wb=wb)
    return pl.pallas_call(
        kern,
        out_shape=jax.ShapeDtypeStruct((B_, N, C), jnp.float32),
        grid_spec=pltpu.PrefetchScalarGridSpec(
            num_scalar_prefetch=0,
            grid=(B_ // wb,),
            in_specs=[
                pl.BlockSpec((wb, N, C), lambda b: (b, 0, 0)),               # x (bf16, per step)
                pl.BlockSpec((C, 4 * C), lambda b: (0, 0)),                  # W_qkvp^T (bf16, resident)
                pl.BlockSpec((1, 4 * C), lambda b: (0, 0)),                  # b_qkvp
                pl.BlockSpec((NUM_HEADS, C), lambda b: (0, 0)),              # head mask
                pl.BlockSpec((NUM_HEADS * N, N), lambda b: (0, 0)),          # rel-pos bias (rows)
                pl.BlockSpec((N_TAPS, N, C), lambda b: (0, 0, 0)),           # conv tap coefficients
                pl.BlockSpec((2 * C, C), lambda b: (0, 0)),                  # [W_proj^T ; W_fold] (bf16)
                pl.BlockSpec((1, C), lambda b: (0, 0)),                      # b_fold
            ],
            out_specs=pl.BlockSpec((wb, N, C), lambda b: (b, 0, 0)),
            scratch_shapes=[
                pltpu.VMEM((PAD_ROWS, DIM), jnp.float32),                    # zero-padded p for shifts
                pltpu.VMEM((N_TOK, 2 * DIM), jnp.float32),                   # [attn | dwconv] staging
            ]),
        compiler_params=pltpu.CompilerParams(dimension_semantics=("parallel",)),
    )(x.astype(jnp.bfloat16), prep["w_qkvp_t"], prep["b_qkvp"], prep["hmask"],
      prep["bias_rows"], prep["tap_coeff"], prep["w_cat"], prep["b_fold"])


# ------------------------------- pure-JAX reference ---------------------------
def remsa_reference(x, params):
    B_, N, C = x.shape
    qkvp = x @ params["w_qkvp"].T + params["b_qkvp"]
    q = qkvp[..., 0 * C:1 * C].reshape(B_, N, NUM_HEADS, HEAD_DIM).transpose(0, 2, 1, 3)
    k = qkvp[..., 1 * C:2 * C].reshape(B_, N, NUM_HEADS, HEAD_DIM).transpose(0, 2, 1, 3)
    v = qkvp[..., 2 * C:3 * C].reshape(B_, N, NUM_HEADS, HEAD_DIM).transpose(0, 2, 1, 3)
    p = qkvp[..., 3 * C:4 * C].transpose(0, 2, 1).reshape(B_, C, WIN[0], WIN[1])

    rp_index = relative_position_index(WIN, BOUND)
    bias = params["rpb_table"][rp_index.reshape(-1)].reshape(N, N, NUM_HEADS).transpose(2, 0, 1)

    A = (q * SCALE) @ jnp.swapaxes(k, -1, -2) + bias[None]
    A = jax.nn.softmax(A, axis=-1)
    attn = (A @ v).transpose(0, 2, 1, 3).reshape(B_, N, C)

    dn = ("NCHW", "OIHW", "NCHW")
    dw = lax.conv_general_dilated(p, params["w_dw"].reshape(DIM, 1, KS, KS),
                                  window_strides=(1, 1), padding=[(PAD, PAD), (PAD, PAD)],
                                  dimension_numbers=dn, feature_group_count=DIM)
    dw = dw + params["b_dw"][None, :, None, None]
    pw = lax.conv_general_dilated(dw, params["w_pw"][:, :, None, None],
                                  window_strides=(1, 1), padding="VALID",
                                  dimension_numbers=dn, feature_group_count=NUM_HEADS)
    pw = pw + params["b_pw"][None, :, None, None]
    pos = pw.reshape(B_, C, N).transpose(0, 2, 1)

    y = attn + pos
    return y @ params["w_proj"].T + params["b_proj"]


# ----------------------------------- main -------------------------------------
if __name__ == "__main__":
    key = jax.random.PRNGKey(0)
    kp, kx = jax.random.split(key)
    params = init_params(kp)
    x = jax.random.normal(kx, (B_WIN, N_TOK, DIM), jnp.float32)

    prep = prepare_inputs(params)
    out = jax.block_until_ready(remsa_forward(x, prep))
    ref = remsa_reference(x, params)

    assert out.shape == (B_WIN, N_TOK, DIM)
    err = float(jnp.max(jnp.abs(out - ref)))
    assert err < 2e-3, f"kernel/reference mismatch: {err}"
    print("KERNEL_OK")
</pallas_src>

<mosaic_0001>
module attributes {stable_mosaic.version = 11 : i64} {
  func.func @remsa_fused_kernel(%arg0: i32, %arg1: memref<1x64x32xbf16, #tpu.memory_space<vmem>>, %arg2: memref<32x128xbf16, #tpu.memory_space<vmem>>, %arg3: memref<1x128xf32, #tpu.memory_space<vmem>>, %arg4: memref<4x32xf32, #tpu.memory_space<vmem>>, %arg5: memref<256x64xf32, #tpu.memory_space<vmem>>, %arg6: memref<25x64x32xf32, #tpu.memory_space<vmem>>, %arg7: memref<64x32xbf16, #tpu.memory_space<vmem>>, %arg8: memref<1x32xf32, #tpu.memory_space<vmem>>, %arg9: memref<1x64x32xf32, #tpu.memory_space<vmem>>, %arg10: memref<112x32xf32, #tpu.memory_space<vmem>>, %arg11: memref<64x64xf32, #tpu.memory_space<vmem>>) attributes {dimension_semantics = [#tpu.dimension_semantics<parallel>], iteration_bounds = array<i64: 2>, scalar_prefetch = 0 : i64, scratch_operands = 2 : i64, tpu.core_type = #tpu.core_type<tc>, window_params = [{transform_indices = @transform_0, window_bounds = array<i64: 1, 64, 32>}, {pipeline_mode = #tpu.pipeline_mode<synchronous>, transform_indices = @transform_1, window_bounds = array<i64: 32, 128>}, {pipeline_mode = #tpu.pipeline_mode<synchronous>, transform_indices = @transform_2, window_bounds = array<i64: 1, 128>}, {pipeline_mode = #tpu.pipeline_mode<synchronous>, transform_indices = @transform_3, window_bounds = array<i64: 4, 32>}, {pipeline_mode = #tpu.pipeline_mode<synchronous>, transform_indices = @transform_4, window_bounds = array<i64: 256, 64>}, {pipeline_mode = #tpu.pipeline_mode<synchronous>, transform_indices = @transform_5, window_bounds = array<i64: 25, 64, 32>}, {pipeline_mode = #tpu.pipeline_mode<synchronous>, transform_indices = @transform_6, window_bounds = array<i64: 64, 32>}, {pipeline_mode = #tpu.pipeline_mode<synchronous>, transform_indices = @transform_7, window_bounds = array<i64: 1, 32>}, {transform_indices = @transform_8, window_bounds = array<i64: 1, 64, 32>}]} {
    %c0 = arith.constant 0 : index
    %c0_0 = arith.constant 0 : index
    %0 = vector.load %arg4[%c0, %c0_0] : memref<4x32xf32, #tpu.memory_space<vmem>>, vector<4x32xf32>
    %c0_1 = arith.constant 0 : index
    %c0_2 = arith.constant 0 : index
    %1 = vector.load %arg5[%c0_1, %c0_2] : memref<256x64xf32, #tpu.memory_space<vmem>>, vector<256x64xf32>
    %c0_3 = arith.constant 0 : index
    %c0_4 = arith.constant 0 : index
    %2 = vector.load %arg2[%c0_3, %c0_4] : memref<32x128xbf16, #tpu.memory_space<vmem>>, vector<32x128xbf16>
    %c0_5 = arith.constant 0 : index
    %c0_6 = arith.constant 0 : index
    %3 = vector.load %arg7[%c0_5, %c0_6] : memref<64x32xbf16, #tpu.memory_space<vmem>>, vector<64x32xbf16>
    %cst = arith.constant 0.000000e+00 : f32
    %4 = vector.broadcast %cst : f32 to vector<112x32xf32>
    %c0_7 = arith.constant 0 : index
    %c0_8 = arith.constant 0 : index
    %5 = vector.load %arg10[%c0_7, %c0_8] : memref<112x32xf32, #tpu.memory_space<vmem>>, vector<112x32xf32>
    tpu.vector_store %arg10[%c0_7, %c0_8], %4 {strides = array<i32>} : memref<112x32xf32, #tpu.memory_space<vmem>>, vector<112x32xf32>,
    %c0_9 = arith.constant 0 : index
    %c0_10 = arith.constant 0 : index
    %c0_11 = arith.constant 0 : index
    %6 = vector.load %arg1[%c0_9, %c0_10, %c0_11] : memref<1x64x32xbf16, #tpu.memory_space<vmem>>, vector<1x64x32xbf16>
    %7 = vector.shape_cast %6 : vector<1x64x32xbf16> to vector<64x32xbf16>
    %cst_12 = arith.constant dense<0.000000e+00> : vector<64x128xf32>
    %8 = tpu.matmul %7, %2, %cst_12 {dimension_numbers = #tpu.dot_dimension_numbers<[1], [0], [0], [1], [0, 0, 1, 1], [], []>} : vector<64x32xbf16>, vector<32x128xbf16>, vector<64x128xf32> -> vector<64x128xf32>
    %c0_13 = arith.constant 0 : index
    %c0_14 = arith.constant 0 : index
    %9 = vector.load %arg3[%c0_13, %c0_14] : memref<1x128xf32, #tpu.memory_space<vmem>>, vector<1x128xf32>
    %10 = vector.broadcast %9 : vector<1x128xf32> to vector<64x128xf32>
    %11 = arith.addf %8, %10 : vector<64x128xf32>
    %12 = vector.extract_strided_slice %11 {offsets = [0, 0], sizes = [64, 32], strides = [1, 1]} : vector<64x128xf32> to vector<64x32xf32>
    %13 = vector.extract_strided_slice %11 {offsets = [0, 32], sizes = [64, 32], strides = [1, 1]} : vector<64x128xf32> to vector<64x32xf32>
    %14 = arith.truncf %13 : vector<64x32xf32> to vector<64x32xbf16>
    %15 = vector.extract_strided_slice %11 {offsets = [0, 64], sizes = [64, 32], strides = [1, 1]} : vector<64x128xf32> to vector<64x32xf32>
    %16 = arith.truncf %15 : vector<64x32xf32> to vector<64x32xbf16>
    %17 = vector.extract_strided_slice %11 {offsets = [0, 96], sizes = [64, 32], strides = [1, 1]} : vector<64x128xf32> to vector<64x32xf32>
    %18 = vector.extract_strided_slice %0 {offsets = [0, 0], sizes = [1, 32], strides = [1, 1]} : vector<4x32xf32> to vector<1x32xf32>
    %19 = vector.broadcast %18 : vector<1x32xf32> to vector<64x32xf32>
    %20 = arith.mulf %12, %19 : vector<64x32xf32>
    %21 = arith.truncf %20 : vector<64x32xf32> to vector<64x32xbf16>
    %22 = vector.extract_strided_slice %0 {offsets = [1, 0], sizes = [1, 32], strides = [1, 1]} : vector<4x32xf32> to vector<1x32xf32>
    %23 = vector.broadcast %22 : vector<1x32xf32> to vector<64x32xf32>
    %24 = arith.mulf %12, %23 : vector<64x32xf32>
    %25 = arith.truncf %24 : vector<64x32xf32> to vector<64x32xbf16>
    %26 = vector.extract_strided_slice %0 {offsets = [2, 0], sizes = [1, 32], strides = [1, 1]} : vector<4x32xf32> to vector<1x32xf32>
    %27 = vector.broadcast %26 : vector<1x32xf32> to vector<64x32xf32>
    %28 = arith.mulf %12, %27 : vector<64x32xf32>
    %29 = arith.truncf %28 : vector<64x32xf32> to vector<64x32xbf16>
    %30 = vector.extract_strided_slice %0 {offsets = [3, 0], sizes = [1, 32], strides = [1, 1]} : vector<4x32xf32> to vector<1x32xf32>
    %31 = vector.broadcast %30 : vector<1x32xf32> to vector<64x32xf32>
    %32 = arith.mulf %12, %31 : vector<64x32xf32>
    %33 = arith.truncf %32 : vector<64x32xf32> to vector<64x32xbf16>
    %34 = tpu.concatenate %21, %25, %29, %33 in 0 : vector<64x32xbf16>, vector<64x32xbf16>, vector<64x32xbf16>, vector<64x32xbf16> -> vector<256x32xbf16>
    %cst_15 = arith.constant dense<0.000000e+00> : vector<256x64xf32>
    %35 = tpu.matmul %34, %14, %cst_15 {dimension_numbers = #tpu.dot_dimension_numbers<[1], [1], [0], [0], [0, 0, 1, 0], [], []>} : vector<256x32xbf16>, vector<64x32xbf16>, vector<256x64xf32> -> vector<256x64xf32>
    %36 = arith.addf %35, %1 : vector<256x64xf32>
    %cst_16 = arith.constant dense<0xFF800000> : vector<256xf32>
    %37 = vector.multi_reduction <maximumf>, %36, %cst_16 [1] : vector<256x64xf32> to vector<256xf32>
    %38 = vector.shape_cast %37 : vector<256xf32> to vector<256x1xf32>
    %39 = vector.broadcast %38 : vector<256x1xf32> to vector<256x64xf32>
    %40 = arith.subf %36, %39 : vector<256x64xf32>
    %41 = math.exp %40 : vector<256x64xf32>
    %cst_17 = arith.constant dense<0.000000e+00> : vector<256xf32>
    %42 = vector.multi_reduction <add>, %41, %cst_17 [1] : vector<256x64xf32> to vector<256xf32>
    %43 = vector.shape_cast %42 : vector<256xf32> to vector<256x1xf32>
    %44 = arith.truncf %41 : vector<256x64xf32> to vector<256x64xbf16>
    %cst_18 = arith.constant dense<0.000000e+00> : vector<256x32xf32>
    %45 = tpu.matmul %44, %16, %cst_18 {dimension_numbers = #tpu.dot_dimension_numbers<[1], [0], [0], [1], [0, 0, 1, 1], [], []>} : vector<256x64xbf16>, vector<64x32xbf16>, vector<256x32xf32> -> vector<256x32xf32>
    %46 = tpu.reciprocal %43 {approx = true} : vector<256x1xf32> -> vector<256x1xf32>
    %47 = vector.broadcast %46 : vector<256x1xf32> to vector<256x32xf32>
    %48 = arith.mulf %45, %47 : vector<256x32xf32>
    %49 = vector.extract_strided_slice %48 {offsets = [0, 0], sizes = [64, 32], strides = [1, 1]} : vector<256x32xf32> to vector<64x32xf32>
    %50 = vector.extract_strided_slice %0 {offsets = [0, 0], sizes = [1, 32], strides = [1, 1]} : vector<4x32xf32> to vector<1x32xf32>
    %51 = vector.broadcast %50 : vector<1x32xf32> to vector<64x32xf32>
    %52 = arith.mulf %49, %51 : vector<64x32xf32>
    %53 = vector.extract_strided_slice %48 {offsets = [64, 0], sizes = [64, 32], strides = [1, 1]} : vector<256x32xf32> to vector<64x32xf32>
    %54 = vector.extract_strided_slice %0 {offsets = [1, 0], sizes = [1, 32], strides = [1, 1]} : vector<4x32xf32> to vector<1x32xf32>
    %55 = vector.broadcast %54 : vector<1x32xf32> to vector<64x32xf32>
    %56 = arith.mulf %53, %55 : vector<64x32xf32>
    %57 = arith.addf %52, %56 : vector<64x32xf32>
    %58 = vector.extract_strided_slice %48 {offsets = [128, 0], sizes = [64, 32], strides = [1, 1]} : vector<256x32xf32> to vector<64x32xf32>
    %59 = vector.extract_strided_slice %0 {offsets = [2, 0], sizes = [1, 32], strides = [1, 1]} : vector<4x32xf32> to vector<1x32xf32>
    %60 = vector.broadcast %59 : vector<1x32xf32> to vector<64x32xf32>
    %61 = arith.mulf %58, %60 : vector<64x32xf32>
    %62 = arith.addf %57, %61 : vector<64x32xf32>
    %63 = vector.extract_strided_slice %48 {offsets = [192, 0], sizes = [64, 32], strides = [1, 1]} : vector<256x32xf32> to vector<64x32xf32>
    %64 = vector.extract_strided_slice %0 {offsets = [3, 0], sizes = [1, 32], strides = [1, 1]} : vector<4x32xf32> to vector<1x32xf32>
    %65 = vector.broadcast %64 : vector<1x32xf32> to vector<64x32xf32>
    %66 = arith.mulf %63, %65 : vector<64x32xf32>
    %67 = arith.addf %62, %66 : vector<64x32xf32>
    %c24 = arith.constant 24 : index
    %c0_19 = arith.constant 0 : index
    %68 = vector.load %arg10[%c24, %c0_19] : memref<112x32xf32, #tpu.memory_space<vmem>>, vector<64x32xf32>
    tpu.vector_store %arg10[%c24, %c0_19], %17 {strides = array<i32>} : memref<112x32xf32, #tpu.memory_space<vmem>>, vector<64x32xf32>,
    %cst_20 = arith.constant 0.000000e+00 : f32
    %69 = vector.broadcast %cst_20 : f32 to vector<64x32xf32>
    %c6 = arith.constant 6 : index
    %c0_21 = arith.constant 0 : index
    %70 = vector.load %arg10[%c6, %c0_21] : memref<112x32xf32, #tpu.memory_space<vmem>>, vector<64x32xf32>
    %c0_22 = arith.constant 0 : index
    %c0_23 = arith.constant 0 : index
    %c0_24 = arith.constant 0 : index
    %71 = vector.load %arg6[%c0_22, %c0_23, %c0_24] : memref<25x64x32xf32, #tpu.memory_space<vmem>>, vector<1x64x32xf32>
    %72 = vector.shape_cast %71 : vector<1x64x32xf32> to vector<64x32xf32>
    %73 = arith.mulf %70, %72 : vector<64x32xf32>
    %74 = arith.addf %69, %73 : vector<64x32xf32>
    %c7 = arith.constant 7 : index
    %c0_25 = arith.constant 0 : index
    %75 = vector.load %arg10[%c7, %c0_25] : memref<112x32xf32, #tpu.memory_space<vmem>>, vector<64x32xf32>
    %c1 = arith.constant 1 : index
    %c0_26 = arith.constant 0 : index
    %c0_27 = arith.constant 0 : index
    %76 = vector.load %arg6[%c1, %c0_26, %c0_27] : memref<25x64x32xf32, #tpu.memory_space<vmem>>, vector<1x64x32xf32>
    %77 = vector.shape_cast %76 : vector<1x64x32xf32> to vector<64x32xf32>
    %78 = arith.mulf %75, %77 : vector<64x32xf32>
    %79 = arith.addf %74, %78 : vector<64x32xf32>
    %c8 = arith.constant 8 : index
    %c0_28 = arith.constant 0 : index
    %80 = vector.load %arg10[%c8, %c0_28] : memref<112x32xf32, #tpu.memory_space<vmem>>, vector<64x32xf32>
    %c2 = arith.constant 2 : index
    %c0_29 = arith.constant 0 : index
    %c0_30 = arith.constant 0 : index
    %81 = vector.load %arg6[%c2, %c0_29, %c0_30] : memref<25x64x32xf32, #tpu.memory_space<vmem>>, vector<1x64x32xf32>
    %82 = vector.shape_cast %81 : vector<1x64x32xf32> to vector<64x32xf32>
    %83 = arith.mulf %80, %82 : vector<64x32xf32>
    %84 = arith.addf %79, %83 : vector<64x32xf32>
    %c9 = arith.constant 9 : index
    %c0_31 = arith.constant 0 : index
    %85 = vector.load %arg10[%c9, %c0_31] : memref<112x32xf32, #tpu.memory_space<vmem>>, vector<64x32xf32>
    %c3 = arith.constant 3 : index
    %c0_32 = arith.constant 0 : index
    %c0_33 = arith.constant 0 : index
    %86 = vector.load %arg6[%c3, %c0_32, %c0_33] : memref<25x64x32xf32, #tpu.memory_space<vmem>>, vector<1x64x32xf32>
    %87 = vector.shape_cast %86 : vector<1x64x32xf32> to vector<64x32xf32>
    %88 = arith.mulf %85, %87 : vector<64x32xf32>
    %89 = arith.addf %84, %88 : vector<64x32xf32>
    %c10 = arith.constant 10 : index
    %c0_34 = arith.constant 0 : index
    %90 = vector.load %arg10[%c10, %c0_34] : memref<112x32xf32, #tpu.memory_space<vmem>>, vector<64x32xf32>
    %c4 = arith.constant 4 : index
    %c0_35 = arith.constant 0 : index
    %c0_36 = arith.constant 0 : index
    %91 = vector.load %arg6[%c4, %c0_35, %c0_36] : memref<25x64x32xf32, #tpu.memory_space<vmem>>, vector<1x64x32xf32>
    %92 = vector.shape_cast %91 : vector<1x64x32xf32> to vector<64x32xf32>
    %93 = arith.mulf %90, %92 : vector<64x32xf32>
    %94 = arith.addf %89, %93 : vector<64x32xf32>
    %c14 = arith.constant 14 : index
    %c0_37 = arith.constant 0 : index
    %95 = vector.load %arg10[%c14, %c0_37] : memref<112x32xf32, #tpu.memory_space<vmem>>, vector<64x32xf32>
    %c5 = arith.constant 5 : index
    %c0_38 = arith.constant 0 : index
    %c0_39 = arith.constant 0 : index
    %96 = vector.load %arg6[%c5, %c0_38, %c0_39] : memref<25x64x32xf32, #tpu.memory_space<vmem>>, vector<1x64x32xf32>
    %97 = vector.shape_cast %96 : vector<1x64x32xf32> to vector<64x32xf32>
    %98 = arith.mulf %95, %97 : vector<64x32xf32>
    %99 = arith.addf %94, %98 : vector<64x32xf32>
    %c15 = arith.constant 15 : index
    %c0_40 = arith.constant 0 : index
    %100 = vector.load %arg10[%c15, %c0_40] : memref<112x32xf32, #tpu.memory_space<vmem>>, vector<64x32xf32>
    %c6_41 = arith.constant 6 : index
    %c0_42 = arith.constant 0 : index
    %c0_43 = arith.constant 0 : index
    %101 = vector.load %arg6[%c6_41, %c0_42, %c0_43] : memref<25x64x32xf32, #tpu.memory_space<vmem>>, vector<1x64x32xf32>
    %102 = vector.shape_cast %101 : vector<1x64x32xf32> to vector<64x32xf32>
    %103 = arith.mulf %100, %102 : vector<64x32xf32>
    %104 = arith.addf %99, %103 : vector<64x32xf32>
    %c16 = arith.constant 16 : index
    %c0_44 = arith.constant 0 : index
    %105 = vector.load %arg10[%c16, %c0_44] : memref<112x32xf32, #tpu.memory_space<vmem>>, vector<64x32xf32>
    %c7_45 = arith.constant 7 : index
    %c0_46 = arith.constant 0 : index
    %c0_47 = arith.constant 0 : index
    %106 = vector.load %arg6[%c7_45, %c0_46, %c0_47] : memref<25x64x32xf32, #tpu.memory_space<vmem>>, vector<1x64x32xf32>
    %107 = vector.shape_cast %106 : vector<1x64x32xf32> to vector<64x32xf32>
    %108 = arith.mulf %105, %107 : vector<64x32xf32>
    %109 = arith.addf %104, %108 : vector<64x32xf32>
    %c17 = arith.constant 17 : index
    %c0_48 = arith.constant 0 : index
    %110 = vector.load %arg10[%c17, %c0_48] : memref<112x32xf32, #tpu.memory_space<vmem>>, vector<64x32xf32>
    %c8_49 = arith.constant 8 : index
    %c0_50 = arith.constant 0 : index
    %c0_51 = arith.constant 0 : index
    %111 = vector.load %arg6[%c8_49, %c0_50, %c0_51] : memref<25x64x32xf32, #tpu.memory_space<vmem>>, vector<1x64x32xf32>
    %112 = vector.shape_cast %111 : vector<1x64x32xf32> to vector<64x32xf32>
    %113 = arith.mulf %110, %112 : vector<64x32xf32>
    %114 = arith.addf %109, %113 : vector<64x32xf32>
    %c18 = arith.constant 18 : index
    %c0_52 = arith.constant 0 : index
    %115 = vector.load %arg10[%c18, %c0_52] : memref<112x32xf32, #tpu.memory_space<vmem>>, vector<64x32xf32>
    %c9_53 = arith.constant 9 : index
    %c0_54 = arith.constant 0 : index
    %c0_55 = arith.constant 0 : index
    %116 = vector.load %arg6[%c9_53, %c0_54, %c0_55] : memref<25x64x32xf32, #tpu.memory_space<vmem>>, vector<1x64x32xf32>
    %117 = vector.shape_cast %116 : vector<1x64x32xf32> to vector<64x32xf32>
    %118 = arith.mulf %115, %117 : vector<64x32xf32>
    %119 = arith.addf %114, %118 : vector<64x32xf32>
    %c22 = arith.constant 22 : index
    %c0_56 = arith.constant 0 : index
    %120 = vector.load %arg10[%c22, %c0_56] : memref<112x32xf32, #tpu.memory_space<vmem>>, vector<64x32xf32>
    %c10_57 = arith.constant 10 : index
    %c0_58 = arith.constant 0 : index
    %c0_59 = arith.constant 0 : index
    %121 = vector.load %arg6[%c10_57, %c0_58, %c0_59] : memref<25x64x32xf32, #tpu.memory_space<vmem>>, vector<1x64x32xf32>
    %122 = vector.shape_cast %121 : vector<1x64x32xf32> to vector<64x32xf32>
    %123 = arith.mulf %120, %122 : vector<64x32xf32>
    %124 = arith.addf %119, %123 : vector<64x32xf32>
    %c23 = arith.constant 23 : index
    %c0_60 = arith.constant 0 : index
    %125 = vector.load %arg10[%c23, %c0_60] : memref<112x32xf32, #tpu.memory_space<vmem>>, vector<64x32xf32>
    %c11 = arith.constant 11 : index
    %c0_61 = arith.constant 0 : index
    %c0_62 = arith.constant 0 : index
    %126 = vector.load %arg6[%c11, %c0_61, %c0_62] : memref<25x64x32xf32, #tpu.memory_space<vmem>>, vector<1x64x32xf32>
    %127 = vector.shape_cast %126 : vector<1x64x32xf32> to vector<64x32xf32>
    %128 = arith.mulf %125, %127 : vector<64x32xf32>
    %129 = arith.addf %124, %128 : vector<64x32xf32>
    %c24_63 = arith.constant 24 : index
    %c0_64 = arith.constant 0 : index
    %130 = vector.load %arg10[%c24_63, %c0_64] : memref<112x32xf32, #tpu.memory_space<vmem>>, vector<64x32xf32>
    %c12 = arith.constant 12 : index
    %c0_65 = arith.constant 0 : index
    %c0_66 = arith.constant 0 : index
    %131 = vector.load %arg6[%c12, %c0_65, %c0_66] : memref<25x64x32xf32, #tpu.memory_space<vmem>>, vector<1x64x32xf32>
    %132 = vector.shape_cast %131 : vector<1x64x32xf32> to vector<64x32xf32>
    %133 = arith.mulf %130, %132 : vector<64x32xf32>
    %134 = arith.addf %129, %133 : vector<64x32xf32>
    %c25 = arith.constant 25 : index
    %c0_67 = arith.constant 0 : index
    %135 = vector.load %arg10[%c25, %c0_67] : memref<112x32xf32, #tpu.memory_space<vmem>>, vector<64x32xf32>
    %c13 = arith.constant 13 : index
    %c0_68 = arith.constant 0 : index
    %c0_69 = arith.constant 0 : index
    %136 = vector.load %arg6[%c13, %c0_68, %c0_69] : memref<25x64x32xf32, #tpu.memory_space<vmem>>, vector<1x64x32xf32>
    %137 = vector.shape_cast %136 : vector<1x64x32xf32> to vector<64x32xf32>
    %138 = arith.mulf %135, %137 : vector<64x32xf32>
    %139 = arith.addf %134, %138 : vector<64x32xf32>
    %c26 = arith.constant 26 : index
    %c0_70 = arith.constant 0 : index
    %140 = vector.load %arg10[%c26, %c0_70] : memref<112x32xf32, #tpu.memory_space<vmem>>, vector<64x32xf32>
    %c14_71 = arith.constant 14 : index
    %c0_72 = arith.constant 0 : index
    %c0_73 = arith.constant 0 : index
    %141 = vector.load %arg6[%c14_71, %c0_72, %c0_73] : memref<25x64x32xf32, #tpu.memory_space<vmem>>, vector<1x64x32xf32>
    %142 = vector.shape_cast %141 : vector<1x64x32xf32> to vector<64x32xf32>
    %143 = arith.mulf %140, %142 : vector<64x32xf32>
    %144 = arith.addf %139, %143 : vector<64x32xf32>
    %c30 = arith.constant 30 : index
    %c0_74 = arith.constant 0 : index
    %145 = vector.load %arg10[%c30, %c0_74] : memref<112x32xf32, #tpu.memory_space<vmem>>, vector<64x32xf32>
    %c15_75 = arith.constant 15 : index
    %c0_76 = arith.constant 0 : index
    %c0_77 = arith.constant 0 : index
    %146 = vector.load %arg6[%c15_75, %c0_76, %c0_77] : memref<25x64x32xf32, #tpu.memory_space<vmem>>, vector<1x64x32xf32>
    %147 = vector.shape_cast %146 : vector<1x64x32xf32> to vector<64x32xf32>
    %148 = arith.mulf %145, %147 : vector<64x32xf32>
    %149 = arith.addf %144, %148 : vector<64x32xf32>
    %c31 = arith.constant 31 : index
    %c0_78 = arith.constant 0 : index
    %150 = vector.load %arg10[%c31, %c0_78] : memref<112x32xf32, #tpu.memory_space<vmem>>, vector<64x32xf32>
    %c16_79 = arith.constant 16 : index
    %c0_80 = arith.constant 0 : index
    %c0_81 = arith.constant 0 : index
    %151 = vector.load %arg6[%c16_79, %c0_80, %c0_81] : memref<25x64x32xf32, #tpu.memory_space<vmem>>, vector<1x64x32xf32>
    %152 = vector.shape_cast %151 : vector<1x64x32xf32> to vector<64x32xf32>
    %153 = arith.mulf %150, %152 : vector<64x32xf32>
    %154 = arith.addf %149, %153 : vector<64x32xf32>
    %c32 = arith.constant 32 : index
    %c0_82 = arith.constant 0 : index
    %155 = vector.load %arg10[%c32, %c0_82] : memref<112x32xf32, #tpu.memory_space<vmem>>, vector<64x32xf32>
    %c17_83 = arith.constant 17 : index
    %c0_84 = arith.constant 0 : index
    %c0_85 = arith.constant 0 : index
    %156 = vector.load %arg6[%c17_83, %c0_84, %c0_85] : memref<25x64x32xf32, #tpu.memory_space<vmem>>, vector<1x64x32xf32>
    %157 = vector.shape_cast %156 : vector<1x64x32xf32> to vector<64x32xf32>
    %158 = arith.mulf %155, %157 : vector<64x32xf32>
    %159 = arith.addf %154, %158 : vector<64x32xf32>
    %c33 = arith.constant 33 : index
    %c0_86 = arith.constant 0 : index
    %160 = vector.load %arg10[%c33, %c0_86] : memref<112x32xf32, #tpu.memory_space<vmem>>, vector<64x32xf32>
    %c18_87 = arith.constant 18 : index
    %c0_88 = arith.constant 0 : index
    %c0_89 = arith.constant 0 : index
    %161 = vector.load %arg6[%c18_87, %c0_88, %c0_89] : memref<25x64x32xf32, #tpu.memory_space<vmem>>, vector<1x64x32xf32>
    %162 = vector.shape_cast %161 : vector<1x64x32xf32> to vector<64x32xf32>
    %163 = arith.mulf %160, %162 : vector<64x32xf32>
    %164 = arith.addf %159, %163 : vector<64x32xf32>
    %c34 = arith.constant 34 : index
    %c0_90 = arith.constant 0 : index
    %165 = vector.load %arg10[%c34, %c0_90] : memref<112x32xf32, #tpu.memory_space<vmem>>, vector<64x32xf32>
    %c19 = arith.constant 19 : index
    %c0_91 = arith.constant 0 : index
    %c0_92 = arith.constant 0 : index
    %166 = vector.load %arg6[%c19, %c0_91, %c0_92] : memref<25x64x32xf32, #tpu.memory_space<vmem>>, vector<1x64x32xf32>
    %167 = vector.shape_cast %166 : vector<1x64x32xf32> to vector<64x32xf32>
    %168 = arith.mulf %165, %167 : vector<64x32xf32>
    %169 = arith.addf %164, %168 : vector<64x32xf32>
    %c38 = arith.constant 38 : index
    %c0_93 = arith.constant 0 : index
    %170 = vector.load %arg10[%c38, %c0_93] : memref<112x32xf32, #tpu.memory_space<vmem>>, vector<64x32xf32>
    %c20 = arith.constant 20 : index
    %c0_94 = arith.constant 0 : index
    %c0_95 = arith.constant 0 : index
    %171 = vector.load %arg6[%c20, %c0_94, %c0_95] : memref<25x64x32xf32, #tpu.memory_space<vmem>>, vector<1x64x32xf32>
    %172 = vector.shape_cast %171 : vector<1x64x32xf32> to vector<64x32xf32>
    %173 = arith.mulf %170, %172 : vector<64x32xf32>
    %174 = arith.addf %169, %173 : vector<64x32xf32>
    %c39 = arith.constant 39 : index
    %c0_96 = arith.constant 0 : index
    %175 = vector.load %arg10[%c39, %c0_96] : memref<112x32xf32, #tpu.memory_space<vmem>>, vector<64x32xf32>
    %c21 = arith.constant 21 : index
    %c0_97 = arith.constant 0 : index
    %c0_98 = arith.constant 0 : index
    %176 = vector.load %arg6[%c21, %c0_97, %c0_98] : memref<25x64x32xf32, #tpu.memory_space<vmem>>, vector<1x64x32xf32>
    %177 = vector.shape_cast %176 : vector<1x64x32xf32> to vector<64x32xf32>
    %178 = arith.mulf %175, %177 : vector<64x32xf32>
    %179 = arith.addf %174, %178 : vector<64x32xf32>
    %c40 = arith.constant 40 : index
    %c0_99 = arith.constant 0 : index
    %180 = vector.load %arg10[%c40, %c0_99] : memref<112x32xf32, #tpu.memory_space<vmem>>, vector<64x32xf32>
    %c22_100 = arith.constant 22 : index
    %c0_101 = arith.constant 0 : index
    %c0_102 = arith.constant 0 : index
    %181 = vector.load %arg6[%c22_100, %c0_101, %c0_102] : memref<25x64x32xf32, #tpu.memory_space<vmem>>, vector<1x64x32xf32>
    %182 = vector.shape_cast %181 : vector<1x64x32xf32> to vector<64x32xf32>
    %183 = arith.mulf %180, %182 : vector<64x32xf32>
    %184 = arith.addf %179, %183 : vector<64x32xf32>
    %c41 = arith.constant 41 : index
    %c0_103 = arith.constant 0 : index
    %185 = vector.load %arg10[%c41, %c0_103] : memref<112x32xf32, #tpu.memory_space<vmem>>, vector<64x32xf32>
    %c23_104 = arith.constant 23 : index
    %c0_105 = arith.constant 0 : index
    %c0_106 = arith.constant 0 : index
    %186 = vector.load %arg6[%c23_104, %c0_105, %c0_106] : memref<25x64x32xf32, #tpu.memory_space<vmem>>, vector<1x64x32xf32>
    %187 = vector.shape_cast %186 : vector<1x64x32xf32> to vector<64x32xf32>
    %188 = arith.mulf %185, %187 : vector<64x32xf32>
    %189 = arith.addf %184, %188 : vector<64x32xf32>
    %c42 = arith.constant 42 : index
    %c0_107 = arith.constant 0 : index
    %190 = vector.load %arg10[%c42, %c0_107] : memref<112x32xf32, #tpu.memory_space<vmem>>, vector<64x32xf32>
    %c24_108 = arith.constant 24 : index
    %c0_109 = arith.constant 0 : index
    %c0_110 = arith.constant 0 : index
    %191 = vector.load %arg6[%c24_108, %c0_109, %c0_110] : memref<25x64x32xf32, #tpu.memory_space<vmem>>, vector<1x64x32xf32>
    %192 = vector.shape_cast %191 : vector<1x64x32xf32> to vector<64x32xf32>
    %193 = arith.mulf %190, %192 : vector<64x32xf32>
    %194 = arith.addf %189, %193 : vector<64x32xf32>
    %c0_111 = arith.constant 0 : index
    %c0_112 = arith.constant 0 : index
    %195 = vector.load %arg11[%c0_111, %c0_112] : memref<64x64xf32, #tpu.memory_space<vmem>>, vector<64x32xf32>
    tpu.vector_store %arg11[%c0_111, %c0_112], %67 {strides = array<i32>} : memref<64x64xf32, #tpu.memory_space<vmem>>, vector<64x32xf32>,
    %c0_113 = arith.constant 0 : index
    %c32_114 = arith.constant 32 : index
    %196 = vector.load %arg11[%c0_113, %c32_114] : memref<64x64xf32, #tpu.memory_space<vmem>>, vector<64x32xf32>
    tpu.vector_store %arg11[%c0_113, %c32_114], %194 {strides = array<i32>} : memref<64x64xf32, #tpu.memory_space<vmem>>, vector<64x32xf32>,
    %c0_115 = arith.constant 0 : index
    %c0_116 = arith.constant 0 : index
    %197 = vector.load %arg11[%c0_115, %c0_116] : memref<64x64xf32, #tpu.memory_space<vmem>>, vector<64x64xf32>
    %198 = arith.truncf %197 : vector<64x64xf32> to vector<64x64xbf16>
    %cst_117 = arith.constant dense<0.000000e+00> : vector<64x32xf32>
    %199 = tpu.matmul %198, %3, %cst_117 {dimension_numbers = #tpu.dot_dimension_numbers<[1], [0], [0], [1], [0, 0, 1, 1], [], []>} : vector<64x64xbf16>, vector<64x32xbf16>, vector<64x32xf32> -> vector<64x32xf32>
    %c0_118 = arith.constant 0 : index
    %c0_119 = arith.constant 0 : index
    %200 = vector.load %arg8[%c0_118, %c0_119] : memref<1x32xf32, #tpu.memory_space<vmem>>, vector<1x32xf32>
    %201 = vector.broadcast %200 : vector<1x32xf32> to vector<64x32xf32>
    %202 = arith.addf %199, %201 : vector<64x32xf32>
    %c0_120 = arith.constant 0 : index
    %c0_121 = arith.constant 0 : index
    %c0_122 = arith.constant 0 : index
    %203 = vector.load %arg9[%c0_120, %c0_121, %c0_122] : memref<1x64x32xf32, #tpu.memory_space<vmem>>, vector<1x64x32xf32>
    %204 = vector.shape_cast %203 : vector<1x64x32xf32> to vector<64x32xf32>
    %205 = vector.shape_cast %202 : vector<64x32xf32> to vector<1x64x32xf32>
    tpu.vector_store %arg9[%c0_120, %c0_121, %c0_122], %205 {strides = array<i32>} : memref<1x64x32xf32, #tpu.memory_space<vmem>>, vector<1x64x32xf32>,
    return
  }
  func.func @transform_0(%arg0: i32) -> (i32, i32, i32) {
    %c0_i32 = arith.constant 0 : i32
    %c0_i32_0 = arith.constant 0 : i32
    %c0_i32_1 = arith.constant 0 : i32
    return %arg0, %c0_i32, %c0_i32_0 : i32, i32, i32
  }
  func.func @transform_1(%arg0: i32) -> (i32, i32) {
    %c0_i32 = arith.constant 0 : i32
    %c0_i32_0 = arith.constant 0 : i32
    %c0_i32_1 = arith.constant 0 : i32
    return %c0_i32, %c0_i32_0 : i32, i32
  }
  func.func @transform_2(%arg0: i32) -> (i32, i32) {
    %c0_i32 = arith.constant 0 : i32
    %c0_i32_0 = arith.constant 0 : i32
    %c0_i32_1 = arith.constant 0 : i32
    return %c0_i32, %c0_i32_0 : i32, i32
  }
  func.func @transform_3(%arg0: i32) -> (i32, i32) {
    %c0_i32 = arith.constant 0 : i32
    %c0_i32_0 = arith.constant 0 : i32
    %c0_i32_1 = arith.constant 0 : i32
    return %c0_i32, %c0_i32_0 : i32, i32
  }
  func.func @transform_4(%arg0: i32) -> (i32, i32) {
    %c0_i32 = arith.constant 0 : i32
    %c0_i32_0 = arith.constant 0 : i32
    %c0_i32_1 = arith.constant 0 : i32
    return %c0_i32, %c0_i32_0 : i32, i32
  }
  func.func @transform_5(%arg0: i32) -> (i32, i32, i32) {
    %c0_i32 = arith.constant 0 : i32
    %c0_i32_0 = arith.constant 0 : i32
    %c0_i32_1 = arith.constant 0 : i32
    %c0_i32_2 = arith.constant 0 : i32
    return %c0_i32, %c0_i32_0, %c0_i32_1 : i32, i32, i32
  }
  func.func @transform_6(%arg0: i32) -> (i32, i32) {
    %c0_i32 = arith.constant 0 : i32
    %c0_i32_0 = arith.constant 0 : i32
    %c0_i32_1 = arith.constant 0 : i32
    return %c0_i32, %c0_i32_0 : i32, i32
  }
  func.func @transform_7(%arg0: i32) -> (i32, i32) {
    %c0_i32 = arith.constant 0 : i32
    %c0_i32_0 = arith.constant 0 : i32
    %c0_i32_1 = arith.constant 0 : i32
    return %c0_i32, %c0_i32_0 : i32, i32
  }
  func.func @transform_8(%arg0: i32) -> (i32, i32, i32) {
    %c0_i32 = arith.constant 0 : i32
    %c0_i32_0 = arith.constant 0 : i32
    %c0_i32_1 = arith.constant 0 : i32
    return %arg0, %c0_i32, %c0_i32_0 : i32, i32, i32
  }
}

</mosaic_0001>

<bundles_post_ra>
// kernel: tpu_custom_call.1
= control target key start
LH: loop header
LB: loop body
LE: loop exit
PB: predicated region body
PF: predicated region fallthrough
CT: control target
= control target key end

     0   :  { %s3024_s27 = smov 0   ;;  %s4787_s0 = inlined_call_operand.vmem [shape: bf16[2,64,32], index: 0, kind: input, shape index: {}]   ;;  %s4788_s1 = inlined_call_operand.vmem [shape: bf16[32,128], index: 1, kind: input, shape index: {}]   ;;  %s4789_s2 = inlined_call_operand.vmem [shape: f32[1,128], index: 2, kind: input, shape index: {}]   ;;  %s4790_s3 = inlined_call_operand.vmem [shape: f32[4,32], index: 3, kind: input, shape index: {}]   ;;  %s4791_s4 = inlined_call_operand.vmem [shape: f32[256,64], index: 4, kind: input, shape index: {}]   ;;  %s4792_s5 = inlined_call_operand.vmem [shape: f32[25,64,32], index: 5, kind: input, shape index: {}]   ;;  %s4793_s6 = inlined_call_operand.vmem [shape: bf16[64,32], index: 6, kind: input, shape index: {}]   ;;  %s4794_s7 = inlined_call_operand.vmem [shape: f32[1,32], index: 7, kind: input, shape index: {}]   ;;  %s4795_s8 = inlined_call_operand.vmem [shape: f32[2,64,32], index: 8, kind: output, shape index: {}]  }
   0x1 LB: > { %s2394_s28 = sadd.s32 4294967295, %s2973_s27   ;;  %p2398_p0 = scmp.ge.s32.totalorder %s2973_s27, 1  ;;  %s2973_s27 = sphi %s3024_s27, %s18_s27  }
   0x2   : > { %p262_p1 = scmp.lt.s32.totalorder %s2973_s27, 3 }
   0x4   : > { %p263_p2 = pnand %p2398_p0, %p262_p1 }
   0x6   : > { %266 = sbr.rel (%p263_p2) target bundleno = 1417 (0x589), region = 52 }
   0xd   : > { %v2829_v0 = vld [vmem:[%s4788_s1] sm:$0xff]   ;;  %p296_p3 = scmp.lt.s32.totalorder %s2394_s28, 1  ;;  %v2830_v1 = vld [vmem:[%s4788_s1 + $0x8] sm:$0xff]   ;;  %vm352_vm0 = vcmask 261120   ;;  %v495_v6 = vlaneseq  ;;  %s2975_s19 = smov 96   ;;  %vm792_vm1 = vcmask 523264  }
   0xe   : > { %2705 = vmatprep.subr.bf16.mxu0 %v2829_v0  ;;  %v307_v11 = vld [vmem:[%s4790_s3] sm:$0xf]  ;;  %s2976_s20 = smov 64   ;;  %s2978_s26 = smov 32   ;;  %vm2202_vm2 = vcmask 523520  }
   0xf   : > { %s4882_s28 = smov (!%p296_p3, %s2394_s28), 1  ;;  %2706 = vmatpush3.bf16.msra.mxu0 %v2829_v0  ;;  %v496_v7 = vshrl.u32 %v495_v6, 7  ;;  %v2403_v16 = vld [vmem:[%s4789_s2] ss:$0 sm:$0xff] }
  0x10   : > { %2707 = vmatprep.subr.bf16.mxu0 %v2830_v1  ;;  %s2649_s11 = sshll.u32 %s4882_s28, 5 }
  0x11   : > { %s300_s14 = scalar_lea.vmem %s4787_s0, %s2649_s11  ;;  %v513_v8 = vsub.s32 1, %v496_v7  ;;  %v529_v9 = vsub.s32 2, %v496_v7  ;;  %v545_v10 = vsub.s32 3, %v496_v7  ;;  %v497_v15 = vsub.s32 0, %v496_v7 }
  0x12   : > { %v2831_v2 = vld [vmem:[%s300_s14] sm:$0xff]   ;;  %v2832_v3 = vld [vmem:[%s300_s14 + $0x8] sm:$0xff]   ;;  %v2833_v4 = vld [vmem:[%s300_s14 + $0x10] sm:$0xff]  }
  0x13   : > { %2708 = vmatpush3.bf16.msra.mxu0 %v2830_v1  ;;  %2709 = vmatprep.mubr.msk.bf16.mxu0 %vm352_vm0, %v2831_v2  ;;  %v2834_v5 = vld [vmem:[%s300_s14 + $0x18] sm:$0xff]   ;;  %v3051_v12 = vrot.slane %v307_v11, %v513_v8  ;;  %v3053_v13 = vrot.slane %v307_v11, %v529_v9  ;;  %v3055_v14 = vrot.slane %v307_v11, %v545_v10 }
  0x14   : > { %v3062_v21 = vrot.slane %v307_v11, %v497_v15 }
  0x15   : > { %4827 = vst [vmem:[#allocation4_spill] sm:$0xff] %v3051_v12  ;;  %4828 = vst [vmem:[#allocation5_spill] sm:$0xff] %v3053_v13 }
  0x16   : > { %2710 = vmatmul.mubr.msk.bf16.vlgmr.msra.gmra.mrb[0].mxu0 %vm352_vm0, %v2832_v3  ;;  %4829 = vst [vmem:[#allocation6_spill] sm:$0xff] %v3055_v14  ;;  %4830 = vst [vmem:[#allocation7_spill] sm:$0xff] %v3062_v21 }
  0x17   : > { %2713 = vmatprep.mubr.msk.bf16.mxu0 %vm352_vm0, %v2833_v4 }
  0x1e   : > { %2714 = vmatmul.mubr.msk.bf16.gmra.mrb[4].mxu0 %vm352_vm0, %v2834_v5 }
  0xe9   : > { %v2711_v17 = vpop.f32.mrb[0].mxu0 }
  0xea   : > { %v460_v18 = vpop.f32.mrb[1].mxu0  ;;  %v3074_v28 = vadd.f32 %v2711_v17, %v2403_v16 }
  0xeb   : > { %v3060_v19 = vadd.f32 %v2403_v16, %v460_v18  ;;  %v2712_v20 = vpop.f32.mrb[2].mxu0 }
  0xec   : > { %v463_v22 = vpop.f32.mrb[3].mxu0  ;;  %v3066_v24 = vadd.f32 %v2712_v20, %v2403_v16  ;;  %v501_v55 = vmul.f32 %v3062_v21, %v3074_v28  ;;  %v517_v3 = vmul.f32 %v3051_v12, %v3074_v28  ;;  %v533_v18 = vmul.f32 %v3053_v13, %v3074_v28 }
  0xed   : > { %v3064_v23 = vadd.f32 %v2403_v16, %v463_v22  ;;  %v499_v26 = vmul.f32 %v3062_v21, %v3060_v19  ;;  %v515_v61 = vmul.f32 %v3051_v12, %v3060_v19  ;;  %v531_v9 = vmul.f32 %v3053_v13, %v3060_v19 }
  0xee   : > { %v492_v34 = vpack.c.bf16 %v3066_v24, %v3074_v28  ;;  %v502_v52 = vmul.f32 %v3062_v21, %v3066_v24  ;;  %v518_v0 = vmul.f32 %v3051_v12, %v3066_v24  ;;  %v534_v15 = vmul.f32 %v3053_v13, %v3066_v24 }
  0xef   : > { %v491_v25 = vpack.c.bf16 %v3064_v23, %v3060_v19  ;;  %v500_v27 = vmul.f32 %v3062_v21, %v3064_v23  ;;  %v516_v60 = vmul.f32 %v3051_v12, %v3064_v23  ;;  %v532_v8 = vmul.f32 %v3053_v13, %v3064_v23 }
  0xf0   : > { %v508_v56 = vpack.c.bf16 %v502_v52, %v501_v55  ;;  %v524_v4 = vpack.c.bf16 %v518_v0, %v517_v3  ;;  %v540_v20 = vpack.c.bf16 %v534_v15, %v533_v18  ;;  %v315_v0 = vld [vmem:[%s4791_s4 + $0x38] sm:$0xff] }
  0xf1   : > { %v2715_v29 = vpop.f32.mrb[4].mxu0  ;;  %563 = vrot.lane.b32.xlu0 %v491_v25, %s2975_s19  ;;  %v507_v30 = vpack.c.bf16 %v500_v27, %v499_v26  ;;  %v523_v63 = vpack.c.bf16 %v516_v60, %v515_v61  ;;  %v539_v11 = vpack.c.bf16 %v532_v8, %v531_v9  ;;  %v548_v27 = vmul.f32 %v3055_v14, %v3064_v23  ;;  %v313_v9 = vld [vmem:[%s4791_s4 + $0x28] sm:$0xff] }
  0xf2   : > { %v476_v31 = vpop.f32.mrb[5].mxu0  ;;  %v3081_v36 = vadd.f32 %v2715_v29, %v2403_v16  ;;  %v547_v29 = vmul.f32 %v3055_v14, %v3060_v19 }
  0xf3   : > { %v3076_v32 = vadd.f32 %v2403_v16, %v476_v31  ;;  %v2716_v33 = vpop.f32.mrb[6].mxu0  ;;  %2725 = vmatprep.mubr.msk.bf16.mxu1 %vm352_vm0, %v507_v30 }
  0xf4   : > { %v479_v35 = vpop.f32.mrb[7].mxu0  ;;  %v3083_v37 = vadd.f32 %v2716_v33, %v2403_v16  ;;  %v505_v58 = vmul.f32 %v3062_v21, %v3081_v36  ;;  %v521_v6 = vmul.f32 %v3051_v12, %v3081_v36  ;;  %v555_v31 = vpack.c.bf16 %v548_v27, %v547_v29 }
  0xf5   : > { %v3085_v38 = vadd.f32 %v2403_v16, %v479_v35  ;;  %565 = vrot.lane.b32.xlu0 %v492_v34, %s2975_s19  ;;  %v503_v53 = vmul.f32 %v3062_v21, %v3076_v32  ;;  %v519_v1 = vmul.f32 %v3051_v12, %v3076_v32  ;;  %v535_v16 = vmul.f32 %v3053_v13, %v3076_v32 }
  0xf6   : > { %v3092_v40 = vpack.c.bf16 %v3083_v37, %v3081_v36  ;;  %v506_v59 = vmul.f32 %v3062_v21, %v3083_v37  ;;  %v522_v7 = vmul.f32 %v3051_v12, %v3083_v37  ;;  %v538_v26 = vmul.f32 %v3053_v13, %v3083_v37 }
  0xf7   : > { %v493_v39 = vpack.c.bf16 %v3085_v38, %v3076_v32  ;;  %v504_v54 = vmul.f32 %v3062_v21, %v3085_v38  ;;  %v520_v2 = vmul.f32 %v3051_v12, %v3085_v38  ;;  %v536_v17 = vmul.f32 %v3053_v13, %v3085_v38 }
  0xf8   : > { %v510_v62 = vpack.c.bf16 %v506_v59, %v505_v58  ;;  %v526_v10 = vpack.c.bf16 %v522_v7, %v521_v6  ;;  %v550_v33 = vmul.f32 %v3055_v14, %v3066_v24  ;;  %v552_v35 = vmul.f32 %v3055_v14, %v3085_v38  ;;  %v314_v59 = vld [vmem:[%s4791_s4 + $0x30] sm:$0xff] }
  0xf9   : > { %567 = vrot.lane.b32.xlu1 %v493_v39, %s2975_s19  ;;  %1099 = vrot.lane.b32.xlu0 %v492_v34, %s2976_s20  ;;  %v509_v57 = vpack.c.bf16 %v504_v54, %v503_v53  ;;  %v525_v5 = vpack.c.bf16 %v520_v2, %v519_v1  ;;  %v541_v22 = vpack.c.bf16 %v536_v17, %v535_v16  ;;  %v316_v16 = vld [vmem:[%s4791_s4 + $0x40] sm:$0xff]  ;;  %v318_v17 = vld [vmem:[%s4791_s4 + $0x50] sm:$0xff] }
  0xfa   : > { %v551_v34 = vmul.f32 %v3055_v14, %v3076_v32 }
  0xfd   : > { %569 = vrot.lane.b32.xlu1 %v3092_v40, %s2975_s19 }
 0x101   : > { %1097 = vrot.lane.b32.xlu1 %v491_v25, %s2976_s20  ;;  %v537_v25 = vmul.f32 %v3053_v13, %v3081_v36 }
 0x103   : > { %v542_v30 = vpack.c.bf16 %v538_v26, %v537_v25 }
 0x105   : > { %1101 = vrot.lane.b32.xlu1 %v493_v39, %s2976_s20  ;;  %v549_v39 = vmul.f32 %v3055_v14, %v3074_v28 }
 0x163   : > { %v564_v41 = vpop.permute.xlu0 %563 }
 0x164   : > { %2813 = vmatprep.subr.msk.bf16.mxu1 %vm352_vm0, %v564_v41  ;;  %v620_v42 = vsel %vm352_vm0, %v564_v41, 0  ;;  %v556_v41 = vpack.c.bf16 %v550_v33, %v549_v39  ;;  %v317_v39 = vld [vmem:[%s4791_s4 + $0x48] sm:$0xff] }
 0x165   : > { %2718 = vmatpush3.bf16.xpose.msra.mxu1 %v620_v42  ;;  %v557_v42 = vpack.c.bf16 %v552_v35, %v551_v34  ;;  %v320_v35 = vld [vmem:[%s4791_s4 + $0x60] sm:$0xff] }
 0x167   : > { %v566_v43 = vpop.permute.xlu0 %565 }
 0x168   : > { %2814 = vmatprep.subr.msk.bf16.mxu1 %vm352_vm0, %v566_v43  ;;  %v623_v45 = vsel %vm352_vm0, %v566_v43, 0  ;;  %v553_v43 = vmul.f32 %v3055_v14, %v3081_v36 }
 0x16b   : > { %v568_v44 = vpop.permute.xlu1 %567  ;;  %v1100_v49 = vpop.permute.xlu0 %1099 }
 0x16c   : > { %v626_v48 = vsel %vm352_vm0, %v568_v44, 0 }
 0x16d   : > { %2720 = vmatpush3.bf16.xpose.msra.mxu1 %v623_v45 }
 0x16e   : > { %2815 = vmatprep.subr.msk.bf16.mxu1 %vm352_vm0, %v568_v44  ;;  %v554_v44 = vmul.f32 %v3055_v14, %v3083_v37 }
 0x16f   : > { %v570_v46 = vpop.permute.xlu1 %569 }
 0x170   : > { %v629_v51 = vsel %vm352_vm0, %v570_v46, 0  ;;  %v558_v45 = vpack.c.bf16 %v554_v44, %v553_v43 }
 0x173   : > { %v1098_v47 = vpop.permute.xlu1 %1097 }
 0x174   : > { %2757 = vmatprep.subr.bf16.mxu0 %v1098_v47 }
 0x175   : > { %2722 = vmatpush3.bf16.xpose.msra.mxu1 %v626_v48  ;;  %2758 = vmatpush3.bf16.msra.mxu0 %v1098_v47  ;;  %v308_v48 = vld [vmem:[%s4791_s4] sm:$0xff] }
 0x176   : > { %2816 = vmatprep.subr.msk.bf16.mxu1 %vm352_vm0, %v570_v46  ;;  %2759 = vmatprep.subr.bf16.mxu0 %v1100_v49  ;;  %v310_v46 = vld [vmem:[%s4791_s4 + $0x10] sm:$0xff] }
 0x177   : > { %v1102_v50 = vpop.permute.xlu1 %1101 }
 0x179   : > { %2760 = vmatpush3.bf16.msra.mxu0 %v1100_v49 }
 0x17a   : > { %2761 = vmatprep.subr.bf16.mxu0 %v1102_v50 }
 0x17d   : > { %2724 = vmatpush3.bf16.xpose.msra.mxu1 %v629_v51  ;;  %2762 = vmatpush3.bf16.msra.mxu0 %v1102_v50  ;;  %v309_v51 = vld [vmem:[%s4791_s4 + $0x8] sm:$0xff] }
 0x184   : > { %2726 = vmatmul.mubr.msk.bf16.vlgmr.msra.gmra.mrb[0].mxu1 %vm352_vm0, %v508_v56  ;;  %v311_v56 = vld [vmem:[%s4791_s4 + $0x18] sm:$0xff] }
 0x185   : > { %2729 = vmatprep.mubr.msk.bf16.mxu1 %vm352_vm0, %v509_v57 }
 0x18c   : > { %2730 = vmatmul.mubr.msk.bf16.gmra.mrb[4].mxu1 %vm352_vm0, %v510_v62 }
 0x18d   : > { %2733 = vmatprep.mubr.msk.bf16.mxu1 %vm352_vm0, %v523_v63  ;;  %v312_v63 = vld [vmem:[%s4791_s4 + $0x20] sm:$0xff] }
 0x194   : > { %2734 = vmatmul.mubr.msk.bf16.gmra.mrb[8].mxu1 %vm352_vm0, %v524_v4 }
 0x195   : > { %2737 = vmatprep.mubr.msk.bf16.mxu1 %vm352_vm0, %v525_v5 }
 0x19c   : > { %2738 = vmatmul.mubr.msk.bf16.gmra.mrb[12].mxu1 %vm352_vm0, %v526_v10 }
 0x19d   : > { %2741 = vmatprep.mubr.msk.bf16.mxu1 %vm352_vm0, %v539_v11 }
 0x1a4   : > { %2742 = vmatmul.mubr.msk.bf16.gmra.mrb[16].mxu1 %vm352_vm0, %v540_v20 }
 0x1a5   : > { %2745 = vmatprep.mubr.msk.bf16.mxu1 %vm352_vm0, %v541_v22 }
 0x1ac   : > { %2746 = vmatmul.mubr.msk.bf16.gmra.mrb[20].mxu1 %vm352_vm0, %v542_v30  ;;  %v319_v30 = vld [vmem:[%s4791_s4 + $0x58] sm:$0xff] }
 0x1ad   : > { %2749 = vmatprep.mubr.msk.bf16.mxu1 %vm352_vm0, %v555_v31 }
 0x1b4   : > { %2750 = vmatmul.mubr.msk.bf16.gmra.mrb[24].mxu1 %vm352_vm0, %v556_v41 }
 0x1b5   : > { %2753 = vmatprep.mubr.msk.bf16.mxu1 %vm352_vm0, %v557_v42 }
 0x1bc   : > { %2754 = vmatmul.mubr.msk.bf16.gmra.mrb[28].mxu1 %vm352_vm0, %v558_v45 }
 0x257   : > { %v2727_v47 = vpop.f32.mrb[0].mxu1 }
 0x258   : > { %v3186_v49 = vadd.f32 %v2727_v47, %v310_v46  ;;  %v665_v50 = vpop.f32.mrb[1].mxu1 }
 0x259   : > { %v2728_v52 = vpop.f32.mrb[2].mxu1  ;;  %v3191_v53 = vadd.f32 %v665_v50, %v308_v48  ;;  %v322_v48 = vld [vmem:[%s4791_s4 + $0x70] sm:$0xff] }
 0x25a   : > { %v668_v54 = vpop.f32.mrb[3].mxu1  ;;  %v799_v55 = vsel %vm792_vm1, %v3186_v49, -inf  ;;  %v3205_v60 = vadd.f32 %v2728_v52, %v311_v56 }
 0x25b   : > { %v3198_v57 = vadd.f32 %v668_v54, %v309_v51  ;;  %800 = vmax.xlane.f32.xlu0 %v799_v55  ;;  %v793_v61 = vsel %vm792_vm1, %v3191_v53, -inf  ;;  %v323_v54 = vld [vmem:[%s4791_s4 + $0x78] sm:$0xff] }
 0x25c   : > { %v802_v8 = vsel %vm792_vm1, %v3205_v60, -inf }
 0x25d   : > { %v796_v58 = vsel %vm792_vm1, %v3198_v57, -inf }
 0x25e   : > { %797 = vmax.xlane.f32.xlu1 %v796_v58 }
 0x25f   : > { %v2731_v62 = vpop.f32.mrb[4].mxu1  ;;  %794 = vmax.xlane.f32.xlu0 %v793_v61 }
 0x260   : > { %v3215_v1 = vadd.f32 %v2731_v62, %v314_v59  ;;  %v681_v2 = vpop.f32.mrb[5].mxu1 }
 0x261   : > { %v2732_v3 = vpop.f32.mrb[6].mxu1  ;;  %v3217_v4 = vadd.f32 %v681_v2, %v312_v63  ;;  %v321_v63 = vld [vmem:[%s4791_s4 + $0x68] sm:$0xff] }
 0x262   : > { %v3219_v5 = vadd.f32 %v2732_v3, %v315_v0  ;;  %v684_v6 = vpop.f32.mrb[7].mxu1  ;;  %v811_v7 = vsel %vm792_vm1, %v3215_v1, -inf  ;;  %v324_v3 = vld [vmem:[%s4791_s4 + $0x80] sm:$0xff] }
 0x263   : > { %812 = vmax.xlane.f32.xlu1 %v811_v7  ;;  %803 = vmax.xlane.f32.xlu0 %v802_v8  ;;  %v3228_v10 = vadd.f32 %v684_v6, %v313_v9  ;;  %v805_v11 = vsel %vm792_vm1, %v3217_v4, -inf }
 0x264   : > { %v814_v15 = vsel %vm792_vm1, %v3219_v5, -inf }
 0x265   : > { %v808_v29 = vsel %vm792_vm1, %v3228_v10, -inf }
 0x267   : > { %v2735_v18 = vpop.f32.mrb[8].mxu1  ;;  %806 = vmax.xlane.f32.xlu1 %v805_v11  ;;  %815 = vmax.xlane.f32.xlu0 %v814_v15 }
 0x268   : > { %v697_v20 = vpop.f32.mrb[9].mxu1  ;;  %v3242_v26 = vadd.f32 %v2735_v18, %v318_v17 }
 0x269   : > { %v3240_v22 = vadd.f32 %v697_v20, %v316_v16  ;;  %v2736_v25 = vpop.f32.mrb[10].mxu1  ;;  %v326_v16 = vld [vmem:[%s4791_s4 + $0x90] sm:$0xff]  ;;  %v327_v20 = vld [vmem:[%s4791_s4 + $0x98] sm:$0xff] }
 0x26a   : > { %v700_v27 = vpop.f32.mrb[11].mxu1  ;;  %v3251_v33 = vadd.f32 %v2736_v25, %v319_v30  ;;  %v823_v34 = vsel %vm792_vm1, %v3242_v26, -inf }
 0x26b   : > { %809 = vmax.xlane.f32.xlu0 %v808_v29  ;;  %v817_v31 = vsel %vm792_vm1, %v3240_v22, -inf  ;;  %v3263_v45 = vadd.f32 %v700_v27, %v317_v39 }
 0x26c   : > { %818 = vmax.xlane.f32.xlu1 %v817_v31  ;;  %v826_v47 = vsel %vm792_vm1, %v3251_v33, -inf }
 0x26d   : > { %v820_v52 = vsel %vm792_vm1, %v3263_v45, -inf }
 0x26f   : > { %v2739_v41 = vpop.f32.mrb[12].mxu1  ;;  %824 = vmax.xlane.f32.xlu0 %v823_v34 }
 0x270   : > { %v713_v42 = vpop.f32.mrb[13].mxu1  ;;  %v3272_v51 = vadd.f32 %v2739_v41, %v322_v48  ;;  %v328_v41 = vld [vmem:[%s4791_s4 + $0xa0] sm:$0xff] }
 0x271   : > { %v3261_v43 = vadd.f32 %v713_v42, %v320_v35  ;;  %v2740_v44 = vpop.f32.mrb[14].mxu1 }
 0x272   : > { %v716_v46 = vpop.f32.mrb[15].mxu1  ;;  %v3279_v59 = vadd.f32 %v2740_v44, %v323_v54  ;;  %v835_v62 = vsel %vm792_vm1, %v3272_v51, -inf }
 0x273   : > { %827 = vmax.xlane.f32.xlu0 %v826_v47  ;;  %v829_v50 = vsel %vm792_vm1, %v3261_v43, -inf  ;;  %v3286_v0 = vadd.f32 %v716_v46, %v321_v63  ;;  %v332_v63 = vld [vmem:[%s4791_s4 + $0xc0] sm:$0xff] }
 0x274   : > { %830 = vmax.xlane.f32.xlu1 %v829_v50  ;;  %v838_v2 = vsel %vm792_vm1, %v3279_v59, -inf }
 0x275   : > { %v832_v15 = vsel %vm792_vm1, %v3286_v0, -inf }
 0x277   : > { %v2743_v55 = vpop.f32.mrb[16].mxu1  ;;  %821 = vmax.xlane.f32.xlu0 %v820_v52  ;;  %v331_v52 = vld [vmem:[%s4791_s4 + $0xb8] sm:$0xff] }
 0x278   : > { %v729_v56 = vpop.f32.mrb[17].mxu1  ;;  %v3302_v17 = vadd.f32 %v2743_v55, %v326_v16 }
 0x279   : > { %v2744_v58 = vpop.f32.mrb[18].mxu1  ;;  %v3293_v9 = vadd.f32 %v729_v56, %v324_v3  ;;  %v329_v56 = vld [vmem:[%s4791_s4 + $0xa8] sm:$0xff] }
 0x27a   : > { %v732_v61 = vpop.f32.mrb[19].mxu1  ;;  %v3309_v30 = vadd.f32 %v2744_v58, %v327_v20  ;;  %v847_v34 = vsel %vm792_vm1, %v3302_v17, -inf }
 0x27b   : > { %836 = vmax.xlane.f32.xlu0 %v835_v62  ;;  %v841_v18 = vsel %vm792_vm1, %v3293_v9, -inf }
 0x27c   : > { %v850_v39 = vsel %vm792_vm1, %v3309_v30, -inf }
 0x27f   : > { %v2747_v6 = vpop.f32.mrb[20].mxu1  ;;  %839 = vmax.xlane.f32.xlu0 %v838_v2 }
 0x280   : > { %v745_v7 = vpop.f32.mrb[21].mxu1 }
 0x281   : > { %v2748_v8 = vpop.f32.mrb[22].mxu1  ;;  %v3323_v47 = vadd.f32 %v745_v7, %v328_v41  ;;  %v325_v7 = vld [vmem:[%s4791_s4 + $0x88] sm:$0xff]  ;;  %v338_v41 = vld [vmem:[%s4791_s4 + $0xf0] sm:$0xff] }
 0x282   : > { %v748_v11 = vpop.f32.mrb[23].mxu1  ;;  %v3330_v54 = vadd.f32 %v2748_v8, %v331_v52  ;;  %v3361_v16 = vadd.f32 %v732_v61, %v325_v7  ;;  %v339_v52 = vld [vmem:[%s4791_s4 + $0xf8] sm:$0xff] }
 0x283   : > { %833 = vmax.xlane.f32.xlu0 %v832_v15  ;;  %v853_v55 = vsel %vm792_vm1, %v3323_v47, -inf  ;;  %v3337_v58 = vadd.f32 %v748_v11, %v329_v56  ;;  %v334_v15 = vld [vmem:[%s4791_s4 + $0xd0] sm:$0xff] }
 0x284   : > { %v862_v62 = vsel %vm792_vm1, %v3330_v54, -inf  ;;  %v844_v61 = vsel %vm792_vm1, %v3361_v16, -inf }
 0x285   : > { %1103 = vrot.lane.b32.xlu1 %v3092_v40, %s2976_s20  ;;  %v330_v40 = vld [vmem:[%s4791_s4 + $0xb0] sm:$0xff]  ;;  %v856_v3 = vsel %vm792_vm1, %v3337_v58, -inf }
 0x286   : > { %v3316_v35 = vadd.f32 %v2747_v6, %v330_v40  ;;  %v333_v6 = vld [vmem:[%s4791_s4 + $0xc8] sm:$0xff] }
 0x287   : > { %v2751_v25 = vpop.f32.mrb[24].mxu1  ;;  %842 = vmax.xlane.f32.xlu0 %v841_v18  ;;  %v335_v18 = vld [vmem:[%s4791_s4 + $0xd8] sm:$0xff]  ;;  %v337_v40 = vld [vmem:[%s4791_s4 + $0xe8] sm:$0xff] }
 0x288   : > { %v761_v27 = vpop.f32.mrb[25].mxu1  ;;  %v859_v50 = vsel %vm792_vm1, %v3316_v35, -inf  ;;  %v3366_v20 = vadd.f32 %v2751_v25, %v334_v15 }
 0x289   : > { %v2752_v29 = vpop.f32.mrb[26].mxu1  ;;  %v3344_v2 = vadd.f32 %v761_v27, %v332_v63 }
 0x28a   : > { %v764_v31 = vpop.f32.mrb[27].mxu1 }
 0x28b   : > { %848 = vmax.xlane.f32.xlu0 %v847_v34  ;;  %v3354_v8 = vadd.f32 %v764_v31, %v333_v6  ;;  %v865_v11 = vsel %vm792_vm1, %v3344_v2, -inf  ;;  %v336_v31 = vld [vmem:[%s4791_s4 + $0xe0] sm:$0xff]  ;;  %v3373_v34 = vadd.f32 %v2752_v29, %v335_v18 }
 0x28d   : > { %v868_v27 = vsel %vm792_vm1, %v3354_v8, -inf }
 0x28f   : > { %v2755_v42 = vpop.f32.mrb[28].mxu1  ;;  %851 = vmax.xlane.f32.xlu0 %v850_v39  ;;  %v871_v39 = vsel %vm792_vm1, %v3366_v20, -inf }
 0x290   : > { %v777_v44 = vpop.f32.mrb[29].mxu1 }
 0x291   : > { %v2756_v46 = vpop.f32.mrb[30].mxu1  ;;  %v3380_v25 = vadd.f32 %v777_v44, %v336_v31  ;;  %v3394_v44 = vadd.f32 %v2755_v42, %v338_v41  ;;  %v2977_v42 = vmov 0.0  }
 0x292   : > { %v780_v48 = vpop.f32.mrb[31].mxu1  ;;  %v3398_v56 = vadd.f32 %v2756_v46, %v339_v52  ;;  %354 = vst.msk [vmem:[#allocation2 + $0x8] sm:$0xff] %vm352_vm0, %v2977_v42  ;;  %355 = vst.msk [vmem:[#allocation2 + $0x10] sm:$0xff] %vm352_vm0, %v2977_v42 }
 0x293   : > { %860 = vmax.xlane.f32.xlu0 %v859_v50  ;;  %v3387_v29 = vadd.f32 %v780_v48, %v337_v40  ;;  %v874_v50 = vsel %vm792_vm1, %v3373_v34, -inf  ;;  %356 = vst.msk [vmem:[#allocation2 + $0x18] sm:$0xff] %vm352_vm0, %v2977_v42  ;;  %353 = vst.msk [vmem:[#allocation2] sm:$0xff] %vm352_vm0, %v2977_v42 }
 0x294   : > { %v886_v63 = vsel %vm792_vm1, %v3398_v56, -inf  ;;  %357 = vst.msk [vmem:[#allocation2 + $0x20] sm:$0xff] %vm352_vm0, %v2977_v42  ;;  %358 = vst.msk [vmem:[#allocation2 + $0x28] sm:$0xff] %vm352_vm0, %v2977_v42 }
 0x295   : > { %v880_v48 = vsel %vm792_vm1, %v3387_v29, -inf  ;;  %359 = vst.msk [vmem:[#allocation2 + $0x30] sm:$0xff] %vm352_vm0, %v2977_v42  ;;  %360 = vst.msk [vmem:[#allocation2 + $0x38] sm:$0xff] %vm352_vm0, %v2977_v42 }
 0x296   : > { %361 = vst.msk [vmem:[#allocation2 + $0x40] sm:$0xff] %vm352_vm0, %v2977_v42  ;;  %362 = vst.msk [vmem:[#allocation2 + $0x48] sm:$0xff] %vm352_vm0, %v2977_v42 }
 0x297   : > { %854 = vmax.xlane.f32.xlu0 %v853_v55  ;;  %v877_v55 = vsel %vm792_vm1, %v3380_v25, -inf  ;;  %363 = vst.msk [vmem:[#allocation2 + $0x50] sm:$0xff] %vm352_vm0, %v2977_v42  ;;  %364 = vst.msk [vmem:[#allocation2 + $0x58] sm:$0xff] %vm352_vm0, %v2977_v42 }
 0x298   : > { %365 = vst.msk [vmem:[#allocation2 + $0x60] sm:$0xff] %vm352_vm0, %v2977_v42  ;;  %366 = vst.msk [vmem:[#allocation2 + $0x68] sm:$0xff] %vm352_vm0, %v2977_v42 }
 0x29b   : > { %863 = vmax.xlane.f32.xlu0 %v862_v62  ;;  %v883_v62 = vsel %vm792_vm1, %v3394_v44, -inf }
 0x29f   : > { %857 = vmax.xlane.f32.xlu0 %v856_v3 }
 0x2a3   : > { %866 = vmax.xlane.f32.xlu0 %v865_v11 }
 0x2a7   : > { %869 = vmax.xlane.f32.xlu0 %v868_v27 }
 0x2a9   : > { %845 = vmax.xlane.f32.xlu1 %v844_v61 }
 0x2ab   : > { %872 = vmax.xlane.f32.xlu0 %v871_v39 }
 0x2ad   : > { %875 = vmax.xlane.f32.xlu1 %v874_v50 }
 0x2af   : > { %878 = vmax.xlane.f32.xlu0 %v877_v55 }
 0x2b1   : > { %881 = vmax.xlane.f32.xlu1 %v880_v48 }
 0x2b3   : > { %884 = vmax.xlane.f32.xlu0 %v883_v62 }
 0x2b5   : > { %887 = vmax.xlane.f32.xlu1 %v886_v63 }
 0x2c6   : > { %1448 = vrot.lane.b32.xlu1 %v3064_v23, %s2978_s26 }
 0x2c9   : > { %1446 = vrot.lane.b32.xlu0 %v3060_v19, %s2978_s26 }
 0x2ca   : > { %1450 = vrot.lane.b32.xlu1 %v3074_v28, %s2978_s26 }
 0x2cd   : > { %1452 = vrot.lane.b32.xlu0 %v3066_v24, %s2978_s26 }
 0x2ce   : > { %1454 = vrot.lane.b32.xlu1 %v3076_v32, %s2978_s26 }
 0x2d1   : > { %1456 = vrot.lane.b32.xlu0 %v3085_v38, %s2978_s26 }
 0x2d2   : > { %1458 = vrot.lane.b32.xlu1 %v3081_v36, %s2978_s26 }
 0x2d5   : > { %1460 = vrot.lane.b32.xlu0 %v3083_v37, %s2978_s26 }
 0x2e8   : > { %v801_v23 = vpop.xlane.xlu0 %800 }
 0x2e9   : > { %v891_v38 = vsub.f32 %v3186_v49, %v801_v23 }
 0x2eb   : > { %v798_v19 = vpop.xlane.xlu1 %797  ;;  %v925_v18 = vmul.f32 1.442695, %v891_v38 }
 0x2ec   : > { %v890_v46 = vsub.f32 %v3198_v57, %v798_v19  ;;  %v795_v28 = vpop.xlane.xlu0 %794 }
 0x2ed   : > { %v889_v3 = vsub.f32 %v3191_v53, %v795_v28 }
 0x2ee   : > { %v923_v24 = vmul.f32 1.442695, %v890_v46 }
 0x2ef   : > { %v921_v6 = vmul.f32 1.442695, %v889_v3 }
 0x2f0   : > { %2839 = vpow2.f32 %v923_v24  ;;  %v813_v32 = vpop.xlane.xlu1 %812  ;;  %v804_v7 = vpop.xlane.xlu0 %803 }
 0x2f1   : > { %2841 = vpow2.f32 %v921_v6  ;;  %v892_v36 = vsub.f32 %v3205_v60, %v804_v7  ;;  %v895_v41 = vsub.f32 %v3215_v1, %v813_v32 }
 0x2f2   : > { %2843 = vpow2.f32 %v925_v18 }
 0x2f3   : > { %v927_v27 = vmul.f32 1.442695, %v892_v36  ;;  %v933_v48 = vmul.f32 1.442695, %v895_v41 }
 0x2f4   : > { %v807_v11 = vpop.xlane.xlu1 %806  ;;  %v816_v15 = vpop.xlane.xlu0 %815 }
 0x2f5   : > { %v893_v37 = vsub.f32 %v3217_v4, %v807_v11  ;;  %2845 = vpow2.f32 %v927_v27  ;;  %v896_v49 = vsub.f32 %v3219_v5, %v816_v15 }
 0x2f7   : > { %v929_v57 = vmul.f32 1.442695, %v893_v37 }
 0x2f8   : > { %v810_v31 = vpop.xlane.xlu0 %809 }
 0x2f9   : > { %v894_v53 = vsub.f32 %v3228_v10, %v810_v31  ;;  %2847 = vpow2.f32 %v929_v57  ;;  %v819_v50 = vpop.xlane.xlu1 %818  ;;  %v935_v10 = vmul.f32 1.442695, %v896_v49 }
 0x2fa   : > { %v3442_v61 = vpop.eup %2839  ;;  %v897_v52 = vsub.f32 %v3240_v22, %v819_v50 }
 0x2fb   : > { %v3444_v40 = vpop.eup %2841  ;;  %v931_v39 = vmul.f32 1.442695, %v894_v53 }
 0x2fc   : > { %v825_v60 = vpop.xlane.xlu0 %824  ;;  %v1081_v4 = vpack.c.bf16 %v3442_v61, %v3444_v40  ;;  %v3453_v63 = vpop.eup %2843  ;;  %v937_v42 = vmul.f32 1.442695, %v897_v52 }
 0x2fd   : > { %2849 = vpow2.f32 %v931_v39  ;;  %v899_v1 = vsub.f32 %v3242_v26, %v825_v60 }
 0x2fe   : > { %2765 = vmatprep.mubr.msk.bf16.mxu0 %vm792_vm1, %v1081_v4  ;;  %2851 = vpow2.f32 %v935_v10 }
 0x2ff   : > { %v3455_v19 = vpop.eup %2845  ;;  %2853 = vpow2.f32 %v933_v48  ;;  %v941_v26 = vmul.f32 1.442695, %v899_v1 }
 0x300   : > { %v828_v55 = vpop.xlane.xlu0 %827  ;;  %2855 = vpow2.f32 %v937_v42 }
 0x301   : > { %v831_v62 = vpop.xlane.xlu1 %830  ;;  %v900_v5 = vsub.f32 %v3251_v33, %v828_v55  ;;  %v1082_v33 = vpack.c.bf16 %v3455_v19, %v3453_v63 }
 0x303   : > { %v3459_v3 = vpop.eup %2847  ;;  %v943_v24 = vmul.f32 1.442695, %v900_v5 }
 0x304   : > { %v822_v23 = vpop.xlane.xlu0 %821 }
 0x305   : > { %v898_v46 = vsub.f32 %v3263_v45, %v822_v23  ;;  %v1104_v28 = vpop.permute.xlu1 %1103  ;;  %v901_v45 = vsub.f32 %v3261_v43, %v831_v62 }
 0x306   : > { %2763 = vmatprep.subr.bf16.mxu0 %v1104_v28 }
 0x307   : > { %v3461_v22 = vpop.eup %2849  ;;  %v939_v6 = vmul.f32 1.442695, %v898_v46  ;;  %2764 = vmatpush3.bf16.msra.mxu0 %v1104_v28  ;;  %v945_v18 = vmul.f32 1.442695, %v901_v45  ;;  %v1510_v45 = vld [vmem:[#allocation2 + $0x7] sm:$0xff] }
 0x308   : > { %4831 = vst [vmem:[#allocation8_spill] sm:$0xff] %v3461_v22  ;;  %v837_v32 = vpop.xlane.xlu0 %836  ;;  %v1083_v7 = vpack.c.bf16 %v3461_v22, %v3459_v3  ;;  %v3470_v36 = vpop.eup %2851 }
 0x309   : > { %2857 = vpow2.f32 %v939_v6  ;;  %v903_v15 = vsub.f32 %v3272_v51, %v837_v32  ;;  %v3474_v37 = vpop.eup %2853 }
 0x30a   : > { %2766 = vmatmul.mubr.msk.bf16.vlgmr.msra.gmra.mrb[8].mxu0 %vm792_vm1, %v1082_v33  ;;  %2859 = vpow2.f32 %v943_v24  ;;  %v1084_v31 = vpack.c.bf16 %v3470_v36, %v3474_v37  ;;  %v3479_v53 = vpop.eup %2855 }
 0x30b   : > { %2769 = vmatprep.mubr.msk.bf16.mxu0 %vm792_vm1, %v1083_v7  ;;  %2861 = vpow2.f32 %v941_v26  ;;  %v949_v49 = vmul.f32 1.442695, %v903_v15  ;;  %v1478_v7 = vld [vmem:[#allocation2 + $0x6] sm:$0xff] }
 0x30c   : > { %v840_v38 = vpop.xlane.xlu0 %839  ;;  %2863 = vpow2.f32 %v945_v18  ;;  %v1486_v26 = vld [vmem:[%s4792_s5] sm:$0xff] }
 0x30d   : > { %v904_v11 = vsub.f32 %v3279_v59, %v840_v38  ;;  %v2446_v38 = vld [vmem:[%s4792_s5 + $0x40] sm:$0xff] }
 0x30f   : > { %v951_v27 = vmul.f32 1.442695, %v904_v11 }
 0x310   : > { %v834_v57 = vpop.xlane.xlu0 %833 }
 0x311   : > { %v902_v43 = vsub.f32 %v3286_v0, %v834_v57  ;;  %2865 = vpow2.f32 %v951_v27 }
 0x312   : > { %2770 = vmatmul.mubr.msk.bf16.gmra.mrb[12].mxu0 %vm792_vm1, %v1084_v31  ;;  %v1527_v31 = vmul.f32 %v2446_v38, %v1510_v45  ;;  %v1487_v38 = vld [vmem:[%s4792_s5 + $0x8] sm:$0xff] }
 0x313   : > { %v3482_v39 = vpop.eup %2857  ;;  %v947_v59 = vmul.f32 1.442695, %v902_v43 }
 0x314   : > { %4832 = vst [vmem:[#allocation9_spill] sm:$0xff] %v3482_v39  ;;  %v843_v51 = vpop.xlane.xlu0 %842  ;;  %v1085_v60 = vpack.c.bf16 %v3482_v39, %v3479_v53  ;;  %v3486_v4 = vpop.eup %2859 }
 0x315   : > { %4833 = vst [vmem:[#allocation10_spill] sm:$0xff] %v3486_v4  ;;  %2867 = vpow2.f32 %v947_v59  ;;  %v3489_v0 = vpop.eup %2861  ;;  %v905_v24 = vsub.f32 %v3293_v9, %v843_v51  ;;  %v2454_v59 = vld [vmem:[%s4792_s5 + $0x80] sm:$0xff] }
 0x316   : > { %2869 = vpow2.f32 %v949_v49  ;;  %2773 = vmatprep.mubr.msk.bf16.mxu0 %vm792_vm1, %v1085_v60  ;;  %v1086_v50 = vpack.c.bf16 %v3486_v4, %v3489_v0  ;;  %v3494_v52 = vpop.eup %2863  ;;  %v1543_v49 = vld [vmem:[#allocation2 + $0x8] sm:$0xff] }
 0x317   : > { %4834 = vst [vmem:[#allocation11_spill] sm:$0xff] %v3494_v52  ;;  %v953_v11 = vmul.f32 1.442695, %v905_v24  ;;  %v2567_v4 = vld [vmem:[%s4792_s5 + $0x408] sm:$0xff] }
 0x318   : > { %v849_v41 = vpop.xlane.xlu0 %848 }
 0x319   : > { %v907_v15 = vsub.f32 %v3302_v17, %v849_v41  ;;  %2871 = vpow2.f32 %v953_v11  ;;  %v1511_v11 = vld [vmem:[#allocation2 + $0xf] sm:$0xff] }
 0x31a   : > { %2774 = vmatmul.mubr.msk.bf16.gmra.mrb[16].mxu0 %vm792_vm1, %v1086_v50 }
 0x31b   : > { %v3496_v55 = vpop.eup %2865  ;;  %v957_v51 = vmul.f32 1.442695, %v907_v15 }
 0x31c   : > { %v852_v10 = vpop.xlane.xlu0 %851  ;;  %4835 = vst [vmem:[#allocation12_spill] sm:$0xff] %v3496_v55 }
 0x31d   : > { %v908_v33 = vsub.f32 %v3309_v30, %v852_v10 }
 0x31f   : > { %v3498_v48 = vpop.eup %2867  ;;  %v959_v9 = vmul.f32 1.442695, %v908_v33 }
 0x320   : > { %4836 = vst [vmem:[#allocation13_spill] sm:$0xff] %v3498_v48  ;;  %v3500_v62 = vpop.eup %2869  ;;  %v861_v5 = vpop.xlane.xlu0 %860  ;;  %v1087_v42 = vpack.c.bf16 %v3498_v48, %v3494_v52 }
 0x321   : > { %4837 = vst [vmem:[#allocation14_spill] sm:$0xff] %v3500_v62  ;;  %v1088_v23 = vpack.c.bf16 %v3496_v55, %v3500_v62  ;;  %2873 = vpow2.f32 %v959_v9  ;;  %v911_v50 = vsub.f32 %v3316_v35, %v861_v5  ;;  %v2545_v55 = vld [vmem:[%s4792_s5 + $0x358] sm:$0xff] }
 0x322   : > { %2777 = vmatprep.mubr.msk.bf16.mxu0 %vm792_vm1, %v1087_v42 }
 0x323   : > { %2778 = vmatmul.mubr.msk.bf16.gmra.mrb[20].mxu0 %vm792_vm1, %v1088_v23 }
 0x324   : > { %v855_v1 = vpop.xlane.xlu0 %854 }
 0x325   : > { %v909_v27 = vsub.f32 %v3323_v47, %v855_v1  ;;  %v1576_v1 = vld [vmem:[#allocation2 + $0x9] sm:$0xff] }
 0x327   : > { %v961_v17 = vmul.f32 1.442695, %v909_v27 }
 0x328   : > { %v864_v46 = vpop.xlane.xlu0 %863 }
 0x329   : > { %v912_v41 = vsub.f32 %v3330_v54, %v864_v46  ;;  %v965_v46 = vmul.f32 1.442695, %v911_v50 }
 0x32b   : > { %v967_v33 = vmul.f32 1.442695, %v912_v41  ;;  %v2455_v41 = vld [vmem:[%s4792_s5 + $0x88] sm:$0xff] }
 0x32c   : > { %v858_v28 = vpop.xlane.xlu0 %857 }
 0x32d   : > { %v910_v32 = vsub.f32 %v3337_v58, %v858_v28  ;;  %v1494_v58 = vmul.f32 %v1486_v26, %v1478_v7  ;;  %v2462_v28 = vld [vmem:[%s4792_s5 + $0xc0] sm:$0xff]  ;;  %v1609_v26 = vld [vmem:[#allocation2 + $0xa] sm:$0xff] }
 0x32f   : > { %v963_v30 = vmul.f32 1.442695, %v910_v32  ;;  %v1535_v42 = vadd.f32 %v1527_v31, %v1494_v58  ;;  %v1593_v32 = vmul.f32 %v2462_v28, %v1576_v1  ;;  %v2478_v31 = vld [vmem:[%s4792_s5 + $0x140] sm:$0xff] }
 0x330   : > { %v867_v6 = vpop.xlane.xlu0 %866 }
 0x331   : > { %2875 = vpow2.f32 %v963_v30  ;;  %v913_v54 = vsub.f32 %v3344_v2, %v867_v6  ;;  %v2447_v2 = vld [vmem:[%s4792_s5 + $0x48] sm:$0xff] }
 0x332   : > { %v1479_v30 = vld [vmem:[#allocation2 + $0xe] sm:$0xff] }
 0x333   : > { %v969_v6 = vmul.f32 1.442695, %v913_v54 }
 0x334   : > { %v870_v18 = vpop.xlane.xlu0 %869 }
 0x335   : > { %v914_v23 = vsub.f32 %v3354_v8, %v870_v18  ;;  %v2470_v8 = vld [vmem:[%s4792_s5 + $0x100] sm:$0xff]  ;;  %v3544_v18 = vpop.eup %2871 }
 0x336   : > { %v846_v57 = vpop.xlane.xlu1 %845  ;;  %4838 = vst [vmem:[#allocation15_spill] sm:$0xff] %v3544_v18  ;;  %v1626_v58 = vmul.f32 %v2470_v8, %v1609_v26  ;;  %v1488_v26 = vld [vmem:[%s4792_s5 + $0x10] sm:$0xff] }
 0x337   : > { %v906_v43 = vsub.f32 %v3361_v16, %v846_v57  ;;  %v1560_v16 = vmul.f32 %v2454_v59, %v1543_v49  ;;  %v971_v7 = vmul.f32 1.442695, %v914_v23  ;;  %v1528_v59 = vmul.f32 %v2447_v2, %v1511_v11 }
 0x338   : > { %v3523_v60 = vpop.xlane.xlu0 %872 }
 0x339   : > { %v955_v47 = vmul.f32 1.442695, %v906_v43  ;;  %v1568_v5 = vadd.f32 %v1560_v16, %v1535_v42  ;;  %v3550_v43 = vpop.eup %2873  ;;  %v915_v49 = vsub.f32 %v3366_v20, %v3523_v60  ;;  %v1652_v20 = vmul.f32 %v2478_v31, %v1479_v30 }
 0x33a   : > { %v876_v10 = vpop.xlane.xlu1 %875  ;;  %4839 = vst [vmem:[#allocation16_spill] sm:$0xff] %v3550_v43 }
 0x33b   : > { %2877 = vpow2.f32 %v955_v47  ;;  %v916_v15 = vsub.f32 %v3373_v34, %v876_v10  ;;  %v1601_v57 = vadd.f32 %v1593_v32, %v1568_v5  ;;  %v1495_v34 = vmul.f32 %v1487_v38, %v1479_v30  ;;  %v2471_v38 = vld [vmem:[%s4792_s5 + $0x108] sm:$0xff]  ;;  %v1489_v30 = vld [vmem:[%s4792_s5 + $0x18] sm:$0xff] }
 0x33c   : > { %2879 = vpow2.f32 %v957_v51  ;;  %v879_v24 = vpop.xlane.xlu0 %878  ;;  %v3554_v51 = vpop.eup %2875 }
 0x33d   : > { %2881 = vpow2.f32 %v961_v17  ;;  %4840 = vst [vmem:[#allocation17_spill] sm:$0xff] %v3554_v51  ;;  %v3557_v17 = vld [vmem:[#allocation2 + $0x10] sm:$0xff]  ;;  %v975_v10 = vmul.f32 1.442695, %v916_v15  ;;  %v1634_v1 = vadd.f32 %v1626_v58, %v1601_v57  ;;  %v2494_v58 = vld [vmem:[%s4792_s5 + $0x1c0] sm:$0xff] }
 0x33e   : > { %v882_v35 = vpop.xlane.xlu1 %881  ;;  %2883 = vpow2.f32 %v967_v33  ;;  %v1536_v33 = vadd.f32 %v1528_v59, %v1495_v34  ;;  %v1561_v54 = vmul.f32 %v2455_v41, %v3557_v17  ;;  %v2456_v57 = vld [vmem:[%s4792_s5 + $0x90] sm:$0xff] }
 0x33f   : > { %2885 = vpow2.f32 %v965_v46  ;;  %v918_v9 = vsub.f32 %v3387_v29, %v882_v35  ;;  %v917_v29 = vsub.f32 %v3380_v25, %v879_v24  ;;  %v973_v24 = vmul.f32 1.442695, %v915_v49  ;;  %v2479_v49 = vld [vmem:[%s4792_s5 + $0x148] sm:$0xff] }
 0x340   : > { %v3535_v45 = vpop.xlane.xlu0 %884  ;;  %2887 = vpow2.f32 %v971_v7 }
 0x341   : > { %2889 = vpow2.f32 %v969_v6  ;;  %v979_v42 = vmul.f32 1.442695, %v918_v9  ;;  %v977_v35 = vmul.f32 1.442695, %v917_v29  ;;  %v919_v5 = vsub.f32 %v3394_v44, %v3535_v45  ;;  %v2448_v44 = vld [vmem:[%s4792_s5 + $0x50] sm:$0xff]  ;;  %v2463_v45 = vld [vmem:[%s4792_s5 + $0xc8] sm:$0xff] }
 0x342   : > { %v888_v27 = vpop.xlane.xlu1 %887  ;;  %2891 = vpow2.f32 %v975_v10  ;;  %v1660_v6 = vadd.f32 %v1652_v20, %v1634_v1  ;;  %v2487_v1 = vld [vmem:[%s4792_s5 + $0x188] sm:$0xff] }
 0x343   : > { %v920_v16 = vsub.f32 %v3398_v56, %v888_v27  ;;  %v2486_v56 = vld [vmem:[%s4792_s5 + $0x180] sm:$0xff]  ;;  %2893 = vpow2.f32 %v979_v42  ;;  %v1569_v27 = vadd.f32 %v1561_v54, %v1536_v33 }
 0x344   : > { %v1447_v47 = vpop.permute.xlu0 %1446  ;;  %v1678_v15 = vmul.f32 %v2486_v56, %v1511_v11  ;;  %2895 = vpow2.f32 %v973_v24  ;;  %v981_v11 = vmul.f32 1.442695, %v919_v5  ;;  %v2457_v56 = vld [vmem:[%s4792_s5 + $0x98] sm:$0xff]  ;;  %v1704_v5 = vmul.f32 %v2494_v58, %v3557_v17  ;;  %v2502_v17 = vld [vmem:[%s4792_s5 + $0x200] sm:$0xff]  ;;  %v2472_v58 = vld [vmem:[%s4792_s5 + $0x110] sm:$0xff] }
 0x345   : > { %v3562_v50 = vpop.eup %2877  ;;  %1470 = vst.msk [vmem:[#allocation2 + $0x18] sm:$0xff] %vm352_vm0, %v1447_v47  ;;  %v983_v8 = vmul.f32 1.442695, %v920_v16  ;;  %2897 = vpow2.f32 %v977_v35 }
 0x346   : > { %4841 = vst [vmem:[#allocation18_spill] sm:$0xff] %v3562_v50  ;;  %v3565_v60 = vpop.eup %2879  ;;  %v1449_v25 = vpop.permute.xlu1 %1448  ;;  %v1089_v23 = vpack.c.bf16 %v3562_v50, %v3544_v18  ;;  %v1686_v35 = vadd.f32 %v1678_v15, %v1660_v6  ;;  %v2464_v6 = vld [vmem:[%s4792_s5 + $0xd0] sm:$0xff] }
 0x347   : > { %4842 = vst [vmem:[#allocation19_spill] sm:$0xff] %v3565_v60  ;;  %v3570_v28 = vpop.eup %2881  ;;  %1471 = vst.msk [vmem:[#allocation2 + $0x20] sm:$0xff] %vm352_vm0, %v1449_v25  ;;  %v1090_v46 = vpack.c.bf16 %v3550_v43, %v3565_v60  ;;  %v2449_v25 = vld [vmem:[%s4792_s5 + $0x58] sm:$0xff]  ;;  %2899 = vpow2.f32 %v983_v8  ;;  %v2512_v50 = vld [vmem:[%s4792_s5 + $0x250] sm:$0xff] }
 0x348   : > { %4843 = vst [vmem:[#allocation20_spill] sm:$0xff] %v3570_v28  ;;  %2781 = vmatprep.mubr.msk.bf16.mxu0 %vm792_vm1, %v1089_v23  ;;  %v1453_v32 = vpop.permute.xlu0 %1452  ;;  %v1091_v7 = vpack.c.bf16 %v3554_v51, %v3570_v28  ;;  %v3599_v9 = vpop.eup %2883  ;;  %2901 = vpow2.f32 %v981_v11  ;;  %v2495_v11 = vld [vmem:[%s4792_s5 + $0x1c8] sm:$0xff]  ;;  %v2521_v60 = vld [vmem:[%s4792_s5 + $0x298] sm:$0xff] }
 0x349   : > { %1473 = vst.msk [vmem:[#allocation2 + $0x30] sm:$0xff] %vm352_vm0, %v1453_v32  ;;  %2782 = vmatmul.mubr.msk.bf16.gmra.mrb[24].mxu0 %vm792_vm1, %v1090_v46  ;;  %4844 = vst [vmem:[#allocation21_spill] sm:$0xff] %v3599_v9  ;;  %v3611_v31 = vpop.eup %2885 }
 0x34a   : > { %v1451_v2 = vpop.permute.xlu1 %1450  ;;  %2785 = vmatprep.mubr.msk.bf16.mxu0 %vm792_vm1, %v1091_v7  ;;  %4845 = vst [vmem:[#allocation22_spill] sm:$0xff] %v3611_v31  ;;  %v3620_v47 = vpop.eup %2887  ;;  %v1092_v33 = vpack.c.bf16 %v3599_v9, %v3611_v31  ;;  %v2537_v31 = vld [vmem:[%s4792_s5 + $0x318] sm:$0xff] }
 0x34b   : > { %1472 = vst.msk [vmem:[#allocation2 + $0x28] sm:$0xff] %vm352_vm0, %v1451_v2  ;;  %4846 = vst [vmem:[#allocation23_spill] sm:$0xff] %v3620_v47  ;;  %v3645_v32 = vpop.eup %2889 }
 0x34c   : > { %v3616_v34 = vld [vmem:[#allocation2 + $0x16] sm:$0xff]  ;;  %v1457_v41 = vpop.permute.xlu0 %1456  ;;  %4847 = vst [vmem:[#allocation24_spill] sm:$0xff] %v3645_v32  ;;  %v3694_v12 = vpop.eup %2891 }
 0x34d   : > { %v3618_v59 = vld [vmem:[#allocation2 + $0x17] sm:$0xff]  ;;  %v1496_v10 = vmul.f32 %v1488_v26, %v3616_v34  ;;  %1475 = vst.msk [vmem:[#allocation2 + $0x40] sm:$0xff] %vm352_vm0, %v1457_v41  ;;  %4848 = vst [vmem:[#allocation25_spill] sm:$0xff] %v3694_v12 }
 0x34e   : > { %v1577_v29 = vld [vmem:[#allocation2 + $0x11] sm:$0xff]  ;;  %v1529_v20 = vmul.f32 %v2448_v44, %v3618_v59  ;;  %v1455_v24 = vpop.permute.xlu1 %1454  ;;  %v3637_v54 = vld [vmem:[#allocation2 + $0x1e] sm:$0xff] }
 0x34f   : > { %v1594_v42 = vmul.f32 %v2463_v45, %v1577_v29  ;;  %v3624_v16 = vld [vmem:[#allocation2 + $0x12] sm:$0xff]  ;;  %v3639_v46 = vld [vmem:[#allocation2 + $0x1f] sm:$0xff]  ;;  %1474 = vst.msk [vmem:[#allocation2 + $0x38] sm:$0xff] %vm352_vm0, %v1455_v24  ;;  %v1497_v44 = vmul.f32 %v1489_v30, %v3637_v54 }
 0x350   : > { %v3630_v23 = vld [vmem:[#allocation2 + $0x18] sm:$0xff]  ;;  %v1537_v7 = vadd.f32 %v1529_v20, %v1496_v10  ;;  %v1627_v8 = vmul.f32 %v2471_v38, %v3624_v16  ;;  %v3650_v45 = vld [vmem:[#allocation2 + $0x20] sm:$0xff]  ;;  %v1461_v15 = vpop.permute.xlu0 %1460  ;;  %v1093_v38 = vpack.c.bf16 %v3620_v47, %v3645_v32  ;;  %v1653_v10 = vmul.f32 %v2479_v49, %v3616_v34 }
 0x351   : > { %v1602_v26 = vadd.f32 %v1594_v42, %v1569_v27  ;;  %v3652_v2 = vld [vmem:[#allocation2 + $0x19] sm:$0xff]  ;;  %v1530_v27 = vmul.f32 %v2449_v25, %v3639_v46  ;;  %v1562_v30 = vmul.f32 %v2456_v57, %v3630_v23  ;;  %1477 = vst.msk [vmem:[#allocation2 + $0x50] sm:$0xff] %vm352_vm0, %v1461_v15  ;;  %2786 = vmatmul.mubr.msk.bf16.gmra.mrb[28].mxu0 %vm792_vm1, %v1092_v33  ;;  %v2480_v25 = vld [vmem:[%s4792_s5 + $0x150] sm:$0xff] }
 0x352   : > { %v1490_v20 = vld [vmem:[%s4792_s5 + $0x20] sm:$0xff]  ;;  %v2465_v57 = vld [vmem:[%s4792_s5 + $0xd8] sm:$0xff]  ;;  %v1459_v24 = vpop.permute.xlu1 %1458  ;;  %2789 = vmatprep.mubr.msk.bf16.mxu0 %vm792_vm1, %v1093_v38  ;;  %v1563_v15 = vmul.f32 %v2457_v56, %v3650_v45  ;;  %v1595_v13 = vmul.f32 %v2464_v6, %v3652_v2  ;;  %v1679_v47 = vmul.f32 %v2487_v1, %v3618_v59  ;;  %v1730_v38 = vmul.f32 %v2502_v17, %v1577_v29 }
 0x353   : > { %v1635_v41 = vadd.f32 %v1627_v8, %v1602_v26  ;;  %v3679_v42 = vld [vmem:[#allocation2 + $0x1a] sm:$0xff]  ;;  %v3685_v49 = vld [vmem:[#allocation2 + $0x26] sm:$0xff]  ;;  %v1538_v8 = vadd.f32 %v1530_v27, %v1497_v44  ;;  %v1570_v14 = vadd.f32 %v1562_v30, %v1537_v7  ;;  %1476 = vst.msk [vmem:[#allocation2 + $0x48] sm:$0xff] %vm352_vm0, %v1459_v24  ;;  %v1712_v56 = vadd.f32 %v1704_v5, %v1686_v35  ;;  %v3705_v7 = vpop.eup %2893  ;;  %v2488_v35 = vld [vmem:[%s4792_s5 + $0x190] sm:$0xff] }
 0x354   : > { %v3687_v33 = vld [vmem:[#allocation2 + $0x27] sm:$0xff]  ;;  %v2473_v44 = vld [vmem:[%s4792_s5 + $0x118] sm:$0xff]  ;;  %4849 = vst [vmem:[#allocation26_spill] sm:$0xff] %v3705_v7  ;;  %v1628_v17 = vmul.f32 %v2472_v58, %v3679_v42  ;;  %v3712_v30 = vpop.eup %2895  ;;  %v1705_v5 = vmul.f32 %v2495_v11, %v3630_v23 }
 0x355   : > { %v2450_v26 = vld [vmem:[%s4792_s5 + $0x60] sm:$0xff]  ;;  %v1661_v21 = vadd.f32 %v1653_v10, %v1635_v41  ;;  %v1571_v27 = vadd.f32 %v1563_v15, %v1538_v8  ;;  %v1603_v1 = vadd.f32 %v1595_v13, %v1570_v14  ;;  %4850 = vst [vmem:[#allocation27_spill] sm:$0xff] %v3712_v30  ;;  %v1498_v10 = vmul.f32 %v1490_v20, %v3685_v49  ;;  %v3720_v32 = vpop.eup %2897  ;;  %v2503_v58 = vld [vmem:[%s4792_s5 + $0x208] sm:$0xff] }
 0x356   : > { %v3698_v51 = vld [vmem:[#allocation2 + $0x21] sm:$0xff]  ;;  %v1531_v24 = vmul.f32 %v2450_v26, %v3687_v33  ;;  %4851 = vst [vmem:[#allocation28_spill] sm:$0xff] %v3720_v32  ;;  %v1094_v11 = vpack.c.bf16 %v3694_v12, %v3712_v30  ;;  %v2496_v26 = vld [vmem:[%s4792_s5 + $0x1d0] sm:$0xff]  ;;  %v1731_v12 = vmul.f32 %v2503_v58, %v3652_v2  ;;  %v4027_v52 = vld [vmem:[#allocation2 + $0x38] sm:$0xff]  ;;  %v1939_v62 = vmul.f32 %v2567_v4, %v3687_v33 }
 0x357   : > { %v3700_v9 = vld [vmem:[#allocation2 + $0x22] sm:$0xff]  ;;  %v1596_v29 = vmul.f32 %v2465_v57, %v3698_v51  ;;  %v1687_v41 = vadd.f32 %v1679_v47, %v1661_v21  ;;  %v1636_v14 = vadd.f32 %v1628_v17, %v1603_v1  ;;  %v2481_v21 = vld [vmem:[%s4792_s5 + $0x158] sm:$0xff]  ;;  %v1654_v47 = vmul.f32 %v2480_v25, %v3637_v54 }
 0x358   : > { %v2510_v6 = vld [vmem:[%s4792_s5 + $0x240] sm:$0xff]  ;;  %v1629_v13 = vmul.f32 %v2473_v44, %v3700_v9  ;;  %v1095_v57 = vpack.c.bf16 %v3705_v7, %v3720_v32  ;;  %v3741_v44 = vpop.eup %2899  ;;  %v1680_v1 = vmul.f32 %v2488_v35, %v3639_v46  ;;  %v1738_v17 = vadd.f32 %v1730_v38, %v1712_v56  ;;  %v2504_v7 = vld [vmem:[%s4792_s5 + $0x210] sm:$0xff]  ;;  %v2511_v32 = vld [vmem:[%s4792_s5 + $0x248] sm:$0xff] }
 0x359   : > { %v1604_v8 = vadd.f32 %v1596_v29, %v1571_v27  ;;  %v1756_v20 = vmul.f32 %v2510_v6, %v3624_v16  ;;  %v1713_v15 = vadd.f32 %v1705_v5, %v1687_v41  ;;  %v2518_v25 = vld [vmem:[%s4792_s5 + $0x280] sm:$0xff]  ;;  %4852 = vst [vmem:[#allocation29_spill] sm:$0xff] %v3741_v44  ;;  %v3743_v27 = vld [vmem:[#allocation2 + $0x28] sm:$0xff]  ;;  %v1662_v29 = vadd.f32 %v1654_v47, %v1636_v14  ;;  %v3761_v38 = vpop.eup %2901 }
 0x35a   : > { %v2458_v16 = vld [vmem:[%s4792_s5 + $0xa0] sm:$0xff]  ;;  %2790 = vmatmul.mubr.msk.bf16.gmra.mrb[32].mxu0 %vm792_vm1, %v1094_v11  ;;  %v1539_v41 = vadd.f32 %v1531_v24, %v1498_v10  ;;  %v1655_v5 = vmul.f32 %v2481_v21, %v3685_v49  ;;  %4853 = vst [vmem:[#allocation30_spill] sm:$0xff] %v3761_v38  ;;  %v3764_v56 = vld [vmem:[#allocation2 + $0x2a] sm:$0xff]  ;;  %v2489_v24 = vld [vmem:[%s4792_s5 + $0x198] sm:$0xff]  ;;  %v1782_v21 = vmul.f32 %v2518_v25, %v3616_v34 }
 0x35b   : > { %v1637_v6 = vadd.f32 %v1629_v13, %v1604_v8  ;;  %v2526_v35 = vld [vmem:[%s4792_s5 + $0x2c0] sm:$0xff]  ;;  %2793 = vmatprep.mubr.msk.bf16.mxu0 %vm792_vm1, %v1095_v57  ;;  %v1688_v8 = vadd.f32 %v1680_v1, %v1662_v29  ;;  %v1706_v13 = vmul.f32 %v2496_v26, %v3650_v45  ;;  %v1764_v14 = vadd.f32 %v1756_v20, %v1738_v17  ;;  %v2497_v20 = vld [vmem:[%s4792_s5 + $0x1d8] sm:$0xff] }
 0x35c   : > { %v2474_v10 = vld [vmem:[%s4792_s5 + $0x120] sm:$0xff]  ;;  %v1096_v47 = vpack.c.bf16 %v3741_v44, %v3761_v38  ;;  %v1564_v58 = vmul.f32 %v2458_v16, %v3743_v27  ;;  %v1739_v57 = vadd.f32 %v1731_v12, %v1713_v15  ;;  %v1732_v26 = vmul.f32 %v2504_v7, %v3698_v51  ;;  %v2513_v25 = vld [vmem:[%s4792_s5 + $0x258] sm:$0xff]  ;;  %v2519_v7 = vld [vmem:[%s4792_s5 + $0x288] sm:$0xff] }
 0x35d   : > { %v1663_v11 = vadd.f32 %v1655_v5, %v1637_v6  ;;  %v2534_v29 = vld [vmem:[%s4792_s5 + $0x300] sm:$0xff]  ;;  %v1714_v34 = vadd.f32 %v1706_v13, %v1688_v8  ;;  %v1790_v12 = vadd.f32 %v1782_v21, %v1764_v14  ;;  %v1808_v15 = vmul.f32 %v2526_v35, %v3618_v59  ;;  %v2520_v5 = vld [vmem:[%s4792_s5 + $0x290] sm:$0xff]  ;;  %v2535_v8 = vld [vmem:[%s4792_s5 + $0x308] sm:$0xff] }
 0x35e   : > { %v3791_v16 = vadd.f32 %v1564_v58, %v1539_v41  ;;  %v3794_v6 = vmul.f32 %v2474_v10, %v3764_v56  ;;  %v1681_v1 = vmul.f32 %v2489_v24, %v3687_v33  ;;  %v1757_v17 = vmul.f32 %v2511_v32, %v3679_v42  ;;  %v2542_v59 = vld [vmem:[%s4792_s5 + $0x340] sm:$0xff]  ;;  %v2527_v10 = vld [vmem:[%s4792_s5 + $0x2c8] sm:$0xff]  ;;  %v2528_v32 = vld [vmem:[%s4792_s5 + $0x2d0] sm:$0xff] }
 0x35f   : > { %v1740_v41 = vadd.f32 %v1732_v26, %v1714_v34  ;;  %v1758_v35 = vmul.f32 %v2512_v50, %v3700_v9  ;;  %v1816_v24 = vadd.f32 %v1808_v15, %v1790_v12  ;;  %v1834_v13 = vmul.f32 %v2534_v29, %v3630_v23  ;;  %v2536_v34 = vld [vmem:[%s4792_s5 + $0x310] sm:$0xff]  ;;  %v2550_v26 = vld [vmem:[%s4792_s5 + $0x380] sm:$0xff]  ;;  %v2551_v12 = vld [vmem:[%s4792_s5 + $0x388] sm:$0xff] }
 0x360   : > { %v1689_v14 = vadd.f32 %v1681_v1, %v1663_v11  ;;  %v1707_v21 = vmul.f32 %v2497_v20, %v3743_v27  ;;  %v3820_v50 = vmul.f32 %v2513_v25, %v3764_v56  ;;  %v3822_v58 = vadd.f32 %v1757_v17, %v1739_v57  ;;  %v2466_v23 = vld [vmem:[%s4792_s5 + $0xe0] sm:$0xff]  ;;  %v2543_v57 = vld [vmem:[%s4792_s5 + $0x348] sm:$0xff]  ;;  %v2552_v15 = vld [vmem:[%s4792_s5 + $0x390] sm:$0xff] }
 0x361   : > { %v1766_v11 = vadd.f32 %v1758_v35, %v1740_v41  ;;  %v1784_v29 = vmul.f32 %v2520_v5, %v3685_v49  ;;  %v1842_v20 = vadd.f32 %v1834_v13, %v1816_v24  ;;  %v1860_v25 = vmul.f32 %v2542_v59, %v3652_v2  ;;  %v2505_v1 = vld [vmem:[%s4792_s5 + $0x218] sm:$0xff]  ;;  %v2558_v41 = vld [vmem:[%s4792_s5 + $0x3c0] sm:$0xff]  ;;  %v3862_v35 = vld [vmem:[#allocation2 + $0x29] sm:$0xff] }
 0x362   : > { %2794 = vmatmul.mubr.msk.bf16.gmra.mrb[36].mxu0 %vm792_vm1, %v1096_v47  ;;  %v1783_v17 = vmul.f32 %v2519_v7, %v3637_v54  ;;  %v3850_v5 = vmul.f32 %v2527_v10, %v3639_v46  ;;  %v1810_v2 = vmul.f32 %v2528_v32, %v3687_v33  ;;  %v3854_v59 = vmul.f32 %v2535_v8, %v3650_v45  ;;  %v2566_v47 = vld [vmem:[%s4792_s5 + $0x400] sm:$0xff] }
 0x363   : > { %v1792_v24 = vadd.f32 %v1784_v29, %v1766_v11  ;;  %v1836_v7 = vmul.f32 %v2536_v34, %v3743_v27  ;;  %v1868_v10 = vadd.f32 %v1860_v25, %v1842_v20  ;;  %v1886_v13 = vmul.f32 %v2550_v26, %v3679_v42  ;;  %v2574_v32 = vld [vmem:[%s4792_s5 + $0x440] sm:$0xff]  ;;  %v2544_v11 = vld [vmem:[%s4792_s5 + $0x350] sm:$0xff] }
 0x364   : > { %v2582_v8 = vld [vmem:[%s4792_s5 + $0x480] sm:$0xff]  ;;  %v1715_v44 = vadd.f32 %v1707_v21, %v1689_v14  ;;  %v3873_v38 = vmul.f32 %v2543_v57, %v3698_v51  ;;  %v3876_v30 = vmul.f32 %v2551_v12, %v3700_v9  ;;  %v3879_v34 = vmul.f32 %v2552_v15, %v3764_v56 }
 0x365   : > { %v2590_v42 = vld [vmem:[%s4792_s5 + $0x4c0] sm:$0xff]  ;;  %v1818_v21 = vadd.f32 %v1810_v2, %v1792_v24  ;;  %v1894_v29 = vadd.f32 %v1886_v13, %v1868_v10  ;;  %v1912_v20 = vmul.f32 %v2558_v41, %v3637_v54  ;;  %v1938_v57 = vmul.f32 %v2566_v47, %v3639_v46  ;;  %v2451_v41 = vld [vmem:[%s4792_s5 + $0x68] sm:$0xff] }
 0x366   : > { %v2598_v26 = vld [vmem:[%s4792_s5 + $0x500] sm:$0xff]  ;;  %v1964_v2 = vmul.f32 %v2574_v32, %v3650_v45  ;;  %v1990_v24 = vmul.f32 %v2582_v8, %v3698_v51  ;;  %v1597_v54 = vmul.f32 %v2466_v23, %v3862_v35  ;;  %v1733_v46 = vmul.f32 %v2505_v1, %v3862_v35  ;;  %v2459_v47 = vld [vmem:[%s4792_s5 + $0xa8] sm:$0xff]  ;;  %v3926_v32 = vld [vmem:[#allocation2 + $0x30] sm:$0xff] }
 0x367   : > { %v2606_v14 = vld [vmem:[%s4792_s5 + $0x540] sm:$0xff]  ;;  %v2467_v10 = vld [vmem:[%s4792_s5 + $0xe8] sm:$0xff]  ;;  %v1920_v13 = vadd.f32 %v1912_v20, %v1894_v29  ;;  %v2016_v45 = vmul.f32 %v2590_v42, %v3700_v9  ;;  %v3919_v51 = vmul.f32 %v2598_v26, %v3685_v49  ;;  %v3928_v8 = vld [vmem:[#allocation2 + $0x31] sm:$0xff]  ;;  %v1844_v20 = vadd.f32 %v1836_v7, %v1818_v21 }
 0x368   : > { %v2614_v25 = vld [vmem:[%s4792_s5 + $0x580] sm:$0xff]  ;;  %v3922_v23 = vmul.f32 %v2606_v14, %v3687_v33  ;;  %v3924_v1 = vld [vmem:[#allocation2 + $0x2f] sm:$0xff]  ;;  %v1605_v9 = vadd.f32 %v1597_v54, %v3791_v16  ;;  %v1741_v42 = vadd.f32 %v1733_v46, %v1715_v44  ;;  %v1791_v54 = vadd.f32 %v1783_v17, %v3822_v58  ;;  %v2529_v58 = vld [vmem:[%s4792_s5 + $0x2d8] sm:$0xff] }
 0x369   : > { %v2622_v12 = vld [vmem:[%s4792_s5 + $0x5c0] sm:$0xff]  ;;  %v3931_v43 = vmul.f32 %v2614_v25, %v3743_v27  ;;  %v3937_v26 = vld [vmem:[#allocation2 + $0x32] sm:$0xff]  ;;  %v2475_v14 = vld [vmem:[%s4792_s5 + $0x128] sm:$0xff]  ;;  %v1946_v48 = vadd.f32 %v1938_v57, %v1920_v13  ;;  %v1862_v7 = vmul.f32 %v2544_v11, %v3862_v35  ;;  %v1532_v21 = vmul.f32 %v2451_v41, %v3924_v1 }
 0x36a   : > { %v2630_v15 = vld [vmem:[%s4792_s5 + $0x600] sm:$0xff]  ;;  %v3934_v28 = vmul.f32 %v2622_v12, %v3862_v35  ;;  %v1491_v16 = vld [vmem:[%s4792_s5 + $0x28] sm:$0xff]  ;;  %v1565_v57 = vmul.f32 %v2459_v47, %v3926_v32  ;;  %v3974_v41 = vmul.f32 %v2475_v14, %v3937_v26  ;;  %v1638_v18 = vadd.f32 %v3794_v6, %v1605_v9 }
 0x36b   : > { %v2490_v29 = vld [vmem:[%s4792_s5 + $0x1a0] sm:$0xff]  ;;  %v3946_v25 = vmul.f32 %v2630_v15, %v3764_v56  ;;  %v1598_v15 = vmul.f32 %v2467_v10, %v3928_v8  ;;  %v1972_v17 = vadd.f32 %v1964_v2, %v1946_v48  ;;  %v3971_v11 = vld [vmem:[#allocation2 + $0x2e] sm:$0xff]  ;;  %v1817_v10 = vadd.f32 %v3850_v5, %v1791_v54  ;;  %v2553_v5 = vld [vmem:[%s4792_s5 + $0x398] sm:$0xff] }
 0x36c   : > { %v2498_v44 = vld [vmem:[%s4792_s5 + $0x1e0] sm:$0xff]  ;;  %v1682_v47 = vmul.f32 %v2490_v29, %v3924_v1  ;;  %v1767_v48 = vadd.f32 %v3820_v50, %v1741_v42  ;;  %v2559_v29 = vld [vmem:[%s4792_s5 + $0x3c8] sm:$0xff]  ;;  %v1492_v54 = vld [vmem:[%s4792_s5 + $0x30] sm:$0xff]  ;;  %v1870_v6 = vadd.f32 %v1862_v7, %v1844_v20  ;;  %v4013_v20 = vmul.f32 %v2537_v31, %v3926_v32 }
 0x36d   : > { %v2506_v12 = vld [vmem:[%s4792_s5 + $0x220] sm:$0xff]  ;;  %v1708_v2 = vmul.f32 %v2498_v44, %v3926_v32  ;;  %v1998_v39 = vadd.f32 %v1990_v24, %v1972_v17  ;;  %v1843_v9 = vadd.f32 %v3854_v59, %v1817_v10  ;;  %v4001_v42 = vld [vmem:[#allocation2 + $0x36] sm:$0xff]  ;;  %v1811_v24 = vmul.f32 %v2529_v58, %v3924_v1  ;;  %v2483_v33 = vld [vmem:[%s4792_s5 + $0x168] sm:$0xff] }
 0x36e   : > { %v2482_v46 = vld [vmem:[%s4792_s5 + $0x160] sm:$0xff]  ;;  %v1734_v14 = vmul.f32 %v2506_v12, %v3928_v8  ;;  %v4003_v44 = vld [vmem:[#allocation2 + $0x37] sm:$0xff]  ;;  %v4016_v7 = vmul.f32 %v2545_v55, %v3928_v8  ;;  %v1499_v59 = vmul.f32 %v1491_v16, %v3971_v11  ;;  %v4021_v10 = vmul.f32 %v2553_v5, %v3937_v26 }
 0x36f   : > { %v2514_v13 = vld [vmem:[%s4792_s5 + $0x260] sm:$0xff]  ;;  %v2452_v12 = vld [vmem:[%s4792_s5 + $0x70] sm:$0xff]  ;;  %v1869_v17 = vadd.f32 %v3873_v38, %v1843_v9  ;;  %v1656_v58 = vmul.f32 %v2482_v46, %v3971_v11  ;;  %v1913_v31 = vmul.f32 %v2559_v29, %v3685_v49  ;;  %v1500_v38 = vmul.f32 %v1492_v54, %v4001_v42  ;;  %v2575_v46 = vld [vmem:[%s4792_s5 + $0x448] sm:$0xff] }
 0x370   : > { %v3998_v50 = vmul.f32 %v2514_v13, %v3937_v26  ;;  %v2024_v13 = vadd.f32 %v2016_v45, %v1998_v39  ;;  %v2460_v55 = vld [vmem:[%s4792_s5 + $0xb0] sm:$0xff]  ;;  %v1540_v39 = vadd.f32 %v1532_v21, %v1499_v59  ;;  %v1533_v45 = vmul.f32 %v2452_v12, %v4003_v44  ;;  %v2583_v49 = vld [vmem:[%s4792_s5 + $0x488] sm:$0xff] }
 0x371   : > { %v1895_v5 = vadd.f32 %v3876_v30, %v1869_v17  ;;  %v1664_v9 = vadd.f32 %v1656_v58, %v1638_v18  ;;  %v1785_v22 = vmul.f32 %v2521_v60, %v3971_v11  ;;  %v1566_v54 = vmul.f32 %v2460_v55, %v4027_v52  ;;  %v2591_v12 = vld [vmem:[%s4792_s5 + $0x4c8] sm:$0xff] }
 0x372   : > { %v2050_v16 = vadd.f32 %v3919_v51, %v2024_v13  ;;  %v1573_v21 = vadd.f32 %v1565_v57, %v1540_v39  ;;  %v1541_v29 = vadd.f32 %v1533_v45, %v1500_v38  ;;  %v2599_v18 = vld [vmem:[%s4792_s5 + $0x508] sm:$0xff]  ;;  %v1896_v57 = vadd.f32 %v3879_v34, %v1870_v6 }
 0x373   : > { %v1921_v30 = vadd.f32 %v1913_v31, %v1895_v5  ;;  %v1690_v4 = vadd.f32 %v1682_v47, %v1664_v9  ;;  %v1793_v60 = vadd.f32 %v1785_v22, %v1767_v48  ;;  %v1965_v59 = vmul.f32 %v2575_v46, %v3743_v27  ;;  %v2607_v22 = vld [vmem:[%s4792_s5 + $0x548] sm:$0xff]  ;;  %v2560_v27 = vld [vmem:[%s4792_s5 + $0x3d0] sm:$0xff] }
 0x374   : > { %v2076_v51 = vadd.f32 %v3922_v23, %v2050_v16  ;;  %v1606_v23 = vadd.f32 %v1598_v15, %v1573_v21  ;;  %v4058_v13 = vadd.f32 %v1566_v54, %v1541_v29  ;;  %v1991_v55 = vmul.f32 %v2583_v49, %v3862_v35  ;;  %v2491_v48 = vld [vmem:[%s4792_s5 + $0x1a8] sm:$0xff]  ;;  %v2522_v15 = vld [vmem:[%s4792_s5 + $0x2a0] sm:$0xff]  ;;  %v2468_v49 = vld [vmem:[%s4792_s5 + $0xf0] sm:$0xff] }
 0x375   : > { %v1947_v58 = vadd.f32 %v1939_v62, %v1921_v30  ;;  %v1716_v47 = vadd.f32 %v1708_v2, %v1690_v4  ;;  %v2017_v34 = vmul.f32 %v2591_v12, %v3764_v56  ;;  %v1657_v35 = vmul.f32 %v2483_v33, %v4001_v42  ;;  %v2499_v38 = vld [vmem:[%s4792_s5 + $0x1e8] sm:$0xff]  ;;  %v2568_v56 = vld [vmem:[%s4792_s5 + $0x410] sm:$0xff] }
 0x376   : > { %v2102_v17 = vadd.f32 %v3931_v43, %v2076_v51  ;;  %v2043_v43 = vmul.f32 %v2599_v18, %v3971_v11  ;;  %v1639_v62 = vadd.f32 %v3974_v41, %v1606_v23  ;;  %v1819_v39 = vadd.f32 %v1811_v24, %v1793_v60  ;;  %v2615_v46 = vld [vmem:[%s4792_s5 + $0x588] sm:$0xff]  ;;  %v2576_v29 = vld [vmem:[%s4792_s5 + $0x450] sm:$0xff]  ;;  %v4115_v60 = vld [vmem:[#allocation2 + $0x39] sm:$0xff] }
 0x377   : > { %v1973_v6 = vadd.f32 %v1965_v59, %v1947_v58  ;;  %v1742_v31 = vadd.f32 %v1734_v14, %v1716_v47  ;;  %v2069_v41 = vmul.f32 %v2607_v22, %v3924_v1  ;;  %v1683_v16 = vmul.f32 %v2491_v48, %v4003_v44  ;;  %v2507_v33 = vld [vmem:[%s4792_s5 + $0x228] sm:$0xff] }
 0x378   : > { %v2128_v2 = vadd.f32 %v3934_v28, %v2102_v17  ;;  %v1665_v45 = vadd.f32 %v1657_v35, %v1639_v62  ;;  %v2530_v28 = vld [vmem:[%s4792_s5 + $0x2e0] sm:$0xff]  ;;  %v1914_v14 = vmul.f32 %v2560_v27, %v3971_v11  ;;  %v1786_v21 = vmul.f32 %v2522_v15, %v4001_v42  ;;  %v2623_v62 = vld [vmem:[%s4792_s5 + $0x5c8] sm:$0xff] }
 0x379   : > { %v1999_v5 = vadd.f32 %v1991_v55, %v1973_v6  ;;  %v1768_v9 = vadd.f32 %v3998_v50, %v1742_v31  ;;  %v4103_v11 = vld [vmem:[#allocation2 + $0x3a] sm:$0xff]  ;;  %v1709_v51 = vmul.f32 %v2499_v38, %v4027_v52  ;;  %v1940_v12 = vmul.f32 %v2568_v56, %v3924_v1  ;;  %v2631_v35 = vld [vmem:[%s4792_s5 + $0x608] sm:$0xff] }
 0x37a   : > { %v2154_v24 = vadd.f32 %v3946_v25, %v2128_v2  ;;  %v2476_v25 = vld [vmem:[%s4792_s5 + $0x130] sm:$0xff]  ;;  %v1691_v54 = vadd.f32 %v1683_v16, %v1665_v45  ;;  %v2538_v50 = vld [vmem:[%s4792_s5 + $0x320] sm:$0xff]  ;;  %v1922_v30 = vadd.f32 %v1914_v14, %v1896_v57  ;;  %v1845_v4 = vadd.f32 %v4013_v20, %v1819_v39  ;;  %v2515_v20 = vld [vmem:[%s4792_s5 + $0x268] sm:$0xff] }
 0x37b   : > { %v2025_v18 = vadd.f32 %v2017_v34, %v1999_v5  ;;  %v1794_v59 = vadd.f32 %v1786_v21, %v1768_v9  ;;  %v1812_v23 = vmul.f32 %v2530_v28, %v4003_v44  ;;  %v2584_v57 = vld [vmem:[%s4792_s5 + $0x490] sm:$0xff]  ;;  %v2095_v1 = vmul.f32 %v2615_v46, %v3926_v32  ;;  %v2554_v45 = vld [vmem:[%s4792_s5 + $0x3a0] sm:$0xff] }
 0x37c   : > { %2178 = vrot.lane.b32.xlu0 %v2154_v24, %s2978_s26  ;;  %v1717_v17 = vadd.f32 %v1709_v51, %v1691_v54  ;;  %v1948_v58 = vadd.f32 %v1940_v12, %v1922_v30  ;;  %v1966_v55 = vmul.f32 %v2576_v29, %v3926_v32  ;;  %v1632_v47 = vmul.f32 %v2476_v25, %v4103_v11  ;;  %v2592_v34 = vld [vmem:[%s4792_s5 + $0x4d0] sm:$0xff]  ;;  %v2546_v32 = vld [vmem:[%s4792_s5 + $0x360] sm:$0xff]  ;;  %v2453_v54 = vld [vmem:[%s4792_s5 + $0x78] sm:$0xff] }
 0x37d   : > { %v2051_v22 = vadd.f32 %v2043_v43, %v2025_v18  ;;  %v1820_v48 = vadd.f32 %v1812_v23, %v1794_v59  ;;  %v1838_v27 = vmul.f32 %v2538_v50, %v4027_v52  ;;  %v1992_v15 = vmul.f32 %v2584_v57, %v3928_v8  ;;  %v2600_v16 = vld [vmem:[%s4792_s5 + $0x510] sm:$0xff]  ;;  %v4181_v12 = vld [vmem:[#allocation2 + $0x3f] sm:$0xff] }
 0x37e   : > { %v1974_v43 = vadd.f32 %v1966_v55, %v1948_v58  ;;  %v1599_v2 = vmul.f32 %v2468_v49, %v4115_v60  ;;  %v1735_v6 = vmul.f32 %v2507_v33, %v4115_v60  ;;  %v1871_v39 = vadd.f32 %v4016_v7, %v1845_v4  ;;  %v2616_v7 = vld [vmem:[%s4792_s5 + $0x590] sm:$0xff]  ;;  %v2477_v18 = vld [vmem:[%s4792_s5 + $0x138] sm:$0xff] }
 0x37f   : > { %v2077_v31 = vadd.f32 %v2069_v41, %v2051_v22  ;;  %v1761_v38 = vmul.f32 %v2515_v20, %v4103_v11  ;;  %v1846_v56 = vadd.f32 %v1838_v27, %v1820_v48  ;;  %v2018_v14 = vmul.f32 %v2592_v34, %v3937_v26  ;;  %v2608_v41 = vld [vmem:[%s4792_s5 + $0x550] sm:$0xff]  ;;  %v2561_v4 = vld [vmem:[%s4792_s5 + $0x3d8] sm:$0xff]  ;;  %v4195_v20 = vld [vmem:[#allocation2 + $0x42] sm:$0xff] }
 0x380   : > { %v2000_v28 = vadd.f32 %v1992_v15, %v1974_v43  ;;  %v2624_v24 = vld [vmem:[%s4792_s5 + $0x5d0] sm:$0xff]  ;;  %v1607_v5 = vadd.f32 %v1599_v2, %v4058_v13  ;;  %v1743_v46 = vadd.f32 %v1735_v6, %v1717_v17  ;;  %v2121_v49 = vmul.f32 %v2623_v62, %v3928_v8  ;;  %v2461_v13 = vld [vmem:[%s4792_s5 + $0xb8] sm:$0xff]  ;;  %v4193_v17 = vld [vmem:[#allocation2 + $0x41] sm:$0xff] }
 0x381   : > { %v2103_v9 = vadd.f32 %v2095_v1, %v2077_v31  ;;  %v2147_v21 = vmul.f32 %v2631_v35, %v3937_v26  ;;  %v2632_v29 = vld [vmem:[%s4792_s5 + $0x610] sm:$0xff]  ;;  %v1864_v25 = vmul.f32 %v2546_v32, %v4115_v60  ;;  %v2469_v8 = vld [vmem:[%s4792_s5 + $0xf8] sm:$0xff]  ;;  %v2044_v26 = vmul.f32 %v2600_v16, %v4001_v42  ;;  %v4191_v1 = vld [vmem:[#allocation2 + $0x40] sm:$0xff] }
 0x382   : > { %v2026_v51 = vadd.f32 %v2018_v14, %v2000_v28  ;;  %v1640_v50 = vadd.f32 %v1632_v47, %v1607_v5  ;;  %v1769_v30 = vadd.f32 %v1761_v38, %v1743_v46  ;;  %v1897_v59 = vadd.f32 %v4021_v10, %v1871_v39  ;;  %v1493_v10 = vld [vmem:[%s4792_s5 + $0x38] sm:$0xff]  ;;  %v2492_v48 = vld [vmem:[%s4792_s5 + $0x1b0] sm:$0xff] }
 0x383   : > { %v2129_v33 = vadd.f32 %v2121_v49, %v2103_v9  ;;  %v1890_v23 = vmul.f32 %v2554_v45, %v4103_v11  ;;  %v1872_v57 = vadd.f32 %v1864_v25, %v1846_v56  ;;  %v2070_v55 = vmul.f32 %v2608_v41, %v4003_v44  ;;  %v2569_v27 = vld [vmem:[%s4792_s5 + $0x418] sm:$0xff]  ;;  %v2500_v32 = vld [vmem:[%s4792_s5 + $0x1f0] sm:$0xff]  ;;  %v2531_v41 = vld [vmem:[%s4792_s5 + $0x2e8] sm:$0xff] }
 0x384   : > { %v2052_v58 = vadd.f32 %v2044_v26, %v2026_v51  ;;  %v2096_v22 = vmul.f32 %v2616_v7, %v4027_v52  ;;  %v2122_v47 = vmul.f32 %v2624_v24, %v4115_v60  ;;  %v2148_v62 = vmul.f32 %v2632_v29, %v4103_v11  ;;  %v2508_v43 = vld [vmem:[%s4792_s5 + $0x230] sm:$0xff]  ;;  %v2577_v2 = vld [vmem:[%s4792_s5 + $0x458] sm:$0xff]  ;;  %v2539_v29 = vld [vmem:[%s4792_s5 + $0x328] sm:$0xff] }
 0x385   : > { %v2155_v34 = vadd.f32 %v2147_v21, %v2129_v33  ;;  %v1534_v35 = vmul.f32 %v2453_v54, %v4181_v12  ;;  %v1915_v15 = vmul.f32 %v2561_v4, %v4001_v42  ;;  %v1485_v31 = vld [vmem:[#allocation2 + $0x3e] sm:$0xff]  ;;  %v1567_v39 = vmul.f32 %v2461_v13, %v4191_v1  ;;  %v2484_v45 = vld [vmem:[%s4792_s5 + $0x170] sm:$0xff]  ;;  %v2523_v42 = vld [vmem:[%s4792_s5 + $0x2a8] sm:$0xff] }
 0x386   : > { %v2078_v6 = vadd.f32 %v2070_v55, %v2052_v58  ;;  %v1600_v38 = vmul.f32 %v2469_v8, %v4193_v17  ;;  %v4224_v56 = vmul.f32 %v2477_v18, %v4195_v20  ;;  %v1898_v16 = vadd.f32 %v1890_v23, %v1872_v57  ;;  %v2516_v14 = vld [vmem:[%s4792_s5 + $0x270] sm:$0xff]  ;;  %v2585_v5 = vld [vmem:[%s4792_s5 + $0x498] sm:$0xff]  ;;  %v2547_v25 = vld [vmem:[%s4792_s5 + $0x368] sm:$0xff] }
 0x387   : > { %2180 = vrot.lane.b32.xlu1 %v2155_v34, %s2978_s26  ;;  %v1684_v28 = vmul.f32 %v2492_v48, %v4181_v12  ;;  %v1923_v7 = vadd.f32 %v1915_v15, %v1897_v59  ;;  %v1941_v24 = vmul.f32 %v2569_v27, %v4003_v44  ;;  %v1710_v9 = vmul.f32 %v2500_v32, %v4191_v1  ;;  %v2593_v54 = vld [vmem:[%s4792_s5 + $0x4d8] sm:$0xff]  ;;  %v2555_v59 = vld [vmem:[%s4792_s5 + $0x3a8] sm:$0xff]  ;;  %v2570_v15 = vld [vmem:[%s4792_s5 + $0x420] sm:$0xff] }
 0x388   : > { %v2104_v46 = vadd.f32 %v2096_v22, %v2078_v6  ;;  %v1736_v49 = vmul.f32 %v2508_v43, %v4193_v17  ;;  %v1967_v21 = vmul.f32 %v2577_v2, %v4027_v52  ;;  %v1501_v13 = vmul.f32 %v1493_v10, %v1485_v31  ;;  %v2601_v33 = vld [vmem:[%s4792_s5 + $0x518] sm:$0xff] }
 0x389   : > { %v1949_v44 = vadd.f32 %v1941_v24, %v1923_v7  ;;  %v1658_v8 = vmul.f32 %v2484_v45, %v1485_v31  ;;  %v1787_v51 = vmul.f32 %v2523_v42, %v1485_v31  ;;  %v1762_v18 = vmul.f32 %v2516_v14, %v4195_v20  ;;  %v2609_v57 = vld [vmem:[%s4792_s5 + $0x558] sm:$0xff]  ;;  %v4291_v7 = vld [vmem:[#allocation2 + $0x47] sm:$0xff]  ;;  %v2524_v24 = vld [vmem:[%s4792_s5 + $0x2b0] sm:$0xff] }
 0x38a   : > { %v2130_v26 = vadd.f32 %v2122_v47, %v2104_v46  ;;  %v1813_v52 = vmul.f32 %v2531_v41, %v4181_v12  ;;  %v1993_v4 = vmul.f32 %v2585_v5, %v4115_v60  ;;  %v1542_v58 = vadd.f32 %v1534_v35, %v1501_v13  ;;  %v2562_v60 = vld [vmem:[%s4792_s5 + $0x3e0] sm:$0xff]  ;;  %v2617_v34 = vld [vmem:[%s4792_s5 + $0x598] sm:$0xff]  ;;  %v4306_v13 = vld [vmem:[#allocation2 + $0x48] sm:$0xff] }
 0x38b   : > { %v1975_v23 = vadd.f32 %v1967_v21, %v1949_v44  ;;  %v1666_v55 = vadd.f32 %v1658_v8, %v1640_v50  ;;  %v1795_v22 = vadd.f32 %v1787_v51, %v1769_v30  ;;  %v1839_v10 = vmul.f32 %v2539_v29, %v4191_v1  ;;  %v4277_v30 = vld [vmem:[#allocation2 + $0x46] sm:$0xff]  ;;  %v2501_v8 = vld [vmem:[%s4792_s5 + $0x1f8] sm:$0xff] }
 0x38c   : > { %v2156_v47 = vadd.f32 %v2148_v62, %v2130_v26  ;;  %v1865_v48 = vmul.f32 %v2547_v25, %v4193_v17  ;;  %v2019_v27 = vmul.f32 %v2593_v54, %v4103_v11  ;;  %v1575_v43 = vadd.f32 %v1567_v39, %v1542_v58  ;;  %v2485_v62 = vld [vmem:[%s4792_s5 + $0x178] sm:$0xff]  ;;  %v2578_v5 = vld [vmem:[%s4792_s5 + $0x460] sm:$0xff] }
 0x38d   : > { %v2001_v32 = vadd.f32 %v1993_v4, %v1975_v23  ;;  %v1692_v35 = vadd.f32 %v1684_v28, %v1666_v55  ;;  %v1821_v50 = vadd.f32 %v1813_v52, %v1795_v22  ;;  %v1891_v11 = vmul.f32 %v2555_v59, %v4195_v20  ;;  %v2493_v39 = vld [vmem:[%s4792_s5 + $0x1b8] sm:$0xff]  ;;  %v2586_v51 = vld [vmem:[%s4792_s5 + $0x4a0] sm:$0xff]  ;;  %v1720_v22 = vld [vmem:[#allocation2 + $0x49] sm:$0xff] }
 0x38e   : > { %2182 = vrot.lane.b32.xlu1 %v2156_v47, %s2978_s26  ;;  %v2045_v2 = vmul.f32 %v2601_v33, %v1485_v31  ;;  %v2071_v6 = vmul.f32 %v2609_v57, %v4181_v12  ;;  %v1916_v45 = vmul.f32 %v2562_v60, %v1485_v31  ;;  %v1608_v28 = vadd.f32 %v1600_v38, %v1575_v43  ;;  %v2625_v31 = vld [vmem:[%s4792_s5 + $0x5d8] sm:$0xff]  ;;  %v2540_v57 = vld [vmem:[%s4792_s5 + $0x330] sm:$0xff]  ;;  %v2594_v58 = vld [vmem:[%s4792_s5 + $0x4e0] sm:$0xff] }
 0x38f   : > { %v2027_v42 = vadd.f32 %v2019_v27, %v2001_v32  ;;  %v1718_v14 = vadd.f32 %v1710_v9, %v1692_v35  ;;  %v1847_v41 = vadd.f32 %v1839_v10, %v1821_v50  ;;  %v2097_v46 = vmul.f32 %v2617_v34, %v4191_v1  ;;  %v2633_v4 = vld [vmem:[%s4792_s5 + $0x618] sm:$0xff]  ;;  %v1746_v27 = vld [vmem:[#allocation2 + $0x4a] sm:$0xff]  ;;  %v2602_v35 = vld [vmem:[%s4792_s5 + $0x520] sm:$0xff] }
 0x390   : > { %v1659_v38 = vmul.f32 %v2485_v62, %v4277_v30  ;;  %v1924_v9 = vadd.f32 %v1916_v45, %v1898_v16  ;;  %v1942_v21 = vmul.f32 %v2570_v15, %v4181_v12  ;;  %v1641_v25 = vadd.f32 %v4224_v56, %v1608_v28  ;;  %v2532_v12 = vld [vmem:[%s4792_s5 + $0x2f0] sm:$0xff]  ;;  %v2509_v60 = vld [vmem:[%s4792_s5 + $0x238] sm:$0xff]  ;;  %v2563_v45 = vld [vmem:[%s4792_s5 + $0x3e8] sm:$0xff] }
 0x391   : > { %v2053_v29 = vadd.f32 %v2045_v2, %v2027_v42  ;;  %v1744_v44 = vadd.f32 %v1736_v49, %v1718_v14  ;;  %v1873_v54 = vadd.f32 %v1865_v48, %v1847_v41  ;;  %v1685_v26 = vmul.f32 %v2493_v39, %v4291_v7  ;;  %v2517_v34 = vld [vmem:[%s4792_s5 + $0x278] sm:$0xff]  ;;  %v2610_v42 = vld [vmem:[%s4792_s5 + $0x560] sm:$0xff]  ;;  %v2556_v41 = vld [vmem:[%s4792_s5 + $0x3b0] sm:$0xff] }
 0x392   : > { %v1788_v16 = vmul.f32 %v2524_v24, %v4277_v30  ;;  %v1950_v56 = vadd.f32 %v1942_v21, %v1924_v9  ;;  %v1968_v49 = vmul.f32 %v2578_v5, %v4191_v1  ;;  %v1667_v23 = vadd.f32 %v1659_v38, %v1641_v25  ;;  %v2618_v38 = vld [vmem:[%s4792_s5 + $0x5a0] sm:$0xff] }
 0x393   : > { %v2079_v52 = vadd.f32 %v2071_v6, %v2053_v29  ;;  %v1770_v33 = vadd.f32 %v1762_v18, %v1744_v44  ;;  %v1899_v59 = vadd.f32 %v1891_v11, %v1873_v54  ;;  %v2123_v55 = vmul.f32 %v2625_v31, %v4193_v17  ;;  %v2571_v31 = vld [vmem:[%s4792_s5 + $0x428] sm:$0xff] }
 0x394   : > { %v1711_v1 = vmul.f32 %v2501_v8, %v4306_v13  ;;  %v1976_v18 = vadd.f32 %v1968_v49, %v1950_v56  ;;  %v1994_v47 = vmul.f32 %v2586_v51, %v4193_v17  ;;  %v1693_v48 = vadd.f32 %v1685_v26, %v1667_v23  ;;  %v2548_v17 = vld [vmem:[%s4792_s5 + $0x370] sm:$0xff]  ;;  %v2579_v8 = vld [vmem:[%s4792_s5 + $0x468] sm:$0xff]  ;;  %v2626_v51 = vld [vmem:[%s4792_s5 + $0x5e0] sm:$0xff] }
 0x395   : > { %v2105_v10 = vadd.f32 %v2097_v46, %v2079_v52  ;;  %v1796_v32 = vadd.f32 %v1788_v16, %v1770_v33  ;;  %v1814_v43 = vmul.f32 %v2532_v12, %v4291_v7  ;;  %v2149_v50 = vmul.f32 %v2633_v4, %v4195_v20  ;;  %v2587_v52 = vld [vmem:[%s4792_s5 + $0x4a8] sm:$0xff]  ;;  %v2634_v4 = vld [vmem:[%s4792_s5 + $0x620] sm:$0xff] }
 0x396   : > { %v1840_v62 = vmul.f32 %v2540_v57, %v4306_v13  ;;  %v2002_v15 = vadd.f32 %v1994_v47, %v1976_v18  ;;  %v2020_v11 = vmul.f32 %v2594_v58, %v4195_v20  ;;  %v1719_v6 = vadd.f32 %v1711_v1, %v1693_v48 }
 0x397   : > { %v2131_v2 = vadd.f32 %v2123_v55, %v2105_v10  ;;  %v1822_v39 = vadd.f32 %v1814_v43, %v1796_v32  ;;  %v1737_v28 = vmul.f32 %v2509_v60, %v1720_v22  ;;  %v1763_v14 = vmul.f32 %v2517_v34, %v1746_v27 }
 0x398   : > { %v2028_v24 = vadd.f32 %v2020_v11, %v2002_v15  ;;  %v2046_v20 = vmul.f32 %v2602_v35, %v4277_v30  ;;  %v1866_v21 = vmul.f32 %v2548_v17, %v1720_v22  ;;  %v1917_v29 = vmul.f32 %v2563_v45, %v4277_v30  ;;  %v4854_v35 = vld [vmem:[#allocation14_spill] sm:$0xff]  ;;  %v4856_v17 = vld [vmem:[#allocation11_spill] sm:$0xff]  ;;  %v2533_v11 = vld [vmem:[%s4792_s5 + $0x2f8] sm:$0xff] }
 0x399   : > { %v2157_v5 = vadd.f32 %v2149_v50, %v2131_v2  ;;  %v1848_v46 = vadd.f32 %v1840_v62, %v1822_v39  ;;  %v1745_v9 = vadd.f32 %v1737_v28, %v1719_v6  ;;  %v2072_v44 = vmul.f32 %v2610_v42, %v4291_v7  ;;  %v4410_v50 = vld [vmem:[#allocation2 + $0x4e] sm:$0xff]  ;;  %v4857_v6 = vld [vmem:[#allocation10_spill] sm:$0xff] }
 0x39a   : > { %v2054_v25 = vadd.f32 %v2046_v20, %v2028_v24  ;;  %v1892_v54 = vmul.f32 %v2556_v41, %v1746_v27  ;;  %v1943_v12 = vmul.f32 %v2571_v31, %v4291_v7  ;;  %v2098_v30 = vmul.f32 %v2618_v38, %v4306_v13  ;;  %v2595_v7 = vld [vmem:[%s4792_s5 + $0x4e8] sm:$0xff]  ;;  %v2541_v41 = vld [vmem:[%s4792_s5 + $0x338] sm:$0xff] }
 0x39b   : > { %2184 = vrot.lane.b32.xlu0 %v2157_v5, %s2978_s26  ;;  %v1771_v26 = vadd.f32 %v1763_v14, %v1745_v9  ;;  %v1874_v16 = vadd.f32 %v1866_v21, %v1848_v46  ;;  %v1925_v49 = vadd.f32 %v1917_v29, %v1899_v59  ;;  %v1969_v23 = vmul.f32 %v2579_v8, %v4306_v13  ;;  %v4420_v15 = vld [vmem:[#allocation2 + $0x4f] sm:$0xff]  ;;  %v4859_v20 = vld [vmem:[#allocation9_spill] sm:$0xff] }
 0x39c   : > { %v2080_v56 = vadd.f32 %v2072_v44, %v2054_v25  ;;  %v2124_v58 = vmul.f32 %v2626_v51, %v1720_v22  ;;  %v2150_v1 = vmul.f32 %v2634_v4, %v1746_v27  ;;  %v1995_v60 = vmul.f32 %v2587_v52, %v1720_v22  ;;  %v4858_v42 = vld [vmem:[#allocation19_spill] sm:$0xff]  ;;  %v4430_v14 = vld [vmem:[#allocation2 + $0x50] sm:$0xff]  ;;  %v2549_v21 = vld [vmem:[%s4792_s5 + $0x378] sm:$0xff] }
 0x39d   : > { %v4381_v33 = vadd.f32 %v1892_v54, %v1874_v16  ;;  %v1951_v55 = vadd.f32 %v1943_v12, %v1925_v49  ;;  %v2021_v47 = vmul.f32 %v2595_v7, %v1746_v27  ;;  %v991_v13 = vsel %vm792_vm1, %v3453_v63, 0.0  ;;  %v4860_v31 = vld [vmem:[#allocation15_spill] sm:$0xff]  ;;  %v4440_v9 = vld [vmem:[#allocation2 + $0x51] sm:$0xff]  ;;  %v4862_v16 = vld [vmem:[#allocation22_spill] sm:$0xff] }
 0x39e   : > { %v2106_v57 = vadd.f32 %v2098_v30, %v2080_v56  ;;  %v988_v32 = vsel %vm792_vm1, %v3442_v61, 0.0  ;;  %v1003_v43 = vsel %vm792_vm1, %v3474_v37, 0.0  ;;  %v997_v22 = vsel %vm792_vm1, %v3459_v3, 0.0  ;;  %v4861_v44 = vld [vmem:[#allocation12_spill] sm:$0xff]  ;;  %v2557_v49 = vld [vmem:[%s4792_s5 + $0x3b8] sm:$0xff] }
 0x39f   : > { %v1977_v18 = vadd.f32 %v1969_v23, %v1951_v55  ;;  %v985_v27 = vsel %vm792_vm1, %v3444_v40, 0.0  ;;  %v1015_v63 = vsel %vm792_vm1, %v3489_v0, 0.0  ;;  %v994_v61 = vsel %vm792_vm1, %v3455_v19, 0.0  ;;  %v2525_v0 = vld [vmem:[%s4792_s5 + $0x2b8] sm:$0xff]  ;;  %v4855_v19 = vld [vmem:[#allocation8_spill] sm:$0xff] }
 0x3a0   : > { %v2132_v59 = vadd.f32 %v2124_v58, %v2106_v57  ;;  %v1009_v37 = vsel %vm792_vm1, %v3479_v53, 0.0  ;;  %v1006_v3 = vsel %vm792_vm1, %v3470_v36, 0.0  ;;  %v1027_v40 = vsel %vm792_vm1, %v4854_v35, 0.0  ;;  %v4458_v30 = vld [vmem:[#allocation2 + $0x52] sm:$0xff] }
 0x3a1   : > { %v2003_v48 = vadd.f32 %v1995_v60, %v1977_v18  ;;  %v1000_v62 = vsel %vm792_vm1, %v4855_v19, 0.0  ;;  %v1789_v53 = vmul.f32 %v2525_v0, %v4410_v50  ;;  %v1021_v36 = vsel %vm792_vm1, %v4856_v17, 0.0  ;;  %v4863_v4 = vld [vmem:[#allocation13_spill] sm:$0xff]  ;;  %v4864_v58 = vld [vmem:[#allocation20_spill] sm:$0xff] }
 0x3a2   : > { %v2158_v10 = vadd.f32 %v2150_v1, %v2132_v59  ;;  %v1018_v39 = vsel %vm792_vm1, %v4857_v6, 0.0  ;;  %v1815_v45 = vmul.f32 %v2533_v11, %v4420_v15  ;;  %v1039_v28 = vsel %vm792_vm1, %v4858_v42, 0.0  ;;  %v4468_v7 = vld [vmem:[#allocation2 + $0x56] sm:$0xff] }
 0x3a3   : > { %v4388_v34 = vadd.f32 %v2021_v47, %v2003_v48  ;;  %v1797_v2 = vadd.f32 %v1789_v53, %v1771_v26  ;;  %v1012_v5 = vsel %vm792_vm1, %v4859_v20, 0.0  ;;  %v1841_v46 = vmul.f32 %v2541_v41, %v4430_v14  ;;  %v2565_v59 = vld [vmem:[%s4792_s5 + $0x3f8] sm:$0xff]  ;;  %v4865_v18 = vld [vmem:[#allocation16_spill] sm:$0xff] }
 0x3a4   : > { %2186 = vrot.lane.b32.xlu1 %v2158_v10, %s2978_s26  ;;  %v1033_v38 = vsel %vm792_vm1, %v4860_v31, 0.0  ;;  %v1030_v54 = vsel %vm792_vm1, %v4861_v44, 0.0  ;;  %v1867_v26 = vmul.f32 %v2549_v21, %v4440_v9  ;;  %v1051_v12 = vsel %vm792_vm1, %v4862_v16, 0.0  ;;  %v2581_v0 = vld [vmem:[%s4792_s5 + $0x478] sm:$0xff]  ;;  %v2572_v11 = vld [vmem:[%s4792_s5 + $0x430] sm:$0xff] }
 0x3a5   : > { %v1823_v24 = vadd.f32 %v1815_v45, %v1797_v2  ;;  %v1024_v23 = vsel %vm792_vm1, %v4863_v4, 0.0  ;;  %v1893_v57 = vmul.f32 %v2557_v49, %v4458_v30  ;;  %v1045_v55 = vsel %vm792_vm1, %v4864_v58, 0.0  ;;  %v4516_v41 = vld [vmem:[#allocation2 + $0x59] sm:$0xff]  ;;  %v4872_v49 = vld [vmem:[#allocation28_spill] sm:$0xff] }
 0x3a6   : > { %v1042_v47 = vsel %vm792_vm1, %v4865_v18, 0.0  ;;  %v4871_v44 = vld [vmem:[#allocation17_spill] sm:$0xff]  ;;  %v2588_v58 = vld [vmem:[%s4792_s5 + $0x4b0] sm:$0xff] }
 0x3a7   : > { %v1849_v25 = vadd.f32 %v1841_v46, %v1823_v24  ;;  %v2589_v24 = vld [vmem:[%s4792_s5 + $0x4b8] sm:$0xff] }
 0x3a8   : > { %v1997_v21 = vmul.f32 %v2589_v24, %v4516_v41  ;;  %v4534_v16 = vld [vmem:[#allocation2 + $0x5a] sm:$0xff] }
 0x3a9   : > { %v1875_v52 = vadd.f32 %v1867_v26, %v1849_v25 }
 0x3ab   : > { %v1901_v60 = vadd.f32 %v1893_v57, %v1875_v52  ;;  %v1069_v52 = vsel %vm792_vm1, %v4872_v49, 0.0  ;;  %v2835_v57 = vld [vmem:[%s4793_s6] sm:$0xff]  }
 0x3ac   : > { %2797 = vmatprep.subr.bf16.mxu0 %v2835_v57 }
 0x3ad   : > { %2798 = vmatpush3.bf16.msra.mxu0 %v2835_v57  ;;  %v4876_v57 = vld [vmem:[#allocation26_spill] sm:$0xff] }
 0x3ba   : > { %992 = vadd.xlane.f32.xlu0 %v991_v13  ;;  %v1919_v13 = vmul.f32 %v2565_v59, %v4468_v7 }
 0x3be   : > { %989 = vadd.xlane.f32.xlu0 %v988_v32  ;;  %v4866_v32 = vld [vmem:[#allocation27_spill] sm:$0xff] }
 0x3c2   : > { %1004 = vadd.xlane.f32.xlu0 %v1003_v43  ;;  %v1063_v43 = vsel %vm792_vm1, %v4866_v32, 0.0  ;;  %v2032_v32 = vld [vmem:[#allocation2 + $0x5e] sm:$0xff] }
 0x3c6   : > { %998 = vadd.xlane.f32.xlu0 %v997_v22 }
 0x3c8   : > { %986 = vadd.xlane.f32.xlu1 %v985_v27  ;;  %v4486_v27 = vld [vmem:[#allocation2 + $0x57] sm:$0xff] }
 0x3ca   : > { %1016 = vadd.xlane.f32.xlu0 %v1015_v63  ;;  %v2573_v63 = vld [vmem:[%s4792_s5 + $0x438] sm:$0xff] }
 0x3cb   : > { %v1945_v19 = vmul.f32 %v2573_v63, %v4486_v27 }
 0x3cc   : > { %995 = vadd.xlane.f32.xlu1 %v994_v61  ;;  %v2564_v61 = vld [vmem:[%s4792_s5 + $0x3f0] sm:$0xff] }
 0x3cd   : > { %v1918_v17 = vmul.f32 %v2564_v61, %v4410_v50 }
 0x3ce   : > { %1010 = vadd.xlane.f32.xlu0 %v1009_v37  ;;  %v1927_v37 = vadd.f32 %v1919_v13, %v1901_v60  ;;  %v4873_v60 = vld [vmem:[#allocation25_spill] sm:$0xff] }
 0x3cf   : > { %v1066_v18 = vsel %vm792_vm1, %v4873_v60, 0.0 }
 0x3d0   : > { %1007 = vadd.xlane.f32.xlu1 %v1006_v3  ;;  %v4867_v3 = vld [vmem:[#allocation18_spill] sm:$0xff]  ;;  %v1953_v6 = vadd.f32 %v1945_v19, %v1927_v37  ;;  %v1996_v37 = vmul.f32 %v2588_v58, %v4440_v9  ;;  %v1072_v58 = vsel %vm792_vm1, %v4876_v57, 0.0 }
 0x3d1   : > { %v1036_v35 = vsel %vm792_vm1, %v4867_v3, 0.0  ;;  %v2611_v3 = vld [vmem:[%s4792_s5 + $0x568] sm:$0xff] }
 0x3d2   : > { %1028 = vadd.xlane.f32.xlu0 %v1027_v40  ;;  %v4496_v40 = vld [vmem:[#allocation2 + $0x58] sm:$0xff] }
 0x3d3   : > { %v1971_v2 = vmul.f32 %v2581_v0, %v4496_v40  ;;  %v2596_v0 = vld [vmem:[%s4792_s5 + $0x4f0] sm:$0xff] }
 0x3d4   : > { %1001 = vadd.xlane.f32.xlu1 %v1000_v62  ;;  %v4868_v62 = vld [vmem:[#allocation24_spill] sm:$0xff] }
 0x3d5   : > { %v1057_v53 = vsel %vm792_vm1, %v4868_v62, 0.0  ;;  %v1979_v25 = vadd.f32 %v1971_v2, %v1953_v6  ;;  %v2058_v6 = vld [vmem:[#allocation2 + $0x5f] sm:$0xff] }
 0x3d6   : > { %1022 = vadd.xlane.f32.xlu0 %v1021_v36 }
 0x3d7   : > { %v2005_v59 = vadd.f32 %v1997_v21, %v1979_v25 }
 0x3d8   : > { %1019 = vadd.xlane.f32.xlu1 %v1018_v39  ;;  %v4869_v39 = vld [vmem:[#allocation21_spill] sm:$0xff] }
 0x3d9   : > { %v1054_v45 = vsel %vm792_vm1, %v4869_v39, 0.0  ;;  %v2613_v39 = vld [vmem:[%s4792_s5 + $0x578] sm:$0xff] }
 0x3da   : > { %1040 = vadd.xlane.f32.xlu0 %v1039_v28  ;;  %v1926_v28 = vadd.f32 %v1918_v17, %v4381_v33  ;;  %v2580_v33 = vld [vmem:[%s4792_s5 + $0x470] sm:$0xff]  ;;  %v4874_v17 = vld [vmem:[#allocation23_spill] sm:$0xff] }
 0x3db   : > { %v1970_v4 = vmul.f32 %v2580_v33, %v4430_v14  ;;  %v4875_v33 = vld [vmem:[#allocation29_spill] sm:$0xff] }
 0x3dc   : > { %1013 = vadd.xlane.f32.xlu1 %v1012_v5  ;;  %v4870_v5 = vld [vmem:[#allocation30_spill] sm:$0xff]  ;;  %v1078_v21 = vsel %vm792_vm1, %v4875_v33, 0.0 }
 0x3dd   : > { %v4445_v29 = vpop.f32.mrb[8].mxu0  ;;  %v1075_v46 = vsel %vm792_vm1, %v4870_v5, 0.0  ;;  %v2604_v5 = vld [vmem:[%s4792_s5 + $0x530] sm:$0xff] }
 0x3de   : > { %1034 = vadd.xlane.f32.xlu0 %v1033_v38  ;;  %v4449_v8 = vpop.f32.mrb[9].mxu0  ;;  %v1944_v38 = vmul.f32 %v2572_v11, %v4420_v15  ;;  %v1060_v11 = vsel %vm792_vm1, %v4874_v17, 0.0 }
 0x3df   : > { %v4451_v51 = vpop.f32.mrb[10].mxu0 }
 0x3e0   : > { %1031 = vadd.xlane.f32.xlu1 %v1030_v54  ;;  %v4456_v56 = vpop.f32.mrb[11].mxu0  ;;  %v1048_v54 = vsel %vm792_vm1, %v4871_v44, 0.0  ;;  %v1952_v26 = vadd.f32 %v1944_v38, %v1926_v28  ;;  %v2022_v28 = vmul.f32 %v2596_v0, %v4458_v30  ;;  %v2075_v38 = vmul.f32 %v2613_v39, %v2058_v6  ;;  %v2084_v44 = vld [vmem:[#allocation2 + $0x60] sm:$0xff] }
 0x3e1   : > { %v2136_v0 = vld [vmem:[#allocation2 + $0x62] sm:$0xff] }
 0x3e2   : > { %1052 = vadd.xlane.f32.xlu0 %v1051_v12  ;;  %v2597_v12 = vld [vmem:[%s4792_s5 + $0x4f8] sm:$0xff] }
 0x3e4   : > { %1025 = vadd.xlane.f32.xlu1 %v1024_v23  ;;  %v2603_v23 = vld [vmem:[%s4792_s5 + $0x528] sm:$0xff] }
 0x3e5   : > { %v4473_v1 = vpop.f32.mrb[12].mxu0  ;;  %v2047_v63 = vmul.f32 %v2603_v23, %v4410_v50 }
 0x3e6   : > { %1046 = vadd.xlane.f32.xlu0 %v1045_v55  ;;  %v4477_v10 = vpop.f32.mrb[13].mxu0  ;;  %v2023_v55 = vmul.f32 %v2597_v12, %v4534_v16  ;;  %v2048_v12 = vmul.f32 %v2604_v5, %v4468_v7  ;;  %v2620_v7 = vld [vmem:[%s4792_s5 + $0x5b0] sm:$0xff] }
 0x3e7   : > { %v4479_v48 = vpop.f32.mrb[14].mxu0  ;;  %v2055_v19 = vadd.f32 %v2047_v63, %v4388_v34  ;;  %v2619_v34 = vld [vmem:[%s4792_s5 + $0x5a8] sm:$0xff] }
 0x3e8   : > { %1043 = vadd.xlane.f32.xlu1 %v1042_v47  ;;  %v4484_v22 = vpop.f32.mrb[15].mxu0  ;;  %v1978_v47 = vadd.f32 %v1970_v4, %v1952_v26  ;;  %v2627_v26 = vld [vmem:[%s4792_s5 + $0x5e8] sm:$0xff] }
 0x3e9   : > { %v2125_v60 = vmul.f32 %v2627_v26, %v4440_v9  ;;  %v2100_v9 = vmul.f32 %v2620_v7, %v4496_v40  ;;  %v2636_v40 = vld [vmem:[%s4792_s5 + $0x630] sm:$0xff] }
 0x3ea   : > { %1064 = vadd.xlane.f32.xlu0 %v1063_v43  ;;  %v2605_v43 = vld [vmem:[%s4792_s5 + $0x538] sm:$0xff]  ;;  %v2004_v2 = vadd.f32 %v1996_v37, %v1978_v47 }
 0x3eb   : > { %v2049_v62 = vmul.f32 %v2605_v43, %v2032_v32  ;;  %v2836_v32 = vld [vmem:[%s4793_s6 + $0x8] sm:$0xff]  }
 0x3ec   : > { %1037 = vadd.xlane.f32.xlu1 %v1036_v35  ;;  %v2030_v25 = vadd.f32 %v2022_v28, %v2004_v2  ;;  %2799 = vmatprep.subr.bf16.mxu0 %v2836_v32 }
 0x3ed   : > { %v4505_v36 = vpop.f32.mrb[16].mxu0  ;;  %2800 = vmatpush3.bf16.msra.mxu0 %v2836_v32 }
 0x3ee   : > { %1058 = vadd.xlane.f32.xlu0 %v1057_v53  ;;  %v4513_v42 = vpop.f32.mrb[17].mxu0  ;;  %v2031_v53 = vadd.f32 %v2023_v55, %v2005_v59  ;;  %v2056_v55 = vadd.f32 %v2048_v12, %v2030_v25  ;;  %v2110_v59 = vld [vmem:[#allocation2 + $0x61] sm:$0xff] }
 0x3ef   : > { %v4521_v20 = vpop.f32.mrb[18].mxu0 }
 0x3f0   : > { %1055 = vadd.xlane.f32.xlu1 %v1054_v45  ;;  %v4525_v31 = vpop.f32.mrb[19].mxu0  ;;  %v2073_v45 = vmul.f32 %v2611_v3, %v4420_v15  ;;  %v2621_v15 = vld [vmem:[%s4792_s5 + $0x5b8] sm:$0xff] }
 0x3f1   : > { %v2101_v23 = vmul.f32 %v2621_v15, %v2084_v44 }
 0x3f2   : > { %1076 = vadd.xlane.f32.xlu0 %v1075_v46  ;;  %v2081_v24 = vadd.f32 %v2073_v45, %v2055_v19  ;;  %v2057_v46 = vadd.f32 %v2049_v62, %v2031_v53  ;;  %v2637_v19 = vld [vmem:[%s4792_s5 + $0x638] sm:$0xff] }
 0x3f4   : > { %1049 = vadd.xlane.f32.xlu1 %v1048_v54  ;;  %v2099_v54 = vmul.f32 %v2619_v34, %v4430_v14  ;;  %v2083_v4 = vadd.f32 %v2075_v38, %v2057_v46  ;;  %v2629_v14 = vld [vmem:[%s4792_s5 + $0x5f8] sm:$0xff]  ;;  %v2837_v34 = vld [vmem:[%s4793_s6 + $0x10] sm:$0xff]  }
 0x3f5   : > { %v2127_v37 = vmul.f32 %v2629_v14, %v2110_v59  ;;  %2801 = vmatprep.subr.bf16.mxu0 %v2837_v34 }
 0x3f6   : > { %1070 = vadd.xlane.f32.xlu0 %v1069_v52  ;;  %v4554_v13 = vpop.f32.mrb[20].mxu0  ;;  %v2107_v49 = vadd.f32 %v2099_v54, %v2081_v24  ;;  %v2612_v52 = vld [vmem:[%s4792_s5 + $0x570] sm:$0xff]  ;;  %v2109_v63 = vadd.f32 %v2101_v23, %v2083_v4  ;;  %2802 = vmatpush3.bf16.msra.mxu0 %v2837_v34  ;;  %v4670_v23 = vpop.permute.xlu0 %2178 }
 0x3f7   : > { %v4560_v61 = vpop.f32.mrb[21].mxu0  ;;  %v2074_v47 = vmul.f32 %v2612_v52, %v4486_v27  ;;  %v2628_v27 = vld [vmem:[%s4792_s5 + $0x5f0] sm:$0xff] }
 0x3f8   : > { %1067 = vadd.xlane.f32.xlu1 %v1066_v18  ;;  %v4566_v35 = vpop.f32.mrb[22].mxu0  ;;  %v2635_v18 = vld [vmem:[%s4792_s5 + $0x628] sm:$0xff]  ;;  %v2133_v43 = vadd.f32 %v2125_v60, %v2107_v49  ;;  %v2135_v17 = vadd.f32 %v2127_v37, %v2109_v63  ;;  %v2126_v6 = vmul.f32 %v2628_v27, %v4516_v41 }
 0x3f9   : > { %v4572_v50 = vpop.f32.mrb[23].mxu0  ;;  %v2082_v3 = vadd.f32 %v2074_v47, %v2056_v55  ;;  %v2151_v62 = vmul.f32 %v2635_v18, %v4458_v30  ;;  %v2152_v30 = vmul.f32 %v2636_v40, %v4534_v16  ;;  %v2838_v16 = vld [vmem:[%s4793_s6 + $0x18] sm:$0xff]  }
 0x3fa   : > { %2803 = vmatprep.subr.bf16.mxu0 %v2838_v16 }
 0x3fb   : > { %v2159_v53 = vadd.f32 %v2151_v62, %v2133_v43  ;;  %v2108_v2 = vadd.f32 %v2100_v9, %v2082_v3  ;;  %2804 = vmatpush3.bf16.msra.mxu0 %v2838_v16 }
 0x3fc   : > { %1061 = vadd.xlane.f32.xlu1 %v1060_v11  ;;  %v2153_v11 = vmul.f32 %v2637_v19, %v2136_v0 }
 0x3fd   : > { %v2134_v45 = vadd.f32 %v2126_v6, %v2108_v2  ;;  %v4877_v2 = vld [vmem:[#allocation7_spill] sm:$0xff] }
 0x3fe   : > { %v2161_v39 = vadd.f32 %v2153_v11, %v2135_v17 }
 0x3ff   : > { %v2160_v28 = vadd.f32 %v2152_v30, %v2134_v45 }
 0x400   : > { %1079 = vadd.xlane.f32.xlu1 %v1078_v21 }
 0x404   : > { %1073 = vadd.xlane.f32.xlu1 %v1072_v58  ;;  %v4674_v58 = vpop.permute.xlu1 %2180 }
 0x408   : > { %v4676_v14 = vpop.permute.xlu1 %2182 }
 0x40c   : > { %2188 = vrot.lane.b32.xlu0 %v2159_v53, %s2978_s26 }
 0x40d   : > { %v4672_v57 = vpop.permute.xlu0 %2184 }
 0x410   : > { %2192 = vrot.lane.b32.xlu0 %v2161_v39, %s2978_s26  ;;  %v4878_v39 = vld [vmem:[#allocation4_spill] sm:$0xff] }
 0x415   : > { %2190 = vrot.lane.b32.xlu1 %v2160_v28, %s2978_s26  ;;  %s2650_s26 = sshll.u32 %s4882_s28, 6 }
 0x416   : > { %v4678_v7 = vpop.permute.xlu1 %2186  ;;  %s305_s20 = scalar_lea.vmem %s4795_s8, %s2650_s26 }
 0x41c   : > { %v4635_v41 = vpop.f32.mrb[24].mxu0 }
 0x41d   : > { %v4637_v24 = vpop.f32.mrb[25].mxu0 }
 0x41e   : > { %v4639_v5 = vpop.f32.mrb[26].mxu0 }
 0x41f   : > { %v4641_v46 = vpop.f32.mrb[27].mxu0 }
 0x424   : > { %v4646_v38 = vpop.f32.mrb[28].mxu0 }
 0x425   : > { %v4648_v33 = vpop.f32.mrb[29].mxu0 }
 0x426   : > { %v4650_v21 = vpop.f32.mrb[30].mxu0 }
 0x427   : > { %v4652_v25 = vpop.f32.mrb[31].mxu0 }
 0x42d   : > { %v4654_v44 = vpop.f32.mrb[32].mxu0 }
 0x42e   : > { %v4656_v15 = vpop.f32.mrb[33].mxu0 }
 0x42f   : > { %v4658_v54 = vpop.f32.mrb[34].mxu0 }
 0x430   : > { %v4660_v26 = vpop.f32.mrb[35].mxu0 }
 0x435   : > { %v4662_v12 = vpop.f32.mrb[36].mxu0 }
 0x436   : > { %v4664_v49 = vpop.f32.mrb[37].mxu0 }
 0x437   : > { %v4666_v52 = vpop.f32.mrb[38].mxu0 }
 0x438   : > { %v4668_v4 = vpop.f32.mrb[39].mxu0 }
 0x447   : > { %v993_v55 = vpop.xlane.xlu0 %992 }
 0x448   : > { %2903 = vrcp.f32 %v993_v55 }
 0x44b   : > { %v990_v59 = vpop.xlane.xlu0 %989 }
 0x44f   : > { %v1005_v60 = vpop.xlane.xlu0 %1004 }
 0x452   : > { %v2904_v3 = vpop.eup %2903 }
 0x453   : > { %v999_v18 = vpop.xlane.xlu0 %998  ;;  %v1352_v19 = vmul.f32 %v2904_v3, %v4445_v29 }
 0x455   : > { %v987_v47 = vpop.xlane.xlu1 %986  ;;  %v1384_v6 = vmul.f32 %v1352_v19, %v4877_v2 }
 0x456   : > { %2905 = vrcp.f32 %v987_v47 }
 0x457   : > { %v1017_v32 = vpop.xlane.xlu0 %1016 }
 0x458   : > { %2907 = vrcp.f32 %v1017_v32 }
 0x459   : > { %v996_v43 = vpop.xlane.xlu1 %995  ;;  %2909 = vrcp.f32 %v1005_v60 }
 0x45b   : > { %v1011_v63 = vpop.xlane.xlu0 %1010 }
 0x45c   : > { %2911 = vrcp.f32 %v1011_v63 }
 0x45d   : > { %v1008_v37 = vpop.xlane.xlu1 %1007  ;;  %2913 = vrcp.f32 %v999_v18 }
 0x45f   : > { %v1029_v9 = vpop.xlane.xlu0 %1028 }
 0x460   : > { %2915 = vrcp.f32 %v1029_v9  ;;  %v2906_v0 = vpop.eup %2905 }
 0x461   : > { %v1002_v62 = vpop.xlane.xlu1 %1001  ;;  %2917 = vrcp.f32 %v996_v43  ;;  %v1350_v40 = vmul.f32 %v2906_v0, %v4449_v8 }
 0x462   : > { %v2908_v27 = vpop.eup %2907 }
 0x463   : > { %v1360_v53 = vmul.f32 %v2908_v27, %v4505_v36  ;;  %v1023_v17 = vpop.xlane.xlu0 %1022  ;;  %v2910_v11 = vpop.eup %2909  ;;  %v1382_v60 = vmul.f32 %v1350_v40, %v4877_v2 }
 0x464   : > { %2919 = vrcp.f32 %v1023_v17  ;;  %v1356_v36 = vmul.f32 %v2910_v11, %v4473_v1 }
 0x465   : > { %2921 = vrcp.f32 %v990_v59  ;;  %v1392_v45 = vmul.f32 %v1360_v53, %v4878_v39  ;;  %v1020_v30 = vpop.xlane.xlu1 %1019 }
 0x466   : > { %v2912_v28 = vpop.eup %2911  ;;  %2923 = vrcp.f32 %v1020_v30  ;;  %v1388_v1 = vmul.f32 %v1356_v36, %v4877_v2 }
 0x467   : > { %v1400_v34 = vadd.f32 %v1392_v45, %v1384_v6  ;;  %v1358_v29 = vmul.f32 %v2912_v28, %v4513_v42  ;;  %v1041_v16 = vpop.xlane.xlu0 %1040  ;;  %v2914_v55 = vpop.eup %2913 }
 0x468   : > { %2925 = vrcp.f32 %v1041_v16  ;;  %v1354_v42 = vmul.f32 %v2914_v55, %v4477_v10 }
 0x469   : > { %2927 = vrcp.f32 %v1008_v37  ;;  %v1390_v59 = vmul.f32 %v1358_v29, %v4878_v39  ;;  %v1014_v18 = vpop.xlane.xlu1 %1013 }
 0x46a   : > { %v2916_v8 = vpop.eup %2915  ;;  %2929 = vrcp.f32 %v1014_v18  ;;  %v1386_v11 = vmul.f32 %v1354_v42, %v4877_v2 }
 0x46b   : > { %v1398_v47 = vadd.f32 %v1390_v59, %v1382_v60  ;;  %v1364_v32 = vmul.f32 %v2916_v8, %v4554_v13  ;;  %v1035_v43 = vpop.xlane.xlu0 %1034  ;;  %v2918_v63 = vpop.eup %2917  ;;  %v4879_v60 = vld [vmem:[#allocation5_spill] sm:$0xff] }
 0x46c   : > { %2931 = vrcp.f32 %v1035_v43  ;;  %v1353_v19 = vmul.f32 %v2918_v63, %v4451_v51 }
 0x46d   : > { %2933 = vrcp.f32 %v1002_v62  ;;  %v1032_v3 = vpop.xlane.xlu1 %1031  ;;  %v1396_v9 = vmul.f32 %v1364_v32, %v4878_v39 }
 0x46e   : > { %v2920_v37 = vpop.eup %2919  ;;  %2935 = vrcp.f32 %v1032_v3  ;;  %v1385_v51 = vmul.f32 %v1353_v19, %v4877_v2 }
 0x46f   : > { %v2922_v0 = vpop.eup %2921  ;;  %v1362_v27 = vmul.f32 %v2920_v37, %v4560_v61  ;;  %v1053_v53 = vpop.xlane.xlu0 %1052  ;;  %v1404_v13 = vadd.f32 %v1396_v9, %v1388_v1 }
 0x470   : > { %v2924_v17 = vpop.eup %2923  ;;  %2937 = vrcp.f32 %v1053_v53  ;;  %v1351_v45 = vmul.f32 %v2922_v0, %v4456_v56 }
 0x471   : > { %v1361_v10 = vmul.f32 %v2924_v17, %v4521_v20  ;;  %v1394_v62 = vmul.f32 %v1362_v27, %v4878_v39  ;;  %v1026_v6 = vpop.xlane.xlu1 %1025 }
 0x472   : > { %v2926_v40 = vpop.eup %2925  ;;  %2939 = vrcp.f32 %v1026_v6  ;;  %v1383_v43 = vmul.f32 %v1351_v45, %v4877_v2 }
 0x473   : > { %v2928_v30 = vpop.eup %2927  ;;  %v1393_v61 = vmul.f32 %v1361_v10, %v4878_v39  ;;  %v1402_v28 = vadd.f32 %v1394_v62, %v1386_v11  ;;  %v1368_v29 = vmul.f32 %v2926_v40, %v4635_v41  ;;  %v1047_v16 = vpop.xlane.xlu0 %1046 }
 0x474   : > { %v2930_v55 = vpop.eup %2929  ;;  %2941 = vrcp.f32 %v1047_v16  ;;  %v1357_v56 = vmul.f32 %v2928_v30, %v4479_v48 }
 0x475   : > { %v1401_v36 = vadd.f32 %v1393_v61, %v1385_v51  ;;  %v1359_v20 = vmul.f32 %v2930_v55, %v4525_v31  ;;  %v1408_v59 = vmul.f32 %v1368_v29, %v4879_v60  ;;  %v1044_v18 = vpop.xlane.xlu1 %1043 }
 0x476   : > { %v2932_v8 = vpop.eup %2931  ;;  %2943 = vrcp.f32 %v1044_v18  ;;  %v1389_v48 = vmul.f32 %v1357_v56, %v4877_v2 }
 0x477   : > { %v2934_v32 = vpop.eup %2933  ;;  %v1391_v63 = vmul.f32 %v1359_v20, %v4878_v39  ;;  %v1416_v42 = vadd.f32 %v1408_v59, %v1400_v34  ;;  %v1366_v41 = vmul.f32 %v2932_v8, %v4637_v24  ;;  %v1065_v3 = vpop.xlane.xlu0 %1064  ;;  %v4880_v8 = vld [vmem:[#allocation6_spill] sm:$0xff] }
 0x478   : > { %v2936_v1 = vpop.eup %2935  ;;  %2945 = vrcp.f32 %v1065_v3  ;;  %v1355_v27 = vmul.f32 %v2934_v32, %v4484_v22 }
 0x479   : > { %v1399_v9 = vadd.f32 %v1391_v63, %v1383_v43  ;;  %v1365_v31 = vmul.f32 %v2936_v1, %v4566_v35  ;;  %v1406_v37 = vmul.f32 %v1366_v41, %v4879_v60  ;;  %v1038_v0 = vpop.xlane.xlu1 %1037 }
 0x47a   : > { %v2938_v19 = vpop.eup %2937  ;;  %2947 = vrcp.f32 %v1038_v0  ;;  %v1387_v45 = vmul.f32 %v1355_v27, %v4877_v2 }
 0x47b   : > { %v1414_v53 = vadd.f32 %v1406_v37, %v1398_v47  ;;  %v1372_v34 = vmul.f32 %v2938_v19, %v4646_v38  ;;  %v1059_v17 = vpop.xlane.xlu0 %1058  ;;  %v1397_v24 = vmul.f32 %v1365_v31, %v4878_v39 }
 0x47c   : > { %v2940_v11 = vpop.eup %2939  ;;  %2949 = vrcp.f32 %v1059_v17 }
 0x47d   : > { %v1363_v10 = vmul.f32 %v2940_v11, %v4572_v50  ;;  %v1056_v35 = vpop.xlane.xlu1 %1055  ;;  %v1405_v62 = vadd.f32 %v1397_v24, %v1389_v48  ;;  %v1412_v6 = vmul.f32 %v1372_v34, %v4879_v60 }
 0x47e   : > { %v2942_v40 = vpop.eup %2941  ;;  %2951 = vrcp.f32 %v1056_v35 }
 0x47f   : > { %v1395_v22 = vmul.f32 %v1363_v10, %v4878_v39  ;;  %v1370_v47 = vmul.f32 %v2942_v40, %v4648_v33  ;;  %v1077_v38 = vpop.xlane.xlu0 %1076  ;;  %v1420_v30 = vadd.f32 %v1412_v6, %v1404_v13 }
 0x480   : > { %v2944_v51 = vpop.eup %2943  ;;  %2953 = vrcp.f32 %v1077_v38 }
 0x481   : > { %v1403_v61 = vadd.f32 %v1395_v22, %v1387_v45  ;;  %v1369_v29 = vmul.f32 %v2944_v51, %v4639_v5  ;;  %v1410_v50 = vmul.f32 %v1370_v47, %v4879_v60  ;;  %v1050_v16 = vpop.xlane.xlu1 %1049 }
 0x482   : > { %v2946_v55 = vpop.eup %2945  ;;  %2955 = vrcp.f32 %v1050_v16 }
 0x483   : > { %v1409_v20 = vmul.f32 %v1369_v29, %v4879_v60  ;;  %v1418_v59 = vadd.f32 %v1410_v50, %v1402_v28  ;;  %v1376_v2 = vmul.f32 %v2946_v55, %v4654_v44  ;;  %v1071_v39 = vpop.xlane.xlu0 %1070 }
 0x484   : > { %v2948_v18 = vpop.eup %2947  ;;  %2957 = vrcp.f32 %v1071_v39  ;;  %v2638_v39 = vld [vmem:[%s4794_s7] ss:$0 sm:$0xff] }
 0x485   : > { %v1417_v33 = vadd.f32 %v1409_v20, %v1401_v36  ;;  %v1367_v13 = vmul.f32 %v2948_v18, %v4641_v46  ;;  %v1424_v56 = vmul.f32 %v1376_v2, %v4880_v8  ;;  %v1068_v32 = vpop.xlane.xlu1 %1067 }
 0x486   : > { %v2950_v5 = vpop.eup %2949  ;;  %2959 = vrcp.f32 %v1068_v32 }
 0x487   : > { %v1407_v43 = vmul.f32 %v1367_v13, %v4879_v60  ;;  %v1432_v63 = vadd.f32 %v1424_v56, %v1416_v42  ;;  %v1374_v41 = vmul.f32 %v2950_v5, %v4656_v15  ;;  %v2189_v40 = vpop.permute.xlu0 %2188 }
 0x488   : > { %v2952_v28 = vpop.eup %2951 }
 0x489   : > { %v1415_v3 = vadd.f32 %v1407_v43, %v1399_v9  ;;  %2164 = vst.msk [vmem:[#allocation3 + $0x10] sm:$0xff] %vm352_vm0, %v1432_v63  ;;  %v1373_v44 = vmul.f32 %v2952_v28, %v4650_v21  ;;  %v1422_v36 = vmul.f32 %v1374_v41, %v4880_v8  ;;  %v1062_v46 = vpop.xlane.xlu1 %1061 }
 0x48a   : > { %v2954_v1 = vpop.eup %2953  ;;  %2961 = vrcp.f32 %v1062_v46  ;;  %2205 = vst.msk [vmem:[#allocation3 + $0x10] sm:$0xff] %vm2202_vm2, %v4676_v14 }
 0x48b   : > { %v1430_v31 = vadd.f32 %v1422_v36, %v1414_v53  ;;  %v1413_v42 = vmul.f32 %v1373_v44, %v4879_v60  ;;  %v1380_v15 = vmul.f32 %v2954_v1, %v4662_v12  ;;  %v2193_v38 = vpop.permute.xlu0 %2192 }
 0x48c   : > { %v2956_v37 = vpop.eup %2955 }
 0x48d   : > { %2162 = vst.msk [vmem:[#allocation3] sm:$0xff] %vm352_vm0, %v1430_v31  ;;  %v1371_v9 = vmul.f32 %v2956_v37, %v4652_v25  ;;  %v1080_v0 = vpop.xlane.xlu1 %1079  ;;  %v1421_v21 = vadd.f32 %v1413_v42, %v1405_v62  ;;  %v1428_v19 = vmul.f32 %v1380_v15, %v4880_v8 }
 0x48e   : > { %v2958_v48 = vpop.eup %2957  ;;  %2963 = vrcp.f32 %v1080_v0  ;;  %2203 = vst.msk [vmem:[#allocation3] sm:$0xff] %vm2202_vm2, %v4670_v23 }
 0x48f   : > { %v1411_v14 = vmul.f32 %v1371_v9, %v4879_v60  ;;  %v1378_v27 = vmul.f32 %v2958_v48, %v4664_v49  ;;  %v1436_v53 = vadd.f32 %v1428_v19, %v1420_v30 }
 0x490   : > { %v2960_v12 = vpop.eup %2959 }
 0x491   : > { %v1419_v34 = vadd.f32 %v1411_v14, %v1403_v61  ;;  %v1377_v17 = vmul.f32 %v2960_v12, %v4658_v54  ;;  %v1426_v25 = vmul.f32 %v1378_v27, %v4880_v8  ;;  %v1074_v24 = vpop.xlane.xlu1 %1073  ;;  %2168 = vst.msk [vmem:[#allocation3 + $0x30] sm:$0xff] %vm352_vm0, %v1436_v53  ;;  %v2213_v29 = vld [vmem:[#allocation3 + $0x10] sm:$0xff] }
 0x492   : > { %2965 = vrcp.f32 %v1074_v24 }
 0x493   : > { %v1425_v11 = vmul.f32 %v1377_v17, %v4880_v8  ;;  %v1434_v10 = vadd.f32 %v1426_v25, %v1418_v59 }
 0x494   : > { %v2962_v35 = vpop.eup %2961 }
 0x495   : > { %v1433_v23 = vadd.f32 %v1425_v11, %v1417_v33  ;;  %2166 = vst.msk [vmem:[#allocation3 + $0x20] sm:$0xff] %vm352_vm0, %v1434_v10  ;;  %v1375_v49 = vmul.f32 %v2962_v35, %v4660_v26  ;;  %v2191_v60 = vpop.permute.xlu1 %2190  ;;  %v2211_v51 = vld [vmem:[#allocation3] sm:$0xff] }
 0x496   : > { %2207 = vst.msk [vmem:[#allocation3 + $0x20] sm:$0xff] %vm2202_vm2, %v4678_v7  ;;  %2209 = vst.msk [vmem:[#allocation3 + $0x30] sm:$0xff] %vm2202_vm2, %v2191_v60 }
 0x497   : > { %2165 = vst.msk [vmem:[#allocation3 + $0x18] sm:$0xff] %vm352_vm0, %v1433_v23  ;;  %v1423_v54 = vmul.f32 %v1375_v49, %v4880_v8 }
 0x498   : > { %v2964_v62 = vpop.eup %2963  ;;  %2206 = vst.msk [vmem:[#allocation3 + $0x18] sm:$0xff] %vm2202_vm2, %v4672_v57 }
 0x499   : > { %v1431_v6 = vadd.f32 %v1423_v54, %v1415_v3  ;;  %v1381_v45 = vmul.f32 %v2964_v62, %v4666_v52 }
 0x49b   : > { %2163 = vst.msk [vmem:[#allocation3 + $0x8] sm:$0xff] %vm352_vm0, %v1431_v6  ;;  %v1429_v26 = vmul.f32 %v1381_v45, %v4880_v8 }
 0x49c   : > { %v2966_v22 = vpop.eup %2965  ;;  %2204 = vst.msk [vmem:[#allocation3 + $0x8] sm:$0xff] %vm2202_vm2, %v4674_v58 }
 0x49d   : > { %v1437_v7 = vadd.f32 %v1429_v26, %v1421_v21  ;;  %v1379_v47 = vmul.f32 %v2966_v22, %v4668_v4  ;;  %v2215_v16 = vld [vmem:[#allocation3 + $0x20] sm:$0xff]  ;;  %v2217_v59 = vld [vmem:[#allocation3 + $0x30] sm:$0xff] }
 0x49f   : > { %2169 = vst.msk [vmem:[#allocation3 + $0x38] sm:$0xff] %vm352_vm0, %v1437_v7  ;;  %v1427_v57 = vmul.f32 %v1379_v47, %v4880_v8  ;;  %v2214_v52 = vld [vmem:[#allocation3 + $0x18] sm:$0xff] }
 0x4a0   : > { %2210 = vst.msk [vmem:[#allocation3 + $0x38] sm:$0xff] %vm2202_vm2, %v2193_v38  ;;  %v2220_v50 = vpack.c.bf16 %v2214_v52, %v2213_v29 }
 0x4a1   : > { %v1435_v30 = vadd.f32 %v1427_v57, %v1419_v34 }
 0x4a3   : > { %2167 = vst.msk [vmem:[#allocation3 + $0x28] sm:$0xff] %vm352_vm0, %v1435_v30  ;;  %v2212_v61 = vld [vmem:[#allocation3 + $0x8] sm:$0xff] }
 0x4a4   : > { %2208 = vst.msk [vmem:[#allocation3 + $0x28] sm:$0xff] %vm2202_vm2, %v2189_v40  ;;  %v2219_v58 = vpack.c.bf16 %v2212_v61, %v2211_v51 }
 0x4a6   : > { %2805 = vmatprep.mubr.msk.bf16.mxu0 %vm792_vm1, %v2219_v58 }
 0x4a7   : > { %2806 = vmatmul.mubr.msk.bf16.vlgmr.msra.gmra.mrb[40].mxu0 %vm792_vm1, %v2220_v50  ;;  %v2218_v4 = vld [vmem:[#allocation3 + $0x38] sm:$0xff] }
 0x4a8   : > { %v2222_v2 = vpack.c.bf16 %v2218_v4, %v2217_v59 }
 0x4ab   : > { %v2216_v55 = vld [vmem:[#allocation3 + $0x28] sm:$0xff] }
 0x4ac   : > { %v2221_v20 = vpack.c.bf16 %v2216_v55, %v2215_v16 }
 0x4ae   : > { %2809 = vmatprep.mubr.msk.bf16.mxu0 %vm792_vm1, %v2221_v20 }
 0x4af   : > { %2810 = vmatmul.mubr.msk.bf16.gmra.mrb[44].mxu0 %vm792_vm1, %v2222_v2 }
 0x57a   : > { %v2807_v18 = vpop.f32.mrb[40].mxu0 }
 0x57b   : > { %v2309_v33 = vadd.f32 %v2807_v18, %v2638_v39  ;;  %v2300_v13 = vpop.f32.mrb[41].mxu0 }
 0x57c   : > { %v2301_v8 = vadd.f32 %v2638_v39, %v2300_v13  ;;  %v2808_v56 = vpop.f32.mrb[42].mxu0 }
 0x57d   : > { %2333 = vst.msk [vmem:[%s305_s20 + $0x10] sm:$0xff] %vm352_vm0, %v2309_v33  ;;  %v2312_v32 = vadd.f32 %v2808_v56, %v2638_v39  ;;  %v2303_v5 = vpop.f32.mrb[43].mxu0 }
 0x57e   : > { %2331 = vst.msk [vmem:[%s305_s20] sm:$0xff] %vm352_vm0, %v2301_v8  ;;  %v2304_v43 = vadd.f32 %v2638_v39, %v2303_v5 }
 0x57f   : > { %2334 = vst.msk [vmem:[%s305_s20 + $0x18] sm:$0xff] %vm352_vm0, %v2312_v32 }
 0x580   : > { %2332 = vst.msk [vmem:[%s305_s20 + $0x8] sm:$0xff] %vm352_vm0, %v2304_v43 }
 0x582   : > { %v2811_v63 = vpop.f32.mrb[44].mxu0 }
 0x583   : > { %v2325_v41 = vadd.f32 %v2811_v63, %v2638_v39  ;;  %v2316_v28 = vpop.f32.mrb[45].mxu0 }
 0x584   : > { %v2317_v3 = vadd.f32 %v2638_v39, %v2316_v28  ;;  %v2812_v44 = vpop.f32.mrb[46].mxu0 }
 0x585   : > { %2337 = vst.msk [vmem:[%s305_s20 + $0x30] sm:$0xff] %vm352_vm0, %v2325_v41  ;;  %v2328_v36 = vadd.f32 %v2812_v44, %v2638_v39  ;;  %v2319_v46 = vpop.f32.mrb[47].mxu0 }
 0x586   : > { %2335 = vst.msk [vmem:[%s305_s20 + $0x20] sm:$0xff] %vm352_vm0, %v2317_v3  ;;  %v2320_v1 = vadd.f32 %v2638_v39, %v2319_v46 }
 0x587   : > { %2338 = vst.msk [vmem:[%s305_s20 + $0x38] sm:$0xff] %vm352_vm0, %v2328_v36 }
 0x588   : > { %2336 = vst.msk [vmem:[%s305_s20 + $0x28] sm:$0xff] %vm352_vm0, %v2320_v1 }
 0x589 PF: > { %s18_s27 = sadd.s32 1, %s2973_s27  }
 0x58a   : > { %p15_p4 = scmp.ge.s32.totalorder %s18_s27, 4  }
 0x58c   :  { %17 = sbr.rel (!%p15_p4) target bundleno = 1 (0x1), region = 106 }

</bundles_post_ra>
